<compile_context>
chip_gen: v7x
topology: tpu7x:2x2x1
jax: 0.10.0
libtpu: 0.0.40
codegen_flags: <defaults>
</compile_context>

<pallas_src>
import functools

import jax
import jax.numpy as jnp
from jax import lax
from jax.experimental import pallas as pl
from jax.experimental.pallas import tpu as pltpu

STEM_CH = 32           # tinynet_a stem width
NUM_FEATURES = 1280    # tinynet_a cnn.num_features
EMBED_DIM = 512        # fc output dim
FEAT_CHUNK = 256       # in-kernel chunk of the 1280-wide head/fc feature dim
N_CHUNKS = NUM_FEATURES // FEAT_CHUNK


def _round_up(x, m):
    return (x + m - 1) // m * m


def _bf16_eup_supported():
    # v6e / v7x EUP+VPU support bf16 (2x packed transcendentals); v5e does not.
    try:
        kind = jax.devices()[0].device_kind.lower()
    except Exception:
        return False
    return any(t in kind for t in ("v6", "v7", "tpu7"))


def _silu(x_f32, bf16_eup):
    # silu(x) = x * sigmoid(x) = x * 0.5 * (1 + tanh(0.5 x))
    # -> one EUP transcendental per element (vs exp + reciprocal).
    if bf16_eup:
        # Only the transcendental runs in bf16 (2x EUP throughput); the surrounding
        # arithmetic and all accumulations stay f32.
        t = jnp.tanh((x_f32 * 0.5).astype(jnp.bfloat16)).astype(jnp.float32)
    else:
        t = jnp.tanh(x_f32 * 0.5)
    return x_f32 * (0.5 * (1.0 + t))


# ---------------------------------------------------------------------------
# Fused kernel: stem matmul + SiLU -> chunked(head matmul + SiLU + row-sum)
#               -> GAP -> fc(512) epilogue.
# grid = (batch, spatial_tiles). acc scratch holds per-sublane partial feature
# sums; outputs (pooled features, fc embedding) are written once per batch
# element at the last spatial step.
# ---------------------------------------------------------------------------
def backbone_fc_kernel(cols_ref, stem_w_ref, head_w_ref, fc_w_ref, fc_b_ref,
                       feat_ref, out_ref, acc_ref, *, inv_hw, bf16_eup):
    s = pl.program_id(1)

    @pl.when(s == 0)
    def _():
        acc_ref[...] = jnp.zeros_like(acc_ref)

    x = cols_ref[0]                                                   # [tm, kp] bf16
    tm = x.shape[0]
    stem = jnp.dot(x, stem_w_ref[...], preferred_element_type=jnp.float32)
    stem = _silu(stem, bf16_eup).astype(jnp.bfloat16)                 # [tm, 32]

    def chunk_body(c, carry):
        # [tm, 256] f32 is the only head activation ever live (bounds vreg/VMEM use).
        h = jnp.dot(stem, head_w_ref[c], preferred_element_type=jnp.float32)
        h = _silu(h, bf16_eup)
        # per-sublane-group partial sums: pure VPU adds, no per-step XLU reduce
        partial = jnp.sum(h.reshape(tm // 8, 8, FEAT_CHUNK), axis=0)  # [8, 256]
        acc_ref[c] += partial
        return carry

    lax.fori_loop(0, N_CHUNKS, chunk_body, 0, unroll=True)

    @pl.when(s == pl.num_programs(1) - 1)
    def _():
        # GAP: collapse the 8 sublane partials once per batch element.
        feat_ref[0] = jnp.sum(acc_ref[...], axis=1) * inv_hw          # [n_chunks, 256]

        # fc fused into the epilogue (chunked over K=1280): fc(mean) = (sum @ W)*inv_hw + b
        def fc_body(c, y8):
            return y8 + jnp.dot(acc_ref[c].astype(jnp.bfloat16), fc_w_ref[c],
                                preferred_element_type=jnp.float32)

        y8 = lax.fori_loop(0, N_CHUNKS, fc_body,
                           jnp.zeros((8, EMBED_DIM), jnp.float32), unroll=True)
        out_ref[0] = jnp.sum(y8, axis=0, keepdims=True) * inv_hw + fc_b_ref[...]


def fused_forward(cols, stem_w, head_w3, fc_w3, fc_b, *, hw_real, tm, bf16_eup):
    """cols: [N, hw_pad, kp] bf16 (zero-padded rows/cols are exact no-ops)."""
    n, hw_pad, kp = cols.shape
    assert hw_pad % tm == 0 and tm % 8 == 0
    kernel = functools.partial(backbone_fc_kernel,
                               inv_hw=1.0 / float(hw_real), bf16_eup=bf16_eup)
    feat, out = pl.pallas_call(
        kernel,
        out_shape=(
            jax.ShapeDtypeStruct((n, N_CHUNKS, FEAT_CHUNK), jnp.float32),
            jax.ShapeDtypeStruct((n, 1, EMBED_DIM), jnp.float32),
        ),
        grid_spec=pltpu.PrefetchScalarGridSpec(
            num_scalar_prefetch=0,
            grid=(n, hw_pad // tm),
            in_specs=[
                pl.BlockSpec((1, tm, kp), lambda b, s: (b, s, 0)),
                pl.BlockSpec((kp, STEM_CH), lambda b, s: (0, 0)),
                pl.BlockSpec((N_CHUNKS, STEM_CH, FEAT_CHUNK), lambda b, s: (0, 0, 0)),
                pl.BlockSpec((N_CHUNKS, FEAT_CHUNK, EMBED_DIM), lambda b, s: (0, 0, 0)),
                pl.BlockSpec((1, EMBED_DIM), lambda b, s: (0, 0)),
            ],
            out_specs=[
                pl.BlockSpec((1, N_CHUNKS, FEAT_CHUNK), lambda b, s: (b, 0, 0)),
                pl.BlockSpec((1, 1, EMBED_DIM), lambda b, s: (b, 0, 0)),
            ],
            scratch_shapes=[pltpu.VMEM((N_CHUNKS, 8, FEAT_CHUNK), jnp.float32)],
        ),
        compiler_params=pltpu.CompilerParams(
            dimension_semantics=("parallel", "arbitrary"),
            vmem_limit_bytes=32 * 1024 * 1024,   # well under v7x's 64 MiB physical VMEM
        ),
    )(cols, stem_w, head_w3, fc_w3, fc_b)
    return feat.reshape(n, NUM_FEATURES), out.reshape(n, EMBED_DIM)


# ---------------------------------------------------------------------------
# Glue: im2col (layout plumbing only; done in bf16 so the HBM cols traffic is halved).
# ---------------------------------------------------------------------------
def im2col(x_nhwc, k, stride, pad):
    N, H, W, C = x_nhwc.shape
    xp = jnp.pad(x_nhwc, ((0, 0), (pad, pad), (pad, pad), (0, 0)))
    Ho = (H + 2 * pad - k) // stride + 1
    Wo = (W + 2 * pad - k) // stride + 1
    patches = []
    for kh in range(k):
        for kw in range(k):
            patches.append(
                xp[:, kh:kh + stride * Ho:stride, kw:kw + stride * Wo:stride, :])
    cols = jnp.concatenate(patches, axis=-1)            # [N, Ho, Wo, k*k*C]
    return cols.reshape(N, Ho * Wo, k * k * C), Ho, Wo


def _prepare_cols(params, x_nchw, tm_max):
    x = jnp.transpose(x_nchw, (0, 2, 3, 1)).astype(jnp.bfloat16)   # NHWC, bf16 up front
    cols, _, _ = im2col(x, k=3, stride=2, pad=1)                   # [N, hw, 27] bf16
    n, hw, kin = cols.shape
    kpad = params["stem_w"].shape[0]
    tm = min(tm_max, _round_up(hw, 16))
    hw_pad = _round_up(hw, tm)
    # one merged pad: spatial-pad rows and K-pad cols are exact zeros through the net.
    cols = jnp.pad(cols, ((0, 0), (0, hw_pad - hw), (0, kpad - kin)))
    return cols, hw, tm


# ---------------------------------------------------------------------------
# Parameter init (deterministic, synthetic) + forward
# ---------------------------------------------------------------------------
def init_params(key, in_ch=3):
    k1, k2, k3, k4 = jax.random.split(key, 4)
    kin = 3 * 3 * in_ch
    kpad = _round_up(kin, 32)            # pad stem contraction dim for MXU alignment
    stem_w = jax.random.normal(k1, (kin, STEM_CH), jnp.float32) * 0.1
    stem_w = jnp.pad(stem_w, ((0, kpad - kin), (0, 0)))
    head_w = jax.random.normal(k2, (STEM_CH, NUM_FEATURES), jnp.float32) * 0.05
    fc_w = jax.random.normal(k3, (NUM_FEATURES, EMBED_DIM), jnp.float32) * 0.02
    fc_b = jax.random.normal(k4, (1, EMBED_DIM), jnp.float32) * 0.01
    # pre-split the 1280-wide weights into the in-kernel feature chunks
    head_w3 = jnp.transpose(head_w.reshape(STEM_CH, N_CHUNKS, FEAT_CHUNK), (1, 0, 2))
    fc_w3 = fc_w.reshape(N_CHUNKS, FEAT_CHUNK, EMBED_DIM)
    return {
        "stem_w": stem_w.astype(jnp.bfloat16),   # [kpad, 32]        bf16 (MXU operand)
        "head_w": head_w3.astype(jnp.bfloat16),  # [5, 32, 256]      bf16 (MXU operand)
        "fc_w": fc_w3.astype(jnp.bfloat16),      # [5, 256, 512]     bf16 (MXU operand)
        "fc_b": fc_b,                            # [1, 512]          f32
    }


def get_embedding(params, x_nchw, *, tm_max=1024):
    """Equivalent of self.cnn(input): pooled [N, num_features] features."""
    cols, hw, tm = _prepare_cols(params, x_nchw, tm_max)
    feat, _ = fused_forward(cols, params["stem_w"], params["head_w"],
                            params["fc_w"], params["fc_b"],
                            hw_real=hw, tm=tm, bf16_eup=_bf16_eup_supported())
    return feat                                                     # [N, 1280] f32


def light_network_forward(params, x_nchw, *, tm_max=1024):
    cols, hw, tm = _prepare_cols(params, x_nchw, tm_max)
    _, out = fused_forward(cols, params["stem_w"], params["head_w"],
                           params["fc_w"], params["fc_b"],
                           hw_real=hw, tm=tm, bf16_eup=_bf16_eup_supported())
    return out                                                      # [N, 512] f32


if __name__ == "__main__":
    key = jax.random.PRNGKey(0)
    k_x, k_p = jax.random.split(key)
    # PyTorch-convention NCHW input: batch=2, RGB channels=3, spatial=16
    x = jax.random.normal(k_x, (2, 3, 16, 16), jnp.float32)
    params = init_params(k_p, in_ch=3)

    out = light_network_forward(params, x)
    out = jax.block_until_ready(out)
    assert out.shape == (2, EMBED_DIM) and out.dtype == jnp.float32
    print("KERNEL_OK")
</pallas_src>

<mosaic_0001>
module attributes {stable_mosaic.version = 11 : i64} {
  func.func @backbone_fc_kernel(%arg0: i32, %arg1: i32, %arg2: memref<1x64x32xbf16, #tpu.memory_space<vmem>>, %arg3: memref<32x32xbf16, #tpu.memory_space<vmem>>, %arg4: memref<5x32x256xbf16, #tpu.memory_space<vmem>>, %arg5: memref<5x256x512xbf16, #tpu.memory_space<vmem>>, %arg6: memref<1x512xf32, #tpu.memory_space<vmem>>, %arg7: memref<1x5x256xf32, #tpu.memory_space<vmem>>, %arg8: memref<1x1x512xf32, #tpu.memory_space<vmem>>, %arg9: memref<5x8x256xf32, #tpu.memory_space<vmem>>) attributes {dimension_semantics = [#tpu.dimension_semantics<parallel>, #tpu.dimension_semantics<arbitrary>], iteration_bounds = array<i64: 2, 1>, scalar_prefetch = 0 : i64, scratch_operands = 1 : i64, tpu.core_type = #tpu.core_type<tc>, window_params = [{transform_indices = @transform_0, window_bounds = array<i64: 1, 64, 32>}, {pipeline_mode = #tpu.pipeline_mode<synchronous>, transform_indices = @transform_1, window_bounds = array<i64: 32, 32>}, {pipeline_mode = #tpu.pipeline_mode<synchronous>, transform_indices = @transform_2, window_bounds = array<i64: 5, 32, 256>}, {pipeline_mode = #tpu.pipeline_mode<synchronous>, transform_indices = @transform_3, window_bounds = array<i64: 5, 256, 512>}, {pipeline_mode = #tpu.pipeline_mode<synchronous>, transform_indices = @transform_4, window_bounds = array<i64: 1, 512>}, {transform_indices = @transform_5, window_bounds = array<i64: 1, 5, 256>}, {transform_indices = @transform_6, window_bounds = array<i64: 1, 1, 512>}]} {
    %c0_i32 = arith.constant 0 : i32
    %0 = arith.cmpi eq, %arg1, %c0_i32 : i32
    %1 = arith.extui %0 : i1 to i32
    %c0_i32_0 = arith.constant 0 : i32
    %2 = arith.cmpi ne, %1, %c0_i32_0 : i32
    scf.if %2 {
      %cst_66 = arith.constant 0.000000e+00 : f32
      %129 = vector.broadcast %cst_66 : f32 to vector<5x8x256xf32>
      %c0_67 = arith.constant 0 : index
      %c0_68 = arith.constant 0 : index
      %c0_69 = arith.constant 0 : index
      %130 = vector.load %arg9[%c0_67, %c0_68, %c0_69] : memref<5x8x256xf32, #tpu.memory_space<vmem>>, vector<5x8x256xf32>
      tpu.vector_store %arg9[%c0_67, %c0_68, %c0_69], %129 {strides = array<i32>} : memref<5x8x256xf32, #tpu.memory_space<vmem>>, vector<5x8x256xf32>,
    } else {
    }
    %c0 = arith.constant 0 : index
    %c0_1 = arith.constant 0 : index
    %c0_2 = arith.constant 0 : index
    %3 = vector.load %arg2[%c0, %c0_1, %c0_2] : memref<1x64x32xbf16, #tpu.memory_space<vmem>>, vector<1x64x32xbf16>
    %4 = vector.shape_cast %3 : vector<1x64x32xbf16> to vector<64x32xbf16>
    %c0_3 = arith.constant 0 : index
    %c0_4 = arith.constant 0 : index
    %5 = vector.load %arg3[%c0_3, %c0_4] : memref<32x32xbf16, #tpu.memory_space<vmem>>, vector<32x32xbf16>
    %cst = arith.constant dense<0.000000e+00> : vector<64x32xf32>
    %6 = tpu.matmul %4, %5, %cst {dimension_numbers = #tpu.dot_dimension_numbers<[1], [0], [0], [1], [0, 0, 1, 1], [], []>} : vector<64x32xbf16>, vector<32x32xbf16>, vector<64x32xf32> -> vector<64x32xf32>
    %cst_5 = arith.constant 5.000000e-01 : f32
    %7 = vector.broadcast %cst_5 : f32 to vector<64x32xf32>
    %8 = arith.mulf %6, %7 : vector<64x32xf32>
    %9 = math.tanh %8 : vector<64x32xf32>
    %cst_6 = arith.constant 1.000000e+00 : f32
    %10 = vector.broadcast %cst_6 : f32 to vector<64x32xf32>
    %11 = arith.addf %10, %9 : vector<64x32xf32>
    %cst_7 = arith.constant 5.000000e-01 : f32
    %12 = vector.broadcast %cst_7 : f32 to vector<64x32xf32>
    %13 = arith.mulf %12, %11 : vector<64x32xf32>
    %14 = arith.mulf %6, %13 : vector<64x32xf32>
    %15 = arith.truncf %14 : vector<64x32xf32> to vector<64x32xbf16>
    %c0_i32_8 = arith.constant 0 : i32
    %16 = arith.index_cast %c0_i32_8 : i32 to index
    %c0_9 = arith.constant 0 : index
    %c0_10 = arith.constant 0 : index
    %17 = vector.load %arg4[%16, %c0_9, %c0_10] : memref<5x32x256xbf16, #tpu.memory_space<vmem>>, vector<1x32x256xbf16>
    %18 = vector.shape_cast %17 : vector<1x32x256xbf16> to vector<32x256xbf16>
    %cst_11 = arith.constant dense<0.000000e+00> : vector<64x256xf32>
    %19 = tpu.matmul %15, %18, %cst_11 {dimension_numbers = #tpu.dot_dimension_numbers<[1], [0], [0], [1], [0, 0, 1, 1], [], []>} : vector<64x32xbf16>, vector<32x256xbf16>, vector<64x256xf32> -> vector<64x256xf32>
    %cst_12 = arith.constant 5.000000e-01 : f32
    %20 = vector.broadcast %cst_12 : f32 to vector<64x256xf32>
    %21 = arith.mulf %19, %20 : vector<64x256xf32>
    %22 = math.tanh %21 : vector<64x256xf32>
    %cst_13 = arith.constant 1.000000e+00 : f32
    %23 = vector.broadcast %cst_13 : f32 to vector<64x256xf32>
    %24 = arith.addf %23, %22 : vector<64x256xf32>
    %cst_14 = arith.constant 5.000000e-01 : f32
    %25 = vector.broadcast %cst_14 : f32 to vector<64x256xf32>
    %26 = arith.mulf %25, %24 : vector<64x256xf32>
    %27 = arith.mulf %19, %26 : vector<64x256xf32>
    %28 = vector.shape_cast %27 : vector<64x256xf32> to vector<8x8x256xf32>
    %cst_15 = arith.constant dense<0.000000e+00> : vector<8x256xf32>
    %29 = vector.multi_reduction <add>, %28, %cst_15 [0] : vector<8x8x256xf32> to vector<8x256xf32>
    %30 = arith.index_cast %c0_i32_8 : i32 to index
    %c0_16 = arith.constant 0 : index
    %c0_17 = arith.constant 0 : index
    %31 = vector.load %arg9[%30, %c0_16, %c0_17] : memref<5x8x256xf32, #tpu.memory_space<vmem>>, vector<1x8x256xf32>
    %32 = vector.shape_cast %31 : vector<1x8x256xf32> to vector<8x256xf32>
    %33 = arith.addf %32, %29 : vector<8x256xf32>
    %34 = arith.index_cast %c0_i32_8 : i32 to index
    %c0_18 = arith.constant 0 : index
    %c0_19 = arith.constant 0 : index
    %35 = vector.load %arg9[%34, %c0_18, %c0_19] : memref<5x8x256xf32, #tpu.memory_space<vmem>>, vector<1x8x256xf32>
    %36 = vector.shape_cast %35 : vector<1x8x256xf32> to vector<8x256xf32>
    %37 = vector.shape_cast %33 : vector<8x256xf32> to vector<1x8x256xf32>
    tpu.vector_store %arg9[%34, %c0_18, %c0_19], %37 {strides = array<i32>} : memref<5x8x256xf32, #tpu.memory_space<vmem>>, vector<1x8x256xf32>,
    %c1_i32 = arith.constant 1 : i32
    %38 = arith.index_cast %c1_i32 : i32 to index
    %c0_20 = arith.constant 0 : index
    %c0_21 = arith.constant 0 : index
    %39 = vector.load %arg4[%38, %c0_20, %c0_21] : memref<5x32x256xbf16, #tpu.memory_space<vmem>>, vector<1x32x256xbf16>
    %40 = vector.shape_cast %39 : vector<1x32x256xbf16> to vector<32x256xbf16>
    %cst_22 = arith.constant dense<0.000000e+00> : vector<64x256xf32>
    %41 = tpu.matmul %15, %40, %cst_22 {dimension_numbers = #tpu.dot_dimension_numbers<[1], [0], [0], [1], [0, 0, 1, 1], [], []>} : vector<64x32xbf16>, vector<32x256xbf16>, vector<64x256xf32> -> vector<64x256xf32>
    %cst_23 = arith.constant 5.000000e-01 : f32
    %42 = vector.broadcast %cst_23 : f32 to vector<64x256xf32>
    %43 = arith.mulf %41, %42 : vector<64x256xf32>
    %44 = math.tanh %43 : vector<64x256xf32>
    %cst_24 = arith.constant 1.000000e+00 : f32
    %45 = vector.broadcast %cst_24 : f32 to vector<64x256xf32>
    %46 = arith.addf %45, %44 : vector<64x256xf32>
    %cst_25 = arith.constant 5.000000e-01 : f32
    %47 = vector.broadcast %cst_25 : f32 to vector<64x256xf32>
    %48 = arith.mulf %47, %46 : vector<64x256xf32>
    %49 = arith.mulf %41, %48 : vector<64x256xf32>
    %50 = vector.shape_cast %49 : vector<64x256xf32> to vector<8x8x256xf32>
    %cst_26 = arith.constant dense<0.000000e+00> : vector<8x256xf32>
    %51 = vector.multi_reduction <add>, %50, %cst_26 [0] : vector<8x8x256xf32> to vector<8x256xf32>
    %52 = arith.index_cast %c1_i32 : i32 to index
    %c0_27 = arith.constant 0 : index
    %c0_28 = arith.constant 0 : index
    %53 = vector.load %arg9[%52, %c0_27, %c0_28] : memref<5x8x256xf32, #tpu.memory_space<vmem>>, vector<1x8x256xf32>
    %54 = vector.shape_cast %53 : vector<1x8x256xf32> to vector<8x256xf32>
    %55 = arith.addf %54, %51 : vector<8x256xf32>
    %56 = arith.index_cast %c1_i32 : i32 to index
    %c0_29 = arith.constant 0 : index
    %c0_30 = arith.constant 0 : index
    %57 = vector.load %arg9[%56, %c0_29, %c0_30] : memref<5x8x256xf32, #tpu.memory_space<vmem>>, vector<1x8x256xf32>
    %58 = vector.shape_cast %57 : vector<1x8x256xf32> to vector<8x256xf32>
    %59 = vector.shape_cast %55 : vector<8x256xf32> to vector<1x8x256xf32>
    tpu.vector_store %arg9[%56, %c0_29, %c0_30], %59 {strides = array<i32>} : memref<5x8x256xf32, #tpu.memory_space<vmem>>, vector<1x8x256xf32>,
    %c2_i32 = arith.constant 2 : i32
    %60 = arith.index_cast %c2_i32 : i32 to index
    %c0_31 = arith.constant 0 : index
    %c0_32 = arith.constant 0 : index
    %61 = vector.load %arg4[%60, %c0_31, %c0_32] : memref<5x32x256xbf16, #tpu.memory_space<vmem>>, vector<1x32x256xbf16>
    %62 = vector.shape_cast %61 : vector<1x32x256xbf16> to vector<32x256xbf16>
    %cst_33 = arith.constant dense<0.000000e+00> : vector<64x256xf32>
    %63 = tpu.matmul %15, %62, %cst_33 {dimension_numbers = #tpu.dot_dimension_numbers<[1], [0], [0], [1], [0, 0, 1, 1], [], []>} : vector<64x32xbf16>, vector<32x256xbf16>, vector<64x256xf32> -> vector<64x256xf32>
    %cst_34 = arith.constant 5.000000e-01 : f32
    %64 = vector.broadcast %cst_34 : f32 to vector<64x256xf32>
    %65 = arith.mulf %63, %64 : vector<64x256xf32>
    %66 = math.tanh %65 : vector<64x256xf32>
    %cst_35 = arith.constant 1.000000e+00 : f32
    %67 = vector.broadcast %cst_35 : f32 to vector<64x256xf32>
    %68 = arith.addf %67, %66 : vector<64x256xf32>
    %cst_36 = arith.constant 5.000000e-01 : f32
    %69 = vector.broadcast %cst_36 : f32 to vector<64x256xf32>
    %70 = arith.mulf %69, %68 : vector<64x256xf32>
    %71 = arith.mulf %63, %70 : vector<64x256xf32>
    %72 = vector.shape_cast %71 : vector<64x256xf32> to vector<8x8x256xf32>
    %cst_37 = arith.constant dense<0.000000e+00> : vector<8x256xf32>
    %73 = vector.multi_reduction <add>, %72, %cst_37 [0] : vector<8x8x256xf32> to vector<8x256xf32>
    %74 = arith.index_cast %c2_i32 : i32 to index
    %c0_38 = arith.constant 0 : index
    %c0_39 = arith.constant 0 : index
    %75 = vector.load %arg9[%74, %c0_38, %c0_39] : memref<5x8x256xf32, #tpu.memory_space<vmem>>, vector<1x8x256xf32>
    %76 = vector.shape_cast %75 : vector<1x8x256xf32> to vector<8x256xf32>
    %77 = arith.addf %76, %73 : vector<8x256xf32>
    %78 = arith.index_cast %c2_i32 : i32 to index
    %c0_40 = arith.constant 0 : index
    %c0_41 = arith.constant 0 : index
    %79 = vector.load %arg9[%78, %c0_40, %c0_41] : memref<5x8x256xf32, #tpu.memory_space<vmem>>, vector<1x8x256xf32>
    %80 = vector.shape_cast %79 : vector<1x8x256xf32> to vector<8x256xf32>
    %81 = vector.shape_cast %77 : vector<8x256xf32> to vector<1x8x256xf32>
    tpu.vector_store %arg9[%78, %c0_40, %c0_41], %81 {strides = array<i32>} : memref<5x8x256xf32, #tpu.memory_space<vmem>>, vector<1x8x256xf32>,
    %c3_i32 = arith.constant 3 : i32
    %82 = arith.index_cast %c3_i32 : i32 to index
    %c0_42 = arith.constant 0 : index
    %c0_43 = arith.constant 0 : index
    %83 = vector.load %arg4[%82, %c0_42, %c0_43] : memref<5x32x256xbf16, #tpu.memory_space<vmem>>, vector<1x32x256xbf16>
    %84 = vector.shape_cast %83 : vector<1x32x256xbf16> to vector<32x256xbf16>
    %cst_44 = arith.constant dense<0.000000e+00> : vector<64x256xf32>
    %85 = tpu.matmul %15, %84, %cst_44 {dimension_numbers = #tpu.dot_dimension_numbers<[1], [0], [0], [1], [0, 0, 1, 1], [], []>} : vector<64x32xbf16>, vector<32x256xbf16>, vector<64x256xf32> -> vector<64x256xf32>
    %cst_45 = arith.constant 5.000000e-01 : f32
    %86 = vector.broadcast %cst_45 : f32 to vector<64x256xf32>
    %87 = arith.mulf %85, %86 : vector<64x256xf32>
    %88 = math.tanh %87 : vector<64x256xf32>
    %cst_46 = arith.constant 1.000000e+00 : f32
    %89 = vector.broadcast %cst_46 : f32 to vector<64x256xf32>
    %90 = arith.addf %89, %88 : vector<64x256xf32>
    %cst_47 = arith.constant 5.000000e-01 : f32
    %91 = vector.broadcast %cst_47 : f32 to vector<64x256xf32>
    %92 = arith.mulf %91, %90 : vector<64x256xf32>
    %93 = arith.mulf %85, %92 : vector<64x256xf32>
    %94 = vector.shape_cast %93 : vector<64x256xf32> to vector<8x8x256xf32>
    %cst_48 = arith.constant dense<0.000000e+00> : vector<8x256xf32>
    %95 = vector.multi_reduction <add>, %94, %cst_48 [0] : vector<8x8x256xf32> to vector<8x256xf32>
    %96 = arith.index_cast %c3_i32 : i32 to index
    %c0_49 = arith.constant 0 : index
    %c0_50 = arith.constant 0 : index
    %97 = vector.load %arg9[%96, %c0_49, %c0_50] : memref<5x8x256xf32, #tpu.memory_space<vmem>>, vector<1x8x256xf32>
    %98 = vector.shape_cast %97 : vector<1x8x256xf32> to vector<8x256xf32>
    %99 = arith.addf %98, %95 : vector<8x256xf32>
    %100 = arith.index_cast %c3_i32 : i32 to index
    %c0_51 = arith.constant 0 : index
    %c0_52 = arith.constant 0 : index
    %101 = vector.load %arg9[%100, %c0_51, %c0_52] : memref<5x8x256xf32, #tpu.memory_space<vmem>>, vector<1x8x256xf32>
    %102 = vector.shape_cast %101 : vector<1x8x256xf32> to vector<8x256xf32>
    %103 = vector.shape_cast %99 : vector<8x256xf32> to vector<1x8x256xf32>
    tpu.vector_store %arg9[%100, %c0_51, %c0_52], %103 {strides = array<i32>} : memref<5x8x256xf32, #tpu.memory_space<vmem>>, vector<1x8x256xf32>,
    %c4_i32 = arith.constant 4 : i32
    %104 = arith.index_cast %c4_i32 : i32 to index
    %c0_53 = arith.constant 0 : index
    %c0_54 = arith.constant 0 : index
    %105 = vector.load %arg4[%104, %c0_53, %c0_54] : memref<5x32x256xbf16, #tpu.memory_space<vmem>>, vector<1x32x256xbf16>
    %106 = vector.shape_cast %105 : vector<1x32x256xbf16> to vector<32x256xbf16>
    %cst_55 = arith.constant dense<0.000000e+00> : vector<64x256xf32>
    %107 = tpu.matmul %15, %106, %cst_55 {dimension_numbers = #tpu.dot_dimension_numbers<[1], [0], [0], [1], [0, 0, 1, 1], [], []>} : vector<64x32xbf16>, vector<32x256xbf16>, vector<64x256xf32> -> vector<64x256xf32>
    %cst_56 = arith.constant 5.000000e-01 : f32
    %108 = vector.broadcast %cst_56 : f32 to vector<64x256xf32>
    %109 = arith.mulf %107, %108 : vector<64x256xf32>
    %110 = math.tanh %109 : vector<64x256xf32>
    %cst_57 = arith.constant 1.000000e+00 : f32
    %111 = vector.broadcast %cst_57 : f32 to vector<64x256xf32>
    %112 = arith.addf %111, %110 : vector<64x256xf32>
    %cst_58 = arith.constant 5.000000e-01 : f32
    %113 = vector.broadcast %cst_58 : f32 to vector<64x256xf32>
    %114 = arith.mulf %113, %112 : vector<64x256xf32>
    %115 = arith.mulf %107, %114 : vector<64x256xf32>
    %116 = vector.shape_cast %115 : vector<64x256xf32> to vector<8x8x256xf32>
    %cst_59 = arith.constant dense<0.000000e+00> : vector<8x256xf32>
    %117 = vector.multi_reduction <add>, %116, %cst_59 [0] : vector<8x8x256xf32> to vector<8x256xf32>
    %118 = arith.index_cast %c4_i32 : i32 to index
    %c0_60 = arith.constant 0 : index
    %c0_61 = arith.constant 0 : index
    %119 = vector.load %arg9[%118, %c0_60, %c0_61] : memref<5x8x256xf32, #tpu.memory_space<vmem>>, vector<1x8x256xf32>
    %120 = vector.shape_cast %119 : vector<1x8x256xf32> to vector<8x256xf32>
    %121 = arith.addf %120, %117 : vector<8x256xf32>
    %122 = arith.index_cast %c4_i32 : i32 to index
    %c0_62 = arith.constant 0 : index
    %c0_63 = arith.constant 0 : index
    %123 = vector.load %arg9[%122, %c0_62, %c0_63] : memref<5x8x256xf32, #tpu.memory_space<vmem>>, vector<1x8x256xf32>
    %124 = vector.shape_cast %123 : vector<1x8x256xf32> to vector<8x256xf32>
    %125 = vector.shape_cast %121 : vector<8x256xf32> to vector<1x8x256xf32>
    tpu.vector_store %arg9[%122, %c0_62, %c0_63], %125 {strides = array<i32>} : memref<5x8x256xf32, #tpu.memory_space<vmem>>, vector<1x8x256xf32>,
    %c5_i32 = arith.constant 5 : i32
    %c0_i32_64 = arith.constant 0 : i32
    %126 = arith.cmpi eq, %arg1, %c0_i32_64 : i32
    %127 = arith.extui %126 : i1 to i32
    %c0_i32_65 = arith.constant 0 : i32
    %128 = arith.cmpi ne, %127, %c0_i32_65 : i32
    scf.if %128 {
      %c0_66 = arith.constant 0 : index
      %c0_67 = arith.constant 0 : index
      %c0_68 = arith.constant 0 : index
      %129 = vector.load %arg9[%c0_66, %c0_67, %c0_68] : memref<5x8x256xf32, #tpu.memory_space<vmem>>, vector<5x8x256xf32>
      %cst_69 = arith.constant dense<0.000000e+00> : vector<5x256xf32>
      %130 = vector.multi_reduction <add>, %129, %cst_69 [1] : vector<5x8x256xf32> to vector<5x256xf32>
      %cst_70 = arith.constant 1.562500e-02 : f32
      %131 = vector.broadcast %cst_70 : f32 to vector<5x256xf32>
      %132 = arith.mulf %130, %131 : vector<5x256xf32>
      %c0_71 = arith.constant 0 : index
      %c0_72 = arith.constant 0 : index
      %c0_73 = arith.constant 0 : index
      %133 = vector.load %arg7[%c0_71, %c0_72, %c0_73] : memref<1x5x256xf32, #tpu.memory_space<vmem>>, vector<1x5x256xf32>
      %134 = vector.shape_cast %133 : vector<1x5x256xf32> to vector<5x256xf32>
      %135 = vector.shape_cast %132 : vector<5x256xf32> to vector<1x5x256xf32>
      tpu.vector_store %arg7[%c0_71, %c0_72, %c0_73], %135 {strides = array<i32>} : memref<1x5x256xf32, #tpu.memory_space<vmem>>, vector<1x5x256xf32>,
      %cst_74 = arith.constant 0.000000e+00 : f32
      %136 = vector.broadcast %cst_74 : f32 to vector<8x512xf32>
      %c0_i32_75 = arith.constant 0 : i32
      %137 = arith.index_cast %c0_i32_75 : i32 to index
      %c0_76 = arith.constant 0 : index
      %c0_77 = arith.constant 0 : index
      %138 = vector.load %arg9[%137, %c0_76, %c0_77] : memref<5x8x256xf32, #tpu.memory_space<vmem>>, vector<1x8x256xf32>
      %139 = vector.shape_cast %138 : vector<1x8x256xf32> to vector<8x256xf32>
      %140 = arith.truncf %139 : vector<8x256xf32> to vector<8x256xbf16>
      %141 = arith.index_cast %c0_i32_75 : i32 to index
      %c0_78 = arith.constant 0 : index
      %c0_79 = arith.constant 0 : index
      %142 = vector.load %arg5[%141, %c0_78, %c0_79] : memref<5x256x512xbf16, #tpu.memory_space<vmem>>, vector<1x256x512xbf16>
      %143 = vector.shape_cast %142 : vector<1x256x512xbf16> to vector<256x512xbf16>
      %cst_80 = arith.constant dense<0.000000e+00> : vector<8x512xf32>
      %144 = tpu.matmul %140, %143, %cst_80 {dimension_numbers = #tpu.dot_dimension_numbers<[1], [0], [0], [1], [0, 0, 1, 1], [], []>} : vector<8x256xbf16>, vector<256x512xbf16>, vector<8x512xf32> -> vector<8x512xf32>
      %145 = arith.addf %136, %144 : vector<8x512xf32>
      %c1_i32_81 = arith.constant 1 : i32
      %146 = arith.index_cast %c1_i32_81 : i32 to index
      %c0_82 = arith.constant 0 : index
      %c0_83 = arith.constant 0 : index
      %147 = vector.load %arg9[%146, %c0_82, %c0_83] : memref<5x8x256xf32, #tpu.memory_space<vmem>>, vector<1x8x256xf32>
      %148 = vector.shape_cast %147 : vector<1x8x256xf32> to vector<8x256xf32>
      %149 = arith.truncf %148 : vector<8x256xf32> to vector<8x256xbf16>
      %150 = arith.index_cast %c1_i32_81 : i32 to index
      %c0_84 = arith.constant 0 : index
      %c0_85 = arith.constant 0 : index
      %151 = vector.load %arg5[%150, %c0_84, %c0_85] : memref<5x256x512xbf16, #tpu.memory_space<vmem>>, vector<1x256x512xbf16>
      %152 = vector.shape_cast %151 : vector<1x256x512xbf16> to vector<256x512xbf16>
      %cst_86 = arith.constant dense<0.000000e+00> : vector<8x512xf32>
      %153 = tpu.matmul %149, %152, %cst_86 {dimension_numbers = #tpu.dot_dimension_numbers<[1], [0], [0], [1], [0, 0, 1, 1], [], []>} : vector<8x256xbf16>, vector<256x512xbf16>, vector<8x512xf32> -> vector<8x512xf32>
      %154 = arith.addf %145, %153 : vector<8x512xf32>
      %c2_i32_87 = arith.constant 2 : i32
      %155 = arith.index_cast %c2_i32_87 : i32 to index
      %c0_88 = arith.constant 0 : index
      %c0_89 = arith.constant 0 : index
      %156 = vector.load %arg9[%155, %c0_88, %c0_89] : memref<5x8x256xf32, #tpu.memory_space<vmem>>, vector<1x8x256xf32>
      %157 = vector.shape_cast %156 : vector<1x8x256xf32> to vector<8x256xf32>
      %158 = arith.truncf %157 : vector<8x256xf32> to vector<8x256xbf16>
      %159 = arith.index_cast %c2_i32_87 : i32 to index
      %c0_90 = arith.constant 0 : index
      %c0_91 = arith.constant 0 : index
      %160 = vector.load %arg5[%159, %c0_90, %c0_91] : memref<5x256x512xbf16, #tpu.memory_space<vmem>>, vector<1x256x512xbf16>
      %161 = vector.shape_cast %160 : vector<1x256x512xbf16> to vector<256x512xbf16>
      %cst_92 = arith.constant dense<0.000000e+00> : vector<8x512xf32>
      %162 = tpu.matmul %158, %161, %cst_92 {dimension_numbers = #tpu.dot_dimension_numbers<[1], [0], [0], [1], [0, 0, 1, 1], [], []>} : vector<8x256xbf16>, vector<256x512xbf16>, vector<8x512xf32> -> vector<8x512xf32>
      %163 = arith.addf %154, %162 : vector<8x512xf32>
      %c3_i32_93 = arith.constant 3 : i32
      %164 = arith.index_cast %c3_i32_93 : i32 to index
      %c0_94 = arith.constant 0 : index
      %c0_95 = arith.constant 0 : index
      %165 = vector.load %arg9[%164, %c0_94, %c0_95] : memref<5x8x256xf32, #tpu.memory_space<vmem>>, vector<1x8x256xf32>
      %166 = vector.shape_cast %165 : vector<1x8x256xf32> to vector<8x256xf32>
      %167 = arith.truncf %166 : vector<8x256xf32> to vector<8x256xbf16>
      %168 = arith.index_cast %c3_i32_93 : i32 to index
      %c0_96 = arith.constant 0 : index
      %c0_97 = arith.constant 0 : index
      %169 = vector.load %arg5[%168, %c0_96, %c0_97] : memref<5x256x512xbf16, #tpu.memory_space<vmem>>, vector<1x256x512xbf16>
      %170 = vector.shape_cast %169 : vector<1x256x512xbf16> to vector<256x512xbf16>
      %cst_98 = arith.constant dense<0.000000e+00> : vector<8x512xf32>
      %171 = tpu.matmul %167, %170, %cst_98 {dimension_numbers = #tpu.dot_dimension_numbers<[1], [0], [0], [1], [0, 0, 1, 1], [], []>} : vector<8x256xbf16>, vector<256x512xbf16>, vector<8x512xf32> -> vector<8x512xf32>
      %172 = arith.addf %163, %171 : vector<8x512xf32>
      %c4_i32_99 = arith.constant 4 : i32
      %173 = arith.index_cast %c4_i32_99 : i32 to index
      %c0_100 = arith.constant 0 : index
      %c0_101 = arith.constant 0 : index
      %174 = vector.load %arg9[%173, %c0_100, %c0_101] : memref<5x8x256xf32, #tpu.memory_space<vmem>>, vector<1x8x256xf32>
      %175 = vector.shape_cast %174 : vector<1x8x256xf32> to vector<8x256xf32>
      %176 = arith.truncf %175 : vector<8x256xf32> to vector<8x256xbf16>
      %177 = arith.index_cast %c4_i32_99 : i32 to index
      %c0_102 = arith.constant 0 : index
      %c0_103 = arith.constant 0 : index
      %178 = vector.load %arg5[%177, %c0_102, %c0_103] : memref<5x256x512xbf16, #tpu.memory_space<vmem>>, vector<1x256x512xbf16>
      %179 = vector.shape_cast %178 : vector<1x256x512xbf16> to vector<256x512xbf16>
      %cst_104 = arith.constant dense<0.000000e+00> : vector<8x512xf32>
      %180 = tpu.matmul %176, %179, %cst_104 {dimension_numbers = #tpu.dot_dimension_numbers<[1], [0], [0], [1], [0, 0, 1, 1], [], []>} : vector<8x256xbf16>, vector<256x512xbf16>, vector<8x512xf32> -> vector<8x512xf32>
      %181 = arith.addf %172, %180 : vector<8x512xf32>
      %c5_i32_105 = arith.constant 5 : i32
      %cst_106 = arith.constant dense<0.000000e+00> : vector<512xf32>
      %182 = vector.multi_reduction <add>, %181, %cst_106 [0] : vector<8x512xf32> to vector<512xf32>
      %183 = vector.shape_cast %182 : vector<512xf32> to vector<1x512xf32>
      %cst_107 = arith.constant 1.562500e-02 : f32
      %184 = vector.broadcast %cst_107 : f32 to vector<1x512xf32>
      %185 = arith.mulf %183, %184 : vector<1x512xf32>
      %c0_108 = arith.constant 0 : index
      %c0_109 = arith.constant 0 : index
      %186 = vector.load %arg6[%c0_108, %c0_109] : memref<1x512xf32, #tpu.memory_space<vmem>>, vector<1x512xf32>
      %187 = arith.addf %185, %186 : vector<1x512xf32>
      %c0_110 = arith.constant 0 : index
      %c0_111 = arith.constant 0 : index
      %c0_112 = arith.constant 0 : index
      %188 = vector.load %arg8[%c0_110, %c0_111, %c0_112] : memref<1x1x512xf32, #tpu.memory_space<vmem>>, vector<1x1x512xf32>
      %189 = vector.shape_cast %188 : vector<1x1x512xf32> to vector<1x512xf32>
      %190 = vector.shape_cast %187 : vector<1x512xf32> to vector<1x1x512xf32>
      tpu.vector_store %arg8[%c0_110, %c0_111, %c0_112], %190 {strides = array<i32>} : memref<1x1x512xf32, #tpu.memory_space<vmem>>, vector<1x1x512xf32>,
    } else {
    }
    return
  }
  func.func @transform_0(%arg0: i32, %arg1: i32) -> (i32, i32, i32) {
    %c0_i32 = arith.constant 0 : i32
    %c0_i32_0 = arith.constant 0 : i32
    return %arg0, %arg1, %c0_i32 : i32, i32, i32
  }
  func.func @transform_1(%arg0: i32, %arg1: i32) -> (i32, i32) {
    %c0_i32 = arith.constant 0 : i32
    %c0_i32_0 = arith.constant 0 : i32
    %c0_i32_1 = arith.constant 0 : i32
    return %c0_i32, %c0_i32_0 : i32, i32
  }
  func.func @transform_2(%arg0: i32, %arg1: i32) -> (i32, i32, i32) {
    %c0_i32 = arith.constant 0 : i32
    %c0_i32_0 = arith.constant 0 : i32
    %c0_i32_1 = arith.constant 0 : i32
    %c0_i32_2 = arith.constant 0 : i32
    return %c0_i32, %c0_i32_0, %c0_i32_1 : i32, i32, i32
  }
  func.func @transform_3(%arg0: i32, %arg1: i32) -> (i32, i32, i32) {
    %c0_i32 = arith.constant 0 : i32
    %c0_i32_0 = arith.constant 0 : i32
    %c0_i32_1 = arith.constant 0 : i32
    %c0_i32_2 = arith.constant 0 : i32
    return %c0_i32, %c0_i32_0, %c0_i32_1 : i32, i32, i32
  }
  func.func @transform_4(%arg0: i32, %arg1: i32) -> (i32, i32) {
    %c0_i32 = arith.constant 0 : i32
    %c0_i32_0 = arith.constant 0 : i32
    %c0_i32_1 = arith.constant 0 : i32
    return %c0_i32, %c0_i32_0 : i32, i32
  }
  func.func @transform_5(%arg0: i32, %arg1: i32) -> (i32, i32, i32) {
    %c0_i32 = arith.constant 0 : i32
    %c0_i32_0 = arith.constant 0 : i32
    %c0_i32_1 = arith.constant 0 : i32
    return %arg0, %c0_i32, %c0_i32_0 : i32, i32, i32
  }
  func.func @transform_6(%arg0: i32, %arg1: i32) -> (i32, i32, i32) {
    %c0_i32 = arith.constant 0 : i32
    %c0_i32_0 = arith.constant 0 : i32
    %c0_i32_1 = arith.constant 0 : i32
    return %arg0, %c0_i32, %c0_i32_0 : i32, i32, i32
  }
}

</mosaic_0001>

<bundles_post_ra>
// kernel: tpu_custom_call.1
= control target key start
LH: loop header
LB: loop body
LE: loop exit
PB: predicated region body
PF: predicated region fallthrough
CT: control target
= control target key end

     0   :  { %s6536_s0 = inlined_call_operand.vmem [shape: bf16[2,64,32], index: 0, kind: input, shape index: {}]   ;;  %s6537_s1 = inlined_call_operand.hbm [shape: bf16[32,32], index: 1, kind: input, shape index: {}]   ;;  %s6538_s2 = inlined_call_operand.hbm [shape: bf16[5,32,256], index: 2, kind: input, shape index: {}]   ;;  %s6539_s3 = inlined_call_operand.hbm [shape: bf16[5,256,512], index: 3, kind: input, shape index: {}]   ;;  %s6540_s4 = inlined_call_operand.hbm [shape: f32[1,512], index: 4, kind: input, shape index: {}]   ;;  %s6541_s5 = inlined_call_operand.vmem [shape: f32[2,5,256], index: 5, kind: output, shape index: {0}]   ;;  %s6542_s6 = inlined_call_operand.hbm [shape: f32[2,1,512], index: 6, kind: output, shape index: {1}]  }
   0x1   :  { %6568 = sst [smem:[#allocation35_spill]] %s6538_s2 }
   0x2   :  { %12 = vsyncpa [#allocation4], 0 }
   0x3   :  { %13 = vsyncpa [#allocation7], 0 }
   0x4   :  { %14 = vsyncpa [#allocation10], 0 }
   0x5   :  { %15 = vsyncpa [#allocation5], 0 }
   0x6   :  { %17 = vsyncpa [#allocation5 + $0x1], 0  ;;  %s5757_s21 = smov 0   ;;  %s5759_s22 = smov 0  }
   0x7   :  { %s5761_s23 = smov 0   ;;  %s5763_s24 = smov 0  }
   0x8   :  { %s5765_s25 = smov 0   ;;  %s5767_s26 = smov 0  }
   0x9 LB: > { %6569 = sst [smem:[#allocation16_spill]] %s5703_s25  ;;  %s4259_s27 = sadd.s32 4294967295, %s5707_s26   ;;  %s5707_s26 = sphi %s5767_s26, %s23_s26   ;;  %s5703_s25 = sphi %s5765_s25, %s6623_s25   ;;  %s5699_s24 = sphi %s5763_s24, %s6622_s24   ;;  %s5695_s23 = sphi %s5761_s23, %s6626_s23   ;;  %s5691_s22 = sphi %s5759_s22, %s6625_s22   ;;  %s5687_s21 = sphi %s5757_s21, %s6624_s21  }
   0xa   : > { %s4260_s28 = sadd.s32 4294967294, %s5707_s26   ;;  %s35_s29 = sadd.s32 1, %s5703_s25 }
   0xb   : > { %s180_s30 = sadd.s32 1, %s5695_s23  ;;  %p37_p0 = scmp.ge.s32.totalorder %s35_s29, 2 }
   0xc   : > { %p190_p1 = scmp.ne.s32.totalorder %s5695_s23, %s5691_s22  ;;  %p191_p2 = scmp.eq.s32.totalorder %s4259_s27, 1 }
   0xd   : > { %p196_p3 = scmp.ne.s32.totalorder %s5691_s22, %s5687_s21  ;;  %s6628_s29 = smov (%p37_p0, %s35_s29), 0 }
   0xe   : > { %6570 = sst [smem:[#allocation17_spill]] %s6628_s29  ;;  %p5797_p4 = por %p191_p2, %p190_p1 }
   0xf   : > { %p197_p5 = scmp.eq.s32.totalorder %s4260_s28, 1  ;;  %s177_s8 = ssub.s32 %s5703_s25, %s6628_s29 }
  0x10   : > { %s6571_s7 = scalar_select %p5797_p4, 1, 0 }
  0x11   : > { %p4261_p6 = scmp.ge.s32.totalorder %s5707_s26, 1  ;;  %p178_p7 = scmp.eq.s32.totalorder %s177_s8, 0 }
  0x12   : > { %p5804_p8 = por %p197_p5, %p196_p3  ;;  %p204_p9 = scmp.lt.s32.totalorder %s5707_s26, 3 }
  0x13   : > { %s5810_s10 = scalar_select %p178_p7, %s5695_s23, %s180_s30  }
  0x14   : > { %s6572_s9 = scalar_select %p5804_p8, 1, 0 }
  0x15   : > { %6573 = sst [smem:[#allocation18_spill]] %s5810_s10  ;;  %p5812_p10 = pnand %p4261_p6, %p204_p9 }
  0x16   : > { %p5816_p11 = scmp.eq.s32.totalorder %s4259_s27, 0  ;;  %s5709_s13 = smov [#allocation6]  }
  0x17   : > { %s6574_s11 = scalar_select %p5812_p10, 1, 0 }
  0x18   : > { %s6575_s12 = scalar_select %p5816_p11, 1, 0 }
  0x19   : > { %p4727_p12 = pneg %p5812_p10  ;;  %s229_s14 = sshll.u32 %s5709_s13, 4  ;;  %s230_s14 = int_to_ptr.vmem [resolvable:$true] %s229_s14 }
  0x1a   : > { %s5710_s16 = smov [#allocation3]   ;;  %s6577_s2 = sld [smem:[#allocation35_spill]] }
  0x1b   : > { %p5824_p13 = pnand %p5816_p11, %p4727_p12  ;;  %s216_s17 = sshll.u32 %s5710_s16, 4  ;;  %s217_s17 = int_to_ptr.vmem [resolvable:$true] %s216_s17 }
  0x1d   : > { %p5836_p1 = pneg %p5824_p13 }
  0x20   : > { %s5505_s20 = scalar_lea.hbm %s6577_s2, 2560 }
  0x21   : > { %p5506_p0 = scmp.ne.s32.totalorder %s6577_s2, %s5505_s20  ;;  %p5512_p5 = scmp.lt.u32.totalorder %s5505_s20, %s6577_s2 }
  0x23   : > { %p5508_p2 = pnand %p5836_p1, %p5506_p0 }
  0x25   : > { %p5509_p3 = pneg %p5508_p2 }
  0x27   : > { %p5514_p6 = pnand %p5512_p5, %p5509_p3 }
  0x29   : > { %5517 = shalt.err (!%p5514_p6)
}
  0x2a   : > { %s5518_s16 = scalar_lea.vmem %s230_s14, 2560  ;;  %p5526_p8 = scmp.lt.s32.totalorder %s230_s14, %s230_s14 }
  0x2b   : > { %p5519_p7 = scmp.ne.s32.totalorder %s230_s14, %s5518_s16  ;;  %p5527_p4 = scmp.lt.s32.totalorder %s5518_s16, %s5518_s16 }
  0x2d   : > { %p5521_p9 = pnand %p5519_p7, %p5836_p1  ;;  %p5528_p11 = por %p5527_p4, %p5526_p8 }
  0x2f   : > { %p5522_p12 = pneg %p5521_p9 }
  0x31   : > { %p5529_p10 = pnand %p5528_p11, %p5522_p12 }
  0x33   : > { %5532 = shalt.err (!%p5529_p10)
}
  0x34   : > { %s5711_s18 = smov 128   ;;  %s5712_s19 = smov 8  }
  0x35   : > { %4733 = dma.hbm_to_vmem [thread:$0]  (!%p5824_p13), %s6577_s2, 2560, %s230_s14, [#allocation7], %s5711_s18, %s5711_s18, %s5712_s19  }
  0x36   : > { %s5533_s13 = scalar_lea.hbm %s6537_s1, 256 }
  0x37   : > { %p5534_p4 = scmp.ne.s32.totalorder %s6537_s1, %s5533_s13  ;;  %p5540_p11 = scmp.lt.u32.totalorder %s5533_s13, %s6537_s1 }
  0x39   : > { %p5536_p8 = pnand %p5534_p4, %p5836_p1 }
  0x3b   : > { %p5537_p10 = pneg %p5536_p8 }
  0x3d   : > { %p5542_p0 = pnand %p5540_p11, %p5537_p10 }
  0x3f   : > { %5545 = shalt.err (!%p5542_p0)
}
  0x40   : > { %s5546_s27 = scalar_lea.vmem %s217_s17, 256  ;;  %p5554_p6 = scmp.lt.s32.totalorder %s217_s17, %s217_s17 }
  0x41   : > { %p5547_p2 = scmp.ne.s32.totalorder %s217_s17, %s5546_s27  ;;  %p5555_p7 = scmp.lt.s32.totalorder %s5546_s27, %s5546_s27 }
  0x43   : > { %p5549_p3 = pnand %p5547_p2, %p5836_p1  ;;  %p5556_p9 = por %p5555_p7, %p5554_p6 }
  0x45   : > { %p5550_p5 = pneg %p5549_p3 }
  0x47   : > { %p5557_p12 = pnand %p5556_p9, %p5550_p5 }
  0x49   : > { %5560 = shalt.err (!%p5557_p12)
}
  0x4a   : > { %s5713_s25 = smov 64   ;;  %s5714_s29 = smov 4  }
  0x4b   : > { %4730 = dma.hbm_to_vmem [thread:$0]  (!%p5824_p13), %s6537_s1, 256, %s217_s17, [#allocation4], %s5713_s25, %s5713_s25, %s5714_s29  }
  0x4c   : > { %s5715_s18 = smov [#allocation8]   ;;  %s5561_s8 = scalar_lea.hbm %s6539_s3, 40960 }
  0x4d   : > { %s242_s19 = sshll.u32 %s5715_s18, 4  ;;  %p5562_p4 = scmp.ne.s32.totalorder %s6539_s3, %s5561_s8  ;;  %s243_s19 = int_to_ptr.vmem [resolvable:$true] %s242_s19 }
  0x4e   : > { %p5568_p11 = scmp.lt.u32.totalorder %s5561_s8, %s6539_s3 }
  0x4f   : > { %p5564_p8 = pnand %p5562_p4, %p5836_p1 }
  0x51   : > { %p5565_p10 = pneg %p5564_p8 }
  0x53   : > { %p5570_p0 = pnand %p5568_p11, %p5565_p10 }
  0x55   : > { %5573 = shalt.err (!%p5570_p0)
}
  0x56   : > { %s5574_s17 = scalar_lea.vmem %s243_s19, 40960  ;;  %p5582_p6 = scmp.lt.s32.totalorder %s243_s19, %s243_s19 }
  0x57   : > { %p5575_p2 = scmp.ne.s32.totalorder %s243_s19, %s5574_s17  ;;  %p5583_p7 = scmp.lt.s32.totalorder %s5574_s17, %s5574_s17 }
  0x59   : > { %p5577_p3 = pnand %p5575_p2, %p5836_p1  ;;  %p5584_p9 = por %p5583_p7, %p5582_p6 }
  0x5b   : > { %p5578_p5 = pneg %p5577_p3 }
  0x5d   : > { %p5585_p12 = pnand %p5584_p9, %p5578_p5 }
  0x5f   : > { %5588 = shalt.err (!%p5585_p12)
}
  0x60   : > { %s5716_s25 = smov 256   ;;  %s5717_s29 = smov 16  }
  0x61   : > { %4736 = dma.hbm_to_vmem [thread:$0]  (!%p5824_p13), %s6539_s3, 40960, %s243_s19, [#allocation7], %s5716_s25, %s5716_s25, %s5717_s29  }
  0x62   : > { %s5718_s14 = smov [#allocation9]   ;;  %s5589_s8 = scalar_lea.hbm %s6540_s4, 64 }
  0x63   : > { %s256_s18 = sshll.u32 %s5718_s14, 4  ;;  %p5590_p4 = scmp.ne.s32.totalorder %s6540_s4, %s5589_s8  ;;  %s257_s18 = int_to_ptr.vmem [resolvable:$true] %s256_s18 }
  0x64   : > { %p5596_p11 = scmp.lt.u32.totalorder %s5589_s8, %s6540_s4 }
  0x65   : > { %p5592_p8 = pnand %p5590_p4, %p5836_p1 }
  0x67   : > { %p5593_p10 = pneg %p5592_p8 }
  0x69   : > { %p5598_p0 = pnand %p5596_p11, %p5593_p10 }
  0x6b   : > { %5601 = shalt.err (!%p5598_p0)
}
  0x6c   : > { %s5602_s19 = scalar_lea.vmem %s257_s18, 64  ;;  %p5610_p6 = scmp.lt.s32.totalorder %s257_s18, %s257_s18 }
  0x6d   : > { %p5603_p2 = scmp.ne.s32.totalorder %s257_s18, %s5602_s19  ;;  %p5611_p7 = scmp.lt.s32.totalorder %s5602_s19, %s5602_s19 }
  0x6f   : > { %p5605_p3 = pnand %p5603_p2, %p5836_p1  ;;  %p5612_p9 = por %p5611_p7, %p5610_p6 }
  0x71   : > { %p5606_p5 = pneg %p5605_p3 }
  0x73   : > { %p5613_p12 = pnand %p5612_p9, %p5606_p5 }
  0x75   : > { %5616 = shalt.err (!%p5613_p12)
}
  0x76   : > { %4739 = dma.hbm_to_vmem [thread:$0]  (!%p5824_p13), %s6540_s4, 64, %s257_s18, [#allocation10]  }
  0x77   : > { %p6579_p4 = scmp.ne.s32.totalorder %s6574_s11, 0 }
  0x79   : > { %282 = sbr.rel (%p6579_p4) target bundleno = 1198 (0x4ae), region = 40 }
  0x80   : > { %p6580_p8 = scmp.ne.s32.totalorder %s6575_s12, 0 }
  0x82   : > { %5670 = dma.done.wait (%p6580_p8), [#allocation4], 256  }
  0x83   : > { %5672 = vsyncadd (%p6580_p8), [#allocation4], 4294967040 }
  0x84   : > { %5674 = dma.done.wait (%p6580_p8), [#allocation7], 43520  }
  0x85   : > { %5676 = vsyncadd (%p6580_p8), [#allocation7], 4294923776 }
  0x86   : > { %5678 = dma.done.wait (%p6580_p8), [#allocation10], 64  }
  0x87   : > { %5680 = vsyncadd (%p6580_p8), [#allocation10], 4294967232  ;;  %p334_p13 = scmp.lt.s32.totalorder %s5699_s24, 1  ;;  %v4813_v0 = vld [vmem:[#allocation3] sm:$0xff]   ;;  %v4814_v1 = vld [vmem:[#allocation3 + $0x8] sm:$0xff]   ;;  %vm407_vm0 = vcmask 261120  }
  0x88   : > { %4661 = vmatprep.subr.bf16.mxu0 %v4813_v0  ;;  %v4821_v6 = vld [vmem:[#allocation6 + $0x4] ss:$8 sps:$4 sm:$0xff]   ;;  %v4819_v7 = vld [vmem:[#allocation6] ss:$8 sps:$4 sm:$0xff]   ;;  %v4824_v8 = vld [vmem:[#allocation6 + $0x14] ss:$8 sps:$4 sm:$0xff]  }
  0x89   : > { %s5922_s11 = scalar_select %p334_p13, %s5699_s24, 1  ;;  %4662 = vmatpush3.bf16.msra.mxu0 %v4813_v0  ;;  %4673 = vmatprep.subr.bf16.mxu1 %v4821_v6  ;;  %v4822_v9 = vld [vmem:[#allocation6 + $0x10] ss:$8 sps:$4 sm:$0xff]   ;;  %v5719_v10 = vmov 0   ;;  %v4827_v11 = vld [vmem:[#allocation6 + $0x24] ss:$8 sps:$4 sm:$0xff]  }
  0x8a   : > { %4663 = vmatprep.subr.bf16.mxu0 %v4814_v1  ;;  %4675 = vmatpush1.bf16.msra.mxu1 %v4819_v7  ;;  %v4833_v12 = vld [vmem:[#allocation6 + $0x44] ss:$8 sps:$4 sm:$0xff]   ;;  %v4825_v49 = vld [vmem:[#allocation6 + $0x20] ss:$8 sps:$4 sm:$0xff]   ;;  %v4830_v53 = vld [vmem:[#allocation6 + $0x34] ss:$8 sps:$4 sm:$0xff]  }
  0x8b   : > { %s4652_s15 = sshll.u32 %s5922_s11, 5  ;;  %4674 = vmatprep.subr.bf16.mxu1 %v4824_v8  ;;  %607 = vmatprep.mubr.bf16.mxu1 %v5719_v10  ;;  %v4831_v54 = vld [vmem:[#allocation6 + $0x40] ss:$8 sps:$4 sm:$0xff]   ;;  %v4836_v58 = vld [vmem:[#allocation6 + $0x54] ss:$8 sps:$4 sm:$0xff]   ;;  %vm1627_vm1 = vcmask 1041409  }
  0x8c   : > { %s341_s10 = scalar_lea.vmem %s6536_s0, %s4652_s15  ;;  %v4828_v62 = vld [vmem:[#allocation6 + $0x30] ss:$8 sps:$4 sm:$0xff]   ;;  %vm1629_vm2 = vcmask 1042434   ;;  %vm1631_vm3 = vcmask 1043459   ;;  %s4653_s12 = sshll.u32 %s5922_s11, 4  ;;  %vm1633_vm4 = vcmask 1044484  }
  0x8d   : > { %v4815_v2 = vld [vmem:[%s341_s10] sm:$0xff]   ;;  %v4816_v3 = vld [vmem:[%s341_s10 + $0x8] sm:$0xff]   ;;  %v4817_v4 = vld [vmem:[%s341_s10 + $0x10] sm:$0xff]   ;;  %4664 = vmatpush3.bf16.msra.mxu0 %v4814_v1  ;;  %s347_s20 = scalar_lea.vmem %s6541_s5, %s4653_s12  ;;  %s330_s28 = sand.u32 1, %s5691_s22  }
  0x8e   : > { %4665 = vmatprep.mubr.msk.bf16.mxu0 %vm407_vm0, %v4815_v2  ;;  %v4818_v5 = vld [vmem:[%s341_s10 + $0x18] sm:$0xff]   ;;  %565 = vmatprep.subr.bf16.mxu0 %v4821_v6  ;;  %v4834_v0 = vld [vmem:[#allocation6 + $0x50] ss:$8 sps:$4 sm:$0xff]   ;;  %s4272_s8 = sshll.u32 %s330_s28, 2  ;;  %s4654_s13 = sshll.u32 %s5699_s24, 6 }
  0x8f   : > { %4676 = vmatpush1.bf16.msra.mxu1 %v4822_v9  ;;  %v4839_v1 = vld [vmem:[#allocation6 + $0x64] ss:$8 sps:$4 sm:$0xff]   ;;  %s332_s16 = scalar_lea.vmem [#allocation11], %s4272_s8  ;;  %s6489_s25 = scalar_lea.hbm %s6542_s6, %s4654_s13 }
  0x90   : > { %4666 = vmatmul.mubr.msk.bf16.vlgmr.msra.gmra.mrb[0].mxu0 %vm407_vm0, %v4816_v3  ;;  %962 = vmatprep.subr.bf16.mxu1 %v4833_v12  ;;  %v4840_v12 = vld [vmem:[#allocation6 + $0x70] ss:$8 sps:$4 sm:$0xff]   ;;  %s4120_s27 = sshll.u32 %s332_s16, 4  ;;  %s4103_s29 = scalar_lea.sflag [#allocation5], %s330_s28  ;;  %s6491_s27 = int_to_ptr.vmem [resolvable:$true] %s4120_s27 }
  0x91   : > { %4669 = vmatprep.mubr.msk.bf16.mxu0 %vm407_vm0, %v4817_v4  ;;  %566 = vmatpush1.bf16.msra.mxu0 %v4819_v7  ;;  %v4845_v4 = vld [vmem:[#allocation6 + $0x84] ss:$8 sps:$4 sm:$0xff]   ;;  %s5617_s11 = scalar_lea.vmem %s6491_s27, 64  ;;  %p6619_p10 = scmp.ne.s32.totalorder %s6571_s7, 0 }
  0x92   : > { %567 = vmatprep.subr.bf16.mxu0 %v4824_v8  ;;  %p5618_p1 = scmp.ne.s32.totalorder %s6491_s27, %s5617_s11  ;;  %s5721_s24 = smov [#allocation11]  }
  0x93   : > { %s5621_s15 = sshll.u32 %s5721_s24, 4  ;;  %s5622_s15 = int_to_ptr.vmem [resolvable:$false] %s5621_s15 }
  0x94   : > { %p5619_p11 = pnand %p5618_p1, %p6619_p10  ;;  %s5623_s30 = scalar_lea.vmem %s5622_s15, 128 }
  0x95   : > { %568 = vmatpush1.bf16.msra.mxu0 %v4822_v9  ;;  %v4837_v9 = vld [vmem:[#allocation6 + $0x60] ss:$8 sps:$4 sm:$0xff]   ;;  %p5624_p2 = scmp.lt.s32.totalorder %s6491_s27, %s5622_s15  ;;  %p5625_p3 = scmp.lt.s32.totalorder %s5623_s30, %s5617_s11 }
  0x96   : > { %763 = vmatprep.subr.bf16.mxu0 %v4827_v11  ;;  %v4842_v11 = vld [vmem:[#allocation6 + $0x74] ss:$8 sps:$4 sm:$0xff]   ;;  %p5620_p0 = pneg %p5619_p11 }
  0x97   : > { %p5626_p5 = por %p5625_p3, %p5624_p2 }
  0x98   : > { %4670 = vmatmul.mubr.msk.bf16.gmra.mrb[4].mxu0 %vm407_vm0, %v4818_v5 }
  0x99   : > { %597 = vmatprep.mubr.bf16.mxu0 %v5719_v10  ;;  %p5627_p6 = pnand %p5626_p5, %p5620_p0 }
 0x163   : > { %v4667_v13 = vpop.f32.mrb[0].mxu0 }
 0x164   : > { %v487_v14 = vmul.f32 0.5, %v4667_v13  ;;  %v454_v15 = vpop.f32.mrb[1].mxu0 }
 0x165   : > { %v485_v16 = vmul.f32 0.5, %v454_v15  ;;  %v4668_v17 = vpop.f32.mrb[2].mxu0 }
 0x166   : > { %5329 = vtanh.f32 %v487_v14  ;;  %v488_v18 = vmul.f32 0.5, %v4668_v17  ;;  %v457_v19 = vpop.f32.mrb[3].mxu0  ;;  %v4843_v14 = vld [vmem:[#allocation6 + $0x80] ss:$8 sps:$4 sm:$0xff]  }
 0x167   : > { %5331 = vtanh.f32 %v485_v16  ;;  %v486_v20 = vmul.f32 0.5, %v457_v19  ;;  %v4846_v16 = vld [vmem:[#allocation6 + $0x90] ss:$8 sps:$4 sm:$0xff]  }
 0x168   : > { %5333 = vtanh.f32 %v488_v18  ;;  %v4849_v18 = vld [vmem:[#allocation8 + $0x200] ss:$16 sps:$4 sm:$0xff]  }
 0x169   : > { %5335 = vtanh.f32 %v486_v20  ;;  %v4857_v20 = vld [vmem:[#allocation8 + $0x224] ss:$16 sps:$4 sm:$0xff]  }
 0x16b   : > { %v4671_v21 = vpop.f32.mrb[4].mxu0 }
 0x16c   : > { %v491_v22 = vmul.f32 0.5, %v4671_v21  ;;  %v470_v23 = vpop.f32.mrb[5].mxu0 }
 0x16d   : > { %v489_v24 = vmul.f32 0.5, %v470_v23  ;;  %v4672_v25 = vpop.f32.mrb[6].mxu0 }
 0x16e   : > { %5337 = vtanh.f32 %v491_v22  ;;  %v492_v26 = vmul.f32 0.5, %v4672_v25  ;;  %v473_v27 = vpop.f32.mrb[7].mxu0  ;;  %v4855_v22 = vld [vmem:[#allocation8 + $0x220] ss:$16 sps:$4 sm:$0xff]  }
 0x16f   : > { %5339 = vtanh.f32 %v489_v24  ;;  %v490_v28 = vmul.f32 0.5, %v473_v27  ;;  %v4863_v24 = vld [vmem:[#allocation8 + $0x244] ss:$16 sps:$4 sm:$0xff]  }
 0x170   : > { %v5330_v29 = vpop.eup %5329  ;;  %5341 = vtanh.f32 %v492_v26  ;;  %v4861_v26 = vld [vmem:[#allocation8 + $0x240] ss:$16 sps:$4 sm:$0xff]  }
 0x171   : > { %v5332_v30 = vpop.eup %5331  ;;  %v503_v31 = vadd.f32 1.0, %v5330_v29  ;;  %5343 = vtanh.f32 %v490_v28  ;;  %v4869_v28 = vld [vmem:[#allocation8 + $0x264] ss:$16 sps:$4 sm:$0xff]   ;;  %v4867_v29 = vld [vmem:[#allocation8 + $0x260] ss:$16 sps:$4 sm:$0xff]  }
 0x172   : > { %v5334_v32 = vpop.eup %5333  ;;  %v501_v33 = vadd.f32 1.0, %v5332_v30  ;;  %v4870_v30 = vld [vmem:[#allocation8 + $0x268] ss:$16 sps:$4 sm:$0xff]  }
 0x173   : > { %v5336_v34 = vpop.eup %5335  ;;  %v511_v35 = vmul.f32 0.5, %v503_v31  ;;  %v504_v36 = vadd.f32 1.0, %v5334_v32  ;;  %v4875_v31 = vld [vmem:[#allocation8 + $0x284] ss:$16 sps:$4 sm:$0xff]   ;;  %v4878_v32 = vld [vmem:[#allocation8 + $0x28c] ss:$16 sps:$4 sm:$0xff]  }
 0x174   : > { %v509_v37 = vmul.f32 0.5, %v501_v33  ;;  %v502_v38 = vadd.f32 1.0, %v5336_v34  ;;  %v4873_v33 = vld [vmem:[#allocation8 + $0x280] ss:$16 sps:$4 sm:$0xff]   ;;  %v4876_v34 = vld [vmem:[#allocation8 + $0x288] ss:$16 sps:$4 sm:$0xff]  }
 0x175   : > { %v512_v39 = vmul.f32 0.5, %v504_v36  ;;  %v519_v41 = vmul.f32 %v4667_v13, %v511_v35  ;;  %v4851_v13 = vld [vmem:[#allocation8 + $0x204] ss:$16 sps:$4 sm:$0xff]   ;;  %v4884_v36 = vld [vmem:[#allocation8 + $0x2ac] ss:$16 sps:$4 sm:$0xff]  }
 0x176   : > { %v510_v40 = vmul.f32 0.5, %v502_v38  ;;  %v517_v44 = vmul.f32 %v509_v37, %v454_v15  ;;  %v4848_v15 = vld [vmem:[#allocation6 + $0x94] ss:$8 sps:$4 sm:$0xff]   ;;  %v4879_v37 = vld [vmem:[#allocation8 + $0x2a0] ss:$16 sps:$4 sm:$0xff]  }
 0x177   : > { %v520_v42 = vmul.f32 %v4668_v17, %v512_v39  ;;  %v4854_v17 = vld [vmem:[#allocation8 + $0x20c] ss:$16 sps:$4 sm:$0xff]   ;;  %v4881_v35 = vld [vmem:[#allocation8 + $0x2a4] ss:$16 sps:$4 sm:$0xff]   ;;  %v4882_v38 = vld [vmem:[#allocation8 + $0x2a8] ss:$16 sps:$4 sm:$0xff]  }
 0x178   : > { %v5338_v43 = vpop.eup %5337  ;;  %v518_v45 = vmul.f32 %v510_v40, %v457_v19  ;;  %v4852_v19 = vld [vmem:[#allocation8 + $0x208] ss:$16 sps:$4 sm:$0xff]   ;;  %v4887_v39 = vld [vmem:[#allocation8 + $0x2c4] ss:$16 sps:$4 sm:$0xff]   ;;  %v4890_v40 = vld [vmem:[#allocation8 + $0x2cc] ss:$16 sps:$4 sm:$0xff]  }
 0x179   : > { %v5340_v46 = vpop.eup %5339  ;;  %v5934_v47 = vpack.c.bf16 %v520_v42, %v519_v41  ;;  %v507_v48 = vadd.f32 1.0, %v5338_v43  ;;  %v4885_v41 = vld [vmem:[#allocation8 + $0x2c0] ss:$16 sps:$4 sm:$0xff]   ;;  %v4888_v42 = vld [vmem:[#allocation8 + $0x2c8] ss:$16 sps:$4 sm:$0xff]  }
 0x17a   : > { %v5342_v50 = vpop.eup %5341  ;;  %v5936_v51 = vpack.c.bf16 %v518_v45, %v517_v44  ;;  %v505_v52 = vadd.f32 1.0, %v5340_v46  ;;  %v4893_v43 = vld [vmem:[#allocation8 + $0x2e4] ss:$16 sps:$4 sm:$0xff]   ;;  %v4896_v44 = vld [vmem:[#allocation8 + $0x2ec] ss:$16 sps:$4 sm:$0xff]  }
 0x17b   : > { %v5344_v55 = vpop.eup %5343  ;;  %v515_v56 = vmul.f32 0.5, %v507_v48  ;;  %v508_v57 = vadd.f32 1.0, %v5342_v50  ;;  %4292 = vmatmul.mubr.msk.bf16.vlgmr.msra.gmra.mrb[0].mxu1 %vm407_vm0, %v5934_v47  ;;  %v4891_v45 = vld [vmem:[#allocation8 + $0x2e0] ss:$16 sps:$4 sm:$0xff]   ;;  %v4894_v46 = vld [vmem:[#allocation8 + $0x2e8] ss:$16 sps:$4 sm:$0xff]  }
 0x17c   : > { %v513_v59 = vmul.f32 0.5, %v505_v52  ;;  %v506_v60 = vadd.f32 1.0, %v5344_v55  ;;  %4291 = vmatmul.mubr.msk.bf16.vlgmr.msra.gmra.mrb[8].mxu0 %vm407_vm0, %v5936_v51  ;;  %617 = vmatprep.mubr.bf16.mxu1 %v5719_v10  ;;  %v4902_v48 = vld [vmem:[#allocation8 + $0x30c] ss:$16 sps:$4 sm:$0xff]   ;;  %v4900_v50 = vld [vmem:[#allocation8 + $0x308] ss:$16 sps:$4 sm:$0xff]  }
 0x17d   : > { %v516_v61 = vmul.f32 0.5, %v508_v57  ;;  %764 = vmatpush1.bf16.msra.mxu0 %v4825_v49  ;;  %795 = vmatprep.mubr.bf16.mxu0 %v5719_v10  ;;  %v523_v2 = vmul.f32 %v4671_v21, %v515_v56  ;;  %v4860_v21 = vld [vmem:[#allocation8 + $0x22c] ss:$16 sps:$4 sm:$0xff]   ;;  %v4897_v49 = vld [vmem:[#allocation8 + $0x300] ss:$16 sps:$4 sm:$0xff]  }
 0x17e   : > { %v514_v63 = vmul.f32 0.5, %v506_v60  ;;  %765 = vmatprep.subr.bf16.mxu0 %v4830_v53  ;;  %963 = vmatpush1.bf16.msra.mxu1 %v4831_v54  ;;  %v521_v5 = vmul.f32 %v513_v59, %v470_v23  ;;  %v4858_v23 = vld [vmem:[#allocation8 + $0x228] ss:$16 sps:$4 sm:$0xff]   ;;  %v4908_v52 = vld [vmem:[#allocation8 + $0x32c] ss:$16 sps:$4 sm:$0xff]  }
 0x17f   : > { %v524_v3 = vmul.f32 %v4672_v25, %v516_v61  ;;  %964 = vmatprep.subr.bf16.mxu1 %v4836_v58  ;;  %v4866_v25 = vld [vmem:[#allocation8 + $0x24c] ss:$16 sps:$4 sm:$0xff]   ;;  %v4903_v53 = vld [vmem:[#allocation8 + $0x320] ss:$16 sps:$4 sm:$0xff]   ;;  %v4906_v54 = vld [vmem:[#allocation8 + $0x328] ss:$16 sps:$4 sm:$0xff]  }
 0x180   : > { %v522_v6 = vmul.f32 %v514_v63, %v473_v27  ;;  %v4864_v27 = vld [vmem:[#allocation8 + $0x248] ss:$16 sps:$4 sm:$0xff]   ;;  %v4911_v55 = vld [vmem:[#allocation8 + $0x344] ss:$16 sps:$4 sm:$0xff]   ;;  %v4914_v56 = vld [vmem:[#allocation8 + $0x34c] ss:$16 sps:$4 sm:$0xff]  }
 0x181   : > { %v528_v7 = vpack.c.bf16 %v524_v3, %v523_v2  ;;  %766 = vmatpush1.bf16.msra.mxu0 %v4828_v62  ;;  %v4909_v57 = vld [vmem:[#allocation8 + $0x340] ss:$16 sps:$4 sm:$0xff]   ;;  %v4912_v58 = vld [vmem:[#allocation8 + $0x348] ss:$16 sps:$4 sm:$0xff]   ;;  %v4917_v59 = vld [vmem:[#allocation8 + $0x364] ss:$16 sps:$4 sm:$0xff]  }
 0x182   : > { %v527_v8 = vpack.c.bf16 %v522_v6, %v521_v5  ;;  %965 = vmatpush1.bf16.msra.mxu1 %v4834_v0  ;;  %1161 = vmatprep.subr.bf16.mxu0 %v4839_v1  ;;  %v4920_v60 = vld [vmem:[#allocation8 + $0x36c] ss:$16 sps:$4 sm:$0xff]   ;;  %v4915_v61 = vld [vmem:[#allocation8 + $0x360] ss:$16 sps:$4 sm:$0xff]   ;;  %v4918_v62 = vld [vmem:[#allocation8 + $0x368] ss:$16 sps:$4 sm:$0xff]  }
 0x183   : > { %1360 = vmatprep.subr.bf16.mxu1 %v4845_v4  ;;  %v4923_v63 = vld [vmem:[#allocation8 + $0x384] ss:$16 sps:$4 sm:$0xff]   ;;  %v4926_v0 = vld [vmem:[#allocation8 + $0x38c] ss:$16 sps:$4 sm:$0xff]   ;;  %v4921_v1 = vld [vmem:[#allocation8 + $0x380] ss:$16 sps:$4 sm:$0xff]  }
 0x184   : > { %4293 = vmatmul.mubr.msk.bf16.gmra.mrb[4].mxu1 %vm407_vm0, %v527_v8  ;;  %4299 = vmatmul.mubr.msk.bf16.vlgmr.msra.gmra.mrb[12].mxu0 %vm407_vm0, %v5936_v51  ;;  %v4924_v2 = vld [vmem:[#allocation8 + $0x388] ss:$16 sps:$4 sm:$0xff]   ;;  %v4929_v3 = vld [vmem:[#allocation8 + $0x3a4] ss:$16 sps:$4 sm:$0xff]   ;;  %v4932_v4 = vld [vmem:[#allocation8 + $0x3ac] ss:$16 sps:$4 sm:$0xff]  }
 0x185   : > { %627 = vmatprep.mubr.bf16.mxu1 %v5719_v10  ;;  %805 = vmatprep.mubr.bf16.mxu0 %v5719_v10  ;;  %v4927_v5 = vld [vmem:[#allocation8 + $0x3a0] ss:$16 sps:$4 sm:$0xff]   ;;  %v4930_v6 = vld [vmem:[#allocation8 + $0x3a8] ss:$16 sps:$4 sm:$0xff]  }
 0x186   : > { %1162 = vmatpush1.bf16.msra.mxu0 %v4837_v9  ;;  %v4933_v9 = vld [vmem:[#allocation8 + $0x3c0] ss:$16 sps:$4 sm:$0xff]  }
 0x187   : > { %1163 = vmatprep.subr.bf16.mxu0 %v4842_v11  ;;  %v4936_v11 = vld [vmem:[#allocation8 + $0x3c8] ss:$16 sps:$4 sm:$0xff]  }
 0x18a   : > { %1164 = vmatpush1.bf16.msra.mxu0 %v4840_v12  ;;  %v4941_v12 = vld [vmem:[#allocation8 + $0x3e4] ss:$16 sps:$4 sm:$0xff]  }
 0x18b   : > { %2100 = vmatprep.subr.bf16.mxu0 %v4851_v13  ;;  %v4944_v13 = vld [vmem:[#allocation8 + $0x3ec] ss:$16 sps:$4 sm:$0xff]  }
 0x18c   : > { %4294 = vmatmul.mubr.msk.bf16.gmra.mrb[8].mxu1 %vm407_vm0, %v528_v7  ;;  %4300 = vmatmul.mubr.msk.bf16.gmra.mrb[16].mxu0 %vm407_vm0, %v5934_v47 }
 0x18d   : > { %815 = vmatprep.mubr.bf16.mxu0 %v5719_v10  ;;  %994 = vmatprep.mubr.bf16.mxu1 %v5719_v10 }
 0x194   : > { %4301 = vmatmul.mubr.msk.bf16.gmra.mrb[20].mxu0 %vm407_vm0, %v527_v8  ;;  %4307 = vmatmul.mubr.msk.bf16.vlgmr.msra.gmra.mrb[12].mxu1 %vm407_vm0, %v5936_v51 }
 0x195   : > { %825 = vmatprep.mubr.bf16.mxu0 %v5719_v10  ;;  %1004 = vmatprep.mubr.bf16.mxu1 %v5719_v10 }
 0x196   : > { %1361 = vmatpush1.bf16.msra.mxu1 %v4843_v14  ;;  %v4939_v14 = vld [vmem:[#allocation8 + $0x3e0] ss:$16 sps:$4 sm:$0xff]  }
 0x197   : > { %1362 = vmatprep.subr.bf16.mxu1 %v4848_v15  ;;  %v4942_v15 = vld [vmem:[#allocation8 + $0x3e8] ss:$16 sps:$4 sm:$0xff]  }
 0x19a   : > { %1363 = vmatpush1.bf16.msra.mxu1 %v4846_v16  ;;  %v4947_v16 = vld [vmem:[#allocation8 + $0x4] ss:$16 sps:$4 sm:$0xff]  }
 0x19b   : > { %2141 = vmatprep.subr.bf16.mxu1 %v4854_v17  ;;  %v4950_v17 = vld [vmem:[#allocation8 + $0xc] ss:$16 sps:$4 sm:$0xff]  }
 0x19c   : > { %4302 = vmatmul.mubr.msk.bf16.gmra.mrb[24].mxu0 %vm407_vm0, %v528_v7  ;;  %4308 = vmatmul.mubr.msk.bf16.gmra.mrb[16].mxu1 %vm407_vm0, %v5934_v47 }
 0x19d   : > { %1014 = vmatprep.mubr.bf16.mxu1 %v5719_v10  ;;  %1193 = vmatprep.mubr.bf16.mxu0 %v5719_v10 }
 0x1a4   : > { %4309 = vmatmul.mubr.msk.bf16.gmra.mrb[20].mxu1 %vm407_vm0, %v527_v8  ;;  %4315 = vmatmul.mubr.msk.bf16.vlgmr.msra.gmra.mrb[28].mxu0 %vm407_vm0, %v5936_v51 }
 0x1a5   : > { %1024 = vmatprep.mubr.bf16.mxu1 %v5719_v10  ;;  %1203 = vmatprep.mubr.bf16.mxu0 %v5719_v10 }
 0x1a6   : > { %2101 = vmatpush1.bf16.msra.mxu0 %v4849_v18 }
 0x1a7   : > { %2102 = vmatprep.subr.bf16.mxu0 %v4857_v20 }
 0x1aa   : > { %2103 = vmatpush1.bf16.msra.mxu0 %v4855_v22 }
 0x1ab   : > { %2104 = vmatprep.subr.bf16.mxu0 %v4863_v24 }
 0x1ac   : > { %4310 = vmatmul.mubr.msk.bf16.gmra.mrb[24].mxu1 %vm407_vm0, %v528_v7  ;;  %4316 = vmatmul.mubr.msk.bf16.gmra.mrb[32].mxu0 %vm407_vm0, %v5934_v47 }
 0x1ad   : > { %1213 = vmatprep.mubr.bf16.mxu0 %v5719_v10  ;;  %1392 = vmatprep.mubr.bf16.mxu1 %v5719_v10 }
 0x1ae   : > { %2105 = vmatpush1.bf16.msra.mxu0 %v4861_v26 }
 0x1af   : > { %2106 = vmatprep.subr.bf16.mxu0 %v4869_v28 }
 0x1b2   : > { %2107 = vmatpush1.bf16.msra.mxu0 %v4867_v29 }
 0x1b3   : > { %2108 = vmatprep.subr.bf16.mxu0 %v4875_v31 }
 0x1b4   : > { %4317 = vmatmul.mubr.msk.bf16.gmra.mrb[36].mxu0 %vm407_vm0, %v527_v8  ;;  %4323 = vmatmul.mubr.msk.bf16.vlgmr.msra.gmra.mrb[28].mxu1 %vm407_vm0, %v5936_v51  ;;  %v4905_v51 = vld [vmem:[#allocation8 + $0x324] ss:$16 sps:$4 sm:$0xff]  }
 0x1b5   : > { %1223 = vmatprep.mubr.bf16.mxu0 %v5719_v10  ;;  %1402 = vmatprep.mubr.bf16.mxu1 %v5719_v10 }
 0x1b6   : > { %2142 = vmatpush1.bf16.msra.mxu1 %v4852_v19  ;;  %2109 = vmatpush1.bf16.msra.mxu0 %v4873_v33 }
 0x1b7   : > { %2143 = vmatprep.subr.bf16.mxu1 %v4860_v21  ;;  %2110 = vmatprep.subr.bf16.mxu0 %v4881_v35 }
 0x1ba   : > { %2144 = vmatpush1.bf16.msra.mxu1 %v4858_v23  ;;  %2111 = vmatpush1.bf16.msra.mxu0 %v4879_v37 }
 0x1bb   : > { %2145 = vmatprep.subr.bf16.mxu1 %v4866_v25  ;;  %2112 = vmatprep.subr.bf16.mxu0 %v4887_v39 }
 0x1bc   : > { %4318 = vmatmul.mubr.msk.bf16.gmra.mrb[40].mxu0 %vm407_vm0, %v528_v7  ;;  %4324 = vmatmul.mubr.msk.bf16.gmra.mrb[32].mxu1 %vm407_vm0, %v5934_v47  ;;  %v4899_v47 = vld [vmem:[#allocation8 + $0x304] ss:$16 sps:$4 sm:$0xff]  }
 0x1bd   : > { %1412 = vmatprep.mubr.bf16.mxu1 %v5719_v10 }
 0x1be   : > { %2146 = vmatpush1.bf16.msra.mxu1 %v4864_v27  ;;  %2113 = vmatpush1.bf16.msra.mxu0 %v4885_v41 }
 0x1bf   : > { %2114 = vmatprep.subr.bf16.mxu0 %v4893_v43 }
 0x1c2   : > { %2115 = vmatpush1.bf16.msra.mxu0 %v4891_v45 }
 0x1c3   : > { %2116 = vmatprep.subr.bf16.mxu0 %v4899_v47 }
 0x1c4   : > { %4325 = vmatmul.mubr.msk.bf16.gmra.mrb[36].mxu1 %vm407_vm0, %v527_v8  ;;  %v4938_v8 = vld [vmem:[#allocation8 + $0x3cc] ss:$16 sps:$4 sm:$0xff]  }
 0x1c5   : > { %1422 = vmatprep.mubr.bf16.mxu1 %v5719_v10  ;;  %v4872_v10 = vld [vmem:[#allocation8 + $0x26c] ss:$16 sps:$4 sm:$0xff]  }
 0x1c6   : > { %2147 = vmatprep.subr.bf16.mxu1 %v4872_v10  ;;  %2117 = vmatpush1.bf16.msra.mxu0 %v4897_v49 }
 0x1c7   : > { %2148 = vmatpush1.bf16.msra.mxu1 %v4870_v30  ;;  %2118 = vmatprep.subr.bf16.mxu0 %v4905_v51 }
 0x1c8   : > { %2149 = vmatprep.subr.bf16.mxu1 %v4878_v32 }
 0x1ca   : > { %2119 = vmatpush1.bf16.msra.mxu0 %v4903_v53 }
 0x1cb   : > { %2150 = vmatpush1.bf16.msra.mxu1 %v4876_v34  ;;  %2120 = vmatprep.subr.bf16.mxu0 %v4911_v55 }
 0x1cc   : > { %4326 = vmatmul.mubr.msk.bf16.gmra.mrb[40].mxu1 %vm407_vm0, %v528_v7  ;;  %2151 = vmatprep.subr.bf16.mxu1 %v4884_v36  ;;  %v4935_v7 = vld [vmem:[#allocation8 + $0x3c4] ss:$16 sps:$4 sm:$0xff]  }
 0x1ce   : > { %2121 = vmatpush1.bf16.msra.mxu0 %v4909_v57 }
 0x1cf   : > { %2152 = vmatpush1.bf16.msra.mxu1 %v4882_v38  ;;  %2122 = vmatprep.subr.bf16.mxu0 %v4917_v59 }
 0x1d0   : > { %2153 = vmatprep.subr.bf16.mxu1 %v4890_v40 }
 0x1d2   : > { %2123 = vmatpush1.bf16.msra.mxu0 %v4915_v61 }
 0x1d3   : > { %2154 = vmatpush1.bf16.msra.mxu1 %v4888_v42  ;;  %2124 = vmatprep.subr.bf16.mxu0 %v4923_v63 }
 0x1d4   : > { %2155 = vmatprep.subr.bf16.mxu1 %v4896_v44 }
 0x1d6   : > { %2125 = vmatpush1.bf16.msra.mxu0 %v4921_v1 }
 0x1d7   : > { %2156 = vmatpush1.bf16.msra.mxu1 %v4894_v46  ;;  %2126 = vmatprep.subr.bf16.mxu0 %v4929_v3 }
 0x1d8   : > { %2157 = vmatprep.subr.bf16.mxu1 %v4902_v48 }
 0x1da   : > { %2127 = vmatpush1.bf16.msra.mxu0 %v4927_v5 }
 0x1db   : > { %2158 = vmatpush1.bf16.msra.mxu1 %v4900_v50  ;;  %2128 = vmatprep.subr.bf16.mxu0 %v4935_v7 }
 0x1dc   : > { %2159 = vmatprep.subr.bf16.mxu1 %v4908_v52 }
 0x1de   : > { %2129 = vmatpush1.bf16.msra.mxu0 %v4933_v9 }
 0x1df   : > { %2160 = vmatpush1.bf16.msra.mxu1 %v4906_v54  ;;  %2130 = vmatprep.subr.bf16.mxu0 %v4941_v12 }
 0x1e0   : > { %2161 = vmatprep.subr.bf16.mxu1 %v4914_v56 }
 0x1e2   : > { %2131 = vmatpush1.bf16.msra.mxu0 %v4939_v14 }
 0x1e3   : > { %2162 = vmatpush1.bf16.msra.mxu1 %v4912_v58  ;;  %2502 = vmatprep.subr.bf16.mxu0 %v4947_v16 }
 0x1e4   : > { %2163 = vmatprep.subr.bf16.mxu1 %v4920_v60 }
 0x1e7   : > { %2164 = vmatpush1.bf16.msra.mxu1 %v4918_v62 }
 0x1e8   : > { %2165 = vmatprep.subr.bf16.mxu1 %v4926_v0 }
 0x1eb   : > { %2166 = vmatpush1.bf16.msra.mxu1 %v4924_v2 }
 0x1ec   : > { %2167 = vmatprep.subr.bf16.mxu1 %v4932_v4 }
 0x1ef   : > { %2168 = vmatpush1.bf16.msra.mxu1 %v4930_v6 }
 0x1f0   : > { %2169 = vmatprep.subr.bf16.mxu1 %v4938_v8 }
 0x1f3   : > { %2170 = vmatpush1.bf16.msra.mxu1 %v4936_v11 }
 0x1f4   : > { %2171 = vmatprep.subr.bf16.mxu1 %v4944_v13 }
 0x1f7   : > { %2172 = vmatpush1.bf16.msra.mxu1 %v4942_v15 }
 0x1f8   : > { %2543 = vmatprep.subr.bf16.mxu1 %v4950_v17 }
 0x24e   : > { %v609_v18 = vpop.f32.mrb[0].mxu1 }
 0x24f   : > { %v642_v19 = vmul.f32 0.5, %v609_v18  ;;  %v5986_v20 = vpop.f32.mrb[8].mxu0  ;;  %v5988_v21 = vpop.f32.mrb[1].mxu1 }
 0x250   : > { %v638_v22 = vmul.f32 0.5, %v5986_v20  ;;  %v643_v23 = vmul.f32 0.5, %v5988_v21  ;;  %v5992_v24 = vpop.f32.mrb[9].mxu0  ;;  %v5994_v25 = vpop.f32.mrb[2].mxu1 }
 0x251   : > { %5345 = vtanh.f32 %v642_v19  ;;  %v639_v26 = vmul.f32 0.5, %v5992_v24  ;;  %v644_v27 = vmul.f32 0.5, %v5994_v25  ;;  %v5998_v28 = vpop.f32.mrb[10].mxu0  ;;  %v6000_v10 = vpop.f32.mrb[3].mxu1 }
 0x252   : > { %5347 = vtanh.f32 %v638_v22  ;;  %v640_v29 = vmul.f32 0.5, %v5998_v28  ;;  %v6003_v30 = vpop.f32.mrb[11].mxu0  ;;  %v645_v31 = vmul.f32 0.5, %v6000_v10 }
 0x253   : > { %5349 = vtanh.f32 %v643_v23  ;;  %v641_v32 = vmul.f32 0.5, %v6003_v30 }
 0x254   : > { %5351 = vtanh.f32 %v639_v26 }
 0x255   : > { %5353 = vtanh.f32 %v644_v27 }
 0x256   : > { %5355 = vtanh.f32 %v640_v29 }
 0x257   : > { %5357 = vtanh.f32 %v645_v31  ;;  %v6007_v33 = vpop.f32.mrb[4].mxu1  ;;  %v6009_v34 = vpop.f32.mrb[12].mxu0 }
 0x258   : > { %5359 = vtanh.f32 %v641_v32  ;;  %v646_v35 = vmul.f32 0.5, %v6007_v33  ;;  %v836_v36 = vmul.f32 0.5, %v6009_v34  ;;  %v6013_v37 = vpop.f32.mrb[5].mxu1  ;;  %v6015_v38 = vpop.f32.mrb[13].mxu0 }
 0x259   : > { %v647_v39 = vmul.f32 0.5, %v6013_v37  ;;  %v837_v40 = vmul.f32 0.5, %v6015_v38  ;;  %v6019_v41 = vpop.f32.mrb[6].mxu1  ;;  %v6021_v42 = vpop.f32.mrb[14].mxu0 }
 0x25a   : > { %5361 = vtanh.f32 %v646_v35  ;;  %v648_v43 = vmul.f32 0.5, %v6019_v41  ;;  %v6024_v44 = vpop.f32.mrb[7].mxu1  ;;  %v6026_v45 = vpop.f32.mrb[15].mxu0  ;;  %v838_v47 = vmul.f32 0.5, %v6021_v42 }
 0x25b   : > { %v5346_v46 = vpop.eup %5345  ;;  %5363 = vtanh.f32 %v836_v36  ;;  %v649_v50 = vmul.f32 0.5, %v6024_v44  ;;  %v839_v53 = vmul.f32 0.5, %v6026_v45 }
 0x25c   : > { %v5348_v48 = vpop.eup %5347  ;;  %v674_v49 = vadd.f32 1.0, %v5346_v46  ;;  %5365 = vtanh.f32 %v647_v39 }
 0x25d   : > { %v5350_v51 = vpop.eup %5349  ;;  %v670_v52 = vadd.f32 1.0, %v5348_v48  ;;  %5367 = vtanh.f32 %v837_v40 }
 0x25e   : > { %v5352_v54 = vpop.eup %5351  ;;  %v690_v55 = vmul.f32 0.5, %v674_v49  ;;  %v675_v56 = vadd.f32 1.0, %v5350_v51  ;;  %5369 = vtanh.f32 %v648_v43 }
 0x25f   : > { %v5354_v57 = vpop.eup %5353  ;;  %v686_v58 = vmul.f32 0.5, %v670_v52  ;;  %v671_v59 = vadd.f32 1.0, %v5352_v54  ;;  %5371 = vtanh.f32 %v838_v47  ;;  %v6031_v60 = vpop.f32.mrb[8].mxu1 }
 0x260   : > { %v6033_v61 = vpop.f32.mrb[16].mxu0  ;;  %v5356_v62 = vpop.eup %5355  ;;  %v706_v63 = vmul.f32 %v690_v55, %v609_v18  ;;  %v691_v0 = vmul.f32 0.5, %v675_v56  ;;  %v676_v1 = vadd.f32 1.0, %v5354_v57  ;;  %5373 = vtanh.f32 %v649_v50 }
 0x261   : > { %v6035_v2 = vpop.f32.mrb[9].mxu1  ;;  %v6037_v3 = vpop.f32.mrb[17].mxu0  ;;  %v702_v5 = vmul.f32 %v686_v58, %v5986_v20  ;;  %v687_v6 = vmul.f32 0.5, %v671_v59  ;;  %v672_v7 = vadd.f32 1.0, %v5356_v62  ;;  %5375 = vtanh.f32 %v839_v53 }
 0x262   : > { %v5358_v4 = vpop.eup %5357  ;;  %v6040_v8 = vpop.f32.mrb[10].mxu1  ;;  %v707_v12 = vmul.f32 %v691_v0, %v5988_v21  ;;  %v692_v13 = vmul.f32 0.5, %v676_v1  ;;  %v650_v15 = vmul.f32 0.5, %v6031_v60  ;;  %v840_v22 = vmul.f32 0.5, %v6033_v61 }
 0x263   : > { %v6042_v9 = vpop.f32.mrb[18].mxu0  ;;  %v5360_v11 = vpop.eup %5359  ;;  %v677_v14 = vadd.f32 1.0, %v5358_v4  ;;  %v703_v18 = vmul.f32 %v687_v6, %v5992_v24  ;;  %v688_v19 = vmul.f32 0.5, %v672_v7  ;;  %v651_v21 = vmul.f32 0.5, %v6035_v2 }
 0x264   : > { %v6046_v16 = vpop.f32.mrb[11].mxu1  ;;  %v6048_v17 = vpop.f32.mrb[19].mxu0  ;;  %v673_v20 = vadd.f32 1.0, %v5360_v11  ;;  %v708_v26 = vmul.f32 %v692_v13, %v5994_v25  ;;  %5377 = vtanh.f32 %v650_v15  ;;  %v841_v40 = vmul.f32 0.5, %v6037_v3 }
 0x265   : > { %v5362_v23 = vpop.eup %5361  ;;  %v693_v27 = vmul.f32 0.5, %v677_v14  ;;  %v704_v31 = vmul.f32 %v688_v19, %v5998_v28  ;;  %5379 = vtanh.f32 %v840_v22 }
 0x266   : > { %v5364_v29 = vpop.eup %5363  ;;  %v689_v32 = vmul.f32 0.5, %v673_v20  ;;  %v678_v35 = vadd.f32 1.0, %v5362_v23  ;;  %5381 = vtanh.f32 %v651_v21 }
 0x267   : > { %v5366_v36 = vpop.eup %5365  ;;  %v709_v24 = vmul.f32 %v693_v27, %v6000_v10  ;;  %v868_v39 = vadd.f32 1.0, %v5364_v29  ;;  %v718_v46 = vadd.f32 %v704_v31, %v702_v5  ;;  %v6058_v49 = vpop.f32.mrb[20].mxu0  ;;  %5383 = vtanh.f32 %v841_v40 }
 0x268   : > { %v5368_v43 = vpop.eup %5367  ;;  %v705_v25 = vmul.f32 %v689_v32, %v6003_v30  ;;  %v694_v47 = vmul.f32 0.5, %v678_v35  ;;  %v679_v48 = vadd.f32 1.0, %v5366_v36  ;;  %v6060_v50 = vpop.f32.mrb[12].mxu1  ;;  %v652_v10 = vmul.f32 0.5, %v6040_v8 }
 0x269   : > { %v5370_v28 = vpop.eup %5369  ;;  %v884_v51 = vmul.f32 0.5, %v868_v39  ;;  %v869_v52 = vadd.f32 1.0, %v5368_v43  ;;  %v6063_v53 = vpop.f32.mrb[21].mxu0  ;;  %v719_v56 = vadd.f32 %v718_v46, %v706_v63  ;;  %v653_v36 = vmul.f32 0.5, %v6046_v16 }
 0x26a   : > { %v6065_v54 = vpop.f32.mrb[13].mxu1  ;;  %v5372_v55 = vpop.eup %5371  ;;  %v725_v57 = vadd.f32 %v705_v25, %v703_v18  ;;  %v710_v30 = vmul.f32 %v694_v47, %v6007_v33  ;;  %v695_v58 = vmul.f32 0.5, %v679_v48  ;;  %v680_v5 = vadd.f32 1.0, %v5370_v28 }
 0x26b   : > { %v6068_v59 = vpop.f32.mrb[22].mxu0  ;;  %v6070_v62 = vpop.f32.mrb[14].mxu1  ;;  %v900_v1 = vmul.f32 %v884_v51, %v6009_v34  ;;  %v885_v4 = vmul.f32 0.5, %v869_v52  ;;  %v870_v6 = vadd.f32 1.0, %v5372_v55  ;;  %v720_v14 = vadd.f32 %v719_v56, %v708_v26 }
 0x26c   : > { %v5374_v0 = vpop.eup %5373  ;;  %v6073_v7 = vpop.f32.mrb[23].mxu0  ;;  %v726_v63 = vadd.f32 %v725_v57, %v707_v12  ;;  %v711_v33 = vmul.f32 %v695_v58, %v6013_v37  ;;  %v696_v19 = vmul.f32 0.5, %v680_v5  ;;  %5385 = vtanh.f32 %v652_v10 }
 0x26d   : > { %v6075_v11 = vpop.f32.mrb[15].mxu1  ;;  %v5376_v13 = vpop.eup %5375  ;;  %v681_v15 = vadd.f32 1.0, %v5374_v0  ;;  %v901_v18 = vmul.f32 %v885_v4, %v6015_v38  ;;  %v886_v20 = vmul.f32 0.5, %v870_v6  ;;  %v721_v23 = vadd.f32 %v720_v14, %v710_v30 }
 0x26e   : > { %v871_v22 = vadd.f32 1.0, %v5376_v13  ;;  %v727_v34 = vadd.f32 %v726_v63, %v709_v24  ;;  %v5378_v21 = vpop.eup %5377  ;;  %v712_v29 = vmul.f32 %v696_v19, %v6019_v41  ;;  %v842_v12 = vmul.f32 0.5, %v6042_v9 }
 0x26f   : > { %v697_v27 = vmul.f32 0.5, %v681_v15  ;;  %v902_v31 = vmul.f32 %v886_v20, %v6021_v42  ;;  %v5380_v26 = vpop.eup %5379  ;;  %v682_v38 = vadd.f32 1.0, %v5378_v21  ;;  %v6084_v39 = vpop.f32.mrb[24].mxu0  ;;  %v843_v57 = vmul.f32 0.5, %v6048_v17 }
 0x270   : > { %v887_v32 = vmul.f32 0.5, %v871_v22  ;;  %v728_v37 = vadd.f32 %v727_v34, %v711_v33  ;;  %v6086_v24 = vpop.f32.mrb[16].mxu1  ;;  %v5382_v40 = vpop.eup %5381  ;;  %v722_v43 = vadd.f32 %v721_v23, %v712_v29  ;;  %v872_v42 = vadd.f32 1.0, %v5380_v26 }
 0x271   : > { %v713_v35 = vmul.f32 %v697_v27, %v6024_v44  ;;  %v916_v46 = vadd.f32 %v902_v31, %v900_v1  ;;  %v6089_v25 = vpop.f32.mrb[25].mxu0  ;;  %v6091_v47 = vpop.f32.mrb[17].mxu1  ;;  %v698_v28 = vmul.f32 0.5, %v682_v38  ;;  %v683_v44 = vadd.f32 1.0, %v5382_v40 }
 0x272   : > { %v903_v41 = vmul.f32 %v887_v32, %v6026_v45  ;;  %5387 = vtanh.f32 %v842_v12  ;;  %v6093_v51 = vpop.f32.mrb[26].mxu0  ;;  %v6095_v52 = vpop.f32.mrb[18].mxu1  ;;  %v888_v56 = vmul.f32 0.5, %v872_v42  ;;  %v844_v4 = vmul.f32 0.5, %v6058_v49 }
 0x273   : > { %v729_v48 = vadd.f32 %v728_v37, %v713_v35  ;;  %v5384_v10 = vpop.eup %5383  ;;  %5389 = vtanh.f32 %v653_v36  ;;  %v6098_v45 = vpop.f32.mrb[27].mxu0  ;;  %v714_v58 = vmul.f32 %v698_v28, %v6031_v60  ;;  %v699_v0 = vmul.f32 0.5, %v683_v44 }
 0x274   : > { %v923_v55 = vadd.f32 %v903_v41, %v901_v18  ;;  %v6100_v30 = vpop.f32.mrb[19].mxu1  ;;  %v873_v1 = vadd.f32 1.0, %v5384_v10  ;;  %v904_v5 = vmul.f32 %v888_v56, %v6033_v61  ;;  %5391 = vtanh.f32 %v843_v57 }
 0x275   : > { %6581 = vst [vmem:[#allocation19_spill] sm:$0xff] %v6100_v30  ;;  %v1035_v6 = vmul.f32 0.5, %v6060_v50  ;;  %v845_v13 = vmul.f32 0.5, %v6063_v53  ;;  %v723_v63 = vadd.f32 %v722_v43, %v714_v58  ;;  %v715_v14 = vmul.f32 %v699_v0, %v6035_v2 }
 0x276   : > { %v889_v33 = vmul.f32 0.5, %v873_v1  ;;  %5393 = vtanh.f32 %v844_v4  ;;  %v6108_v15 = vadd.f32 %v916_v46, %v904_v5  ;;  %v1036_v60 = vmul.f32 0.5, %v6065_v54  ;;  %v5386_v19 = vpop.eup %5385 }
 0x277   : > { %5395 = vtanh.f32 %v1035_v6  ;;  %v846_v18 = vmul.f32 0.5, %v6068_v59  ;;  %v6112_v20 = vadd.f32 %v729_v48, %v715_v14  ;;  %v1037_v22 = vmul.f32 0.5, %v6070_v62  ;;  %v6116_v23 = vpop.f32.mrb[20].mxu1  ;;  %v6118_v2 = vpop.f32.mrb[28].mxu0 }
 0x278   : > { %v905_v61 = vmul.f32 %v889_v33, %v6037_v3  ;;  %5397 = vtanh.f32 %v845_v13  ;;  %6582 = vst [vmem:[#allocation20_spill] sm:$0xff] %v6116_v23  ;;  %6583 = vst [vmem:[#allocation21_spill] sm:$0xff] %v6118_v2  ;;  %v684_v34 = vadd.f32 1.0, %v5386_v19  ;;  %v847_v27 = vmul.f32 0.5, %v6073_v7  ;;  %v6122_v29 = vpop.f32.mrb[21].mxu1  ;;  %v6124_v31 = vpop.f32.mrb[29].mxu0 }
 0x279   : > { %5399 = vtanh.f32 %v1036_v60  ;;  %v1038_v21 = vmul.f32 0.5, %v6075_v11  ;;  %6584 = vst [vmem:[#allocation22_spill] sm:$0xff] %v6122_v29  ;;  %v848_v3 = vmul.f32 0.5, %v6084_v39  ;;  %v6129_v12 = vpop.f32.mrb[22].mxu1  ;;  %v6131_v26 = vpop.f32.mrb[30].mxu0  ;;  %v1039_v35 = vmul.f32 0.5, %v6086_v24 }
 0x27a   : > { %v6126_v32 = vadd.f32 %v923_v55, %v905_v61  ;;  %5401 = vtanh.f32 %v846_v18  ;;  %v700_v37 = vmul.f32 0.5, %v684_v34  ;;  %v6134_v38 = vpop.f32.mrb[23].mxu1  ;;  %v6136_v36 = vpop.f32.mrb[31].mxu0  ;;  %v849_v43 = vmul.f32 0.5, %v6089_v25 }
 0x27b   : > { %5403 = vtanh.f32 %v1037_v22  ;;  %v1040_v46 = vmul.f32 0.5, %v6091_v47  ;;  %v850_v28 = vmul.f32 0.5, %v6093_v51  ;;  %v6143_v10 = vmul.f32 0.5, %v6095_v52 }
 0x27c   : > { %v5388_v40 = vpop.eup %5387  ;;  %5405 = vtanh.f32 %v847_v27  ;;  %v716_v42 = vmul.f32 %v700_v37, %v6040_v8  ;;  %v6146_v55 = vmul.f32 0.5, %v6098_v45  ;;  %v6151_v0 = vmul.f32 0.5, %v6100_v30 }
 0x27d   : > { %v5390_v41 = vpop.eup %5389  ;;  %v874_v48 = vadd.f32 1.0, %v5388_v40  ;;  %5407 = vtanh.f32 %v1038_v21  ;;  %v6154_v5 = vmul.f32 0.5, %v6116_v23 }
 0x27e   : > { %v685_v44 = vadd.f32 1.0, %v5390_v41  ;;  %5409 = vtanh.f32 %v848_v3  ;;  %v5392_v56 = vpop.eup %5391  ;;  %v6148_v57 = vadd.f32 %v723_v63, %v716_v42 }
 0x27f   : > { %v890_v58 = vmul.f32 0.5, %v874_v48  ;;  %5411 = vtanh.f32 %v1039_v35  ;;  %v875_v4 = vadd.f32 1.0, %v5392_v56  ;;  %v6156_v6 = vpop.f32.mrb[24].mxu1  ;;  %v6158_v13 = vpop.f32.mrb[32].mxu0 }
 0x280   : > { %6585 = vst [vmem:[#allocation23_spill] sm:$0xff] %v6148_v57  ;;  %v5394_v8 = vpop.eup %5393  ;;  %v701_v1 = vmul.f32 0.5, %v685_v44  ;;  %5413 = vtanh.f32 %v849_v43  ;;  %v1547_v63 = vrot.slane %v6148_v57, 4  ;;  %v6162_v18 = vpop.f32.mrb[25].mxu1 }
 0x281   : > { %v5396_v14 = vpop.eup %5395  ;;  %v906_v33 = vmul.f32 %v890_v58, %v6042_v9  ;;  %v876_v60 = vadd.f32 1.0, %v5394_v8  ;;  %5415 = vtanh.f32 %v1040_v46  ;;  %v6164_v19 = vpop.f32.mrb[33].mxu0  ;;  %v891_v34 = vmul.f32 0.5, %v875_v4 }
 0x282   : > { %v5398_v61 = vpop.eup %5397  ;;  %v717_v22 = vmul.f32 %v701_v1, %v6046_v16  ;;  %v1067_v27 = vadd.f32 1.0, %v5396_v14  ;;  %5417 = vtanh.f32 %v850_v28  ;;  %v6167_v21 = vpop.f32.mrb[26].mxu1  ;;  %v1548_v35 = vadd.f32 %v1547_v63, %v6148_v57 }
 0x283   : > { %v6169_v3 = vpop.f32.mrb[34].mxu0  ;;  %v5400_v37 = vpop.eup %5399  ;;  %v918_v9 = vadd.f32 %v6108_v15, %v906_v33  ;;  %v892_v40 = vmul.f32 0.5, %v876_v60  ;;  %v877_v43 = vadd.f32 1.0, %v5398_v61  ;;  %v907_v48 = vmul.f32 %v891_v34, %v6048_v17 }
 0x284   : > { %v6173_v46 = vpop.f32.mrb[27].mxu1  ;;  %v6175_v41 = vpop.f32.mrb[35].mxu0  ;;  %v6178_v16 = vadd.f32 %v6112_v20, %v717_v22  ;;  %v1083_v28 = vmul.f32 0.5, %v1067_v27  ;;  %v1068_v44 = vadd.f32 1.0, %v5400_v37  ;;  %v1549_v58 = vrot.slane %v1548_v35, 2 }
 0x285   : > { %6586 = vst [vmem:[#allocation24_spill] sm:$0xff] %v6175_v41  ;;  %v5402_v42 = vpop.eup %5401  ;;  %v908_v8 = vmul.f32 %v892_v40, %v6058_v49  ;;  %v893_v1 = vmul.f32 0.5, %v877_v43  ;;  %v925_v63 = vadd.f32 %v6126_v32, %v907_v48  ;;  %v6185_v33 = vmul.f32 0.5, %v6118_v2 }
 0x286   : > { %6587 = vst [vmem:[#allocation25_spill] sm:$0xff] %v6178_v16  ;;  %v5404_v56 = vpop.eup %5403  ;;  %v878_v15 = vadd.f32 1.0, %v5402_v42  ;;  %v1553_v14 = vrot.slane %v6178_v16, 4  ;;  %v6188_v20 = vmul.f32 0.5, %v6122_v29  ;;  %v1084_v22 = vmul.f32 0.5, %v1068_v44 }
 0x287   : > { %v5406_v4 = vpop.eup %5405  ;;  %v919_v60 = vadd.f32 %v918_v9, %v908_v8  ;;  %v909_v61 = vmul.f32 %v893_v1, %v6063_v53  ;;  %v1099_v37 = vmul.f32 %v1083_v28, %v6060_v50  ;;  %v1069_v40 = vadd.f32 1.0, %v5404_v56  ;;  %v6193_v32 = vpop.f32.mrb[36].mxu0 }
 0x288   : > { %v5408_v17 = vpop.eup %5407  ;;  %v894_v34 = vmul.f32 0.5, %v878_v15  ;;  %v1554_v27 = vadd.f32 %v1553_v14, %v6178_v16  ;;  %v879_v43 = vadd.f32 1.0, %v5406_v4  ;;  %6588 = vst [vmem:[#allocation26_spill] sm:$0xff] %v6193_v32  ;;  %v6195_v42 = vpop.f32.mrb[28].mxu1  ;;  %v1550_v57 = vadd.f32 %v1549_v58, %v1548_v35 }
 0x289   : > { %v5410_v49 = vpop.eup %5409  ;;  %6589 = vst [vmem:[#allocation27_spill] sm:$0xff] %v6195_v42  ;;  %v926_v29 = vadd.f32 %v925_v63, %v909_v61  ;;  %v1070_v8 = vadd.f32 1.0, %v5408_v17  ;;  %v6198_v53 = vpop.f32.mrb[37].mxu0  ;;  %v1085_v14 = vmul.f32 0.5, %v1069_v40  ;;  %v1100_v35 = vmul.f32 %v1084_v22, %v6065_v54 }
 0x28a   : > { %v5412_v48 = vpop.eup %5411  ;;  %v910_v9 = vmul.f32 %v894_v34, %v6068_v59  ;;  %6590 = vst [vmem:[#allocation28_spill] sm:$0xff] %v6198_v53  ;;  %v6200_v44 = vpop.f32.mrb[29].mxu1  ;;  %v1555_v15 = vrot.slane %v1554_v27, 2  ;;  %v895_v50 = vmul.f32 0.5, %v879_v43  ;;  %v880_v28 = vadd.f32 1.0, %v5410_v49 }
 0x28b   : > { %6591 = vst [vmem:[#allocation29_spill] sm:$0xff] %v6200_v44  ;;  %v5414_v1 = vpop.eup %5413  ;;  %v6202_v56 = vpop.f32.mrb[38].mxu0  ;;  %v1086_v63 = vmul.f32 0.5, %v1070_v8  ;;  %v1071_v59 = vadd.f32 1.0, %v5412_v48  ;;  %v1101_v40 = vmul.f32 %v1085_v14, %v6070_v62  ;;  %5419 = vtanh.f32 %v6143_v10 }
 0x28c   : > { %6592 = vst [vmem:[#allocation30_spill] sm:$0xff] %v6202_v56  ;;  %v6204_v4 = vpop.f32.mrb[30].mxu1  ;;  %v5416_v16 = vpop.eup %5415  ;;  %v920_v58 = vadd.f32 %v919_v60, %v910_v9  ;;  %v1556_v2 = vadd.f32 %v1555_v15, %v1554_v27  ;;  %v911_v49 = vmul.f32 %v895_v50, %v6073_v7  ;;  %v896_v43 = vmul.f32 0.5, %v880_v28 }
 0x28d   : > { %6593 = vst [vmem:[#allocation31_spill] sm:$0xff] %v6204_v4  ;;  %v6207_v17 = vpop.f32.mrb[39].mxu0  ;;  %v6209_v61 = vpop.f32.mrb[31].mxu1  ;;  %v1551_v56 = vrot.slane %v1550_v57, 1  ;;  %v1102_v4 = vmul.f32 %v1086_v63, %v6075_v11  ;;  %v1087_v23 = vmul.f32 0.5, %v1071_v59  ;;  %v881_v30 = vadd.f32 1.0, %v5414_v1 }
 0x28e   : > { %6594 = vst [vmem:[#allocation32_spill] sm:$0xff] %v6209_v61  ;;  %v5418_v34 = vpop.eup %5417  ;;  %v1557_v54 = vrot.slane %v1556_v2, 1  ;;  %v1115_v60 = vadd.f32 %v1101_v40, %v1099_v37  ;;  %v927_v22 = vadd.f32 %v926_v29, %v911_v49  ;;  %v912_v48 = vmul.f32 %v896_v43, %v6084_v39 }
 0x28f   : > { %v1122_v9 = vadd.f32 %v1102_v4, %v1100_v35  ;;  %v1103_v8 = vmul.f32 %v1087_v23, %v6086_v24  ;;  %v897_v61 = vmul.f32 0.5, %v881_v30  ;;  %v1072_v27 = vadd.f32 1.0, %v5416_v16  ;;  %v6218_v14 = vpop.f32.mrb[40].mxu0  ;;  %v6220_v11 = vpop.f32.mrb[32].mxu1 }
 0x290   : > { %v921_v15 = vadd.f32 %v920_v58, %v912_v48  ;;  %v882_v62 = vadd.f32 1.0, %v5418_v34  ;;  %v1235_v7 = vmul.f32 0.5, %v6124_v31  ;;  %5421 = vtanh.f32 %v6146_v55  ;;  %v6226_v24 = vpop.f32.mrb[41].mxu0  ;;  %v6228_v30 = vpop.f32.mrb[33].mxu1 }
 0x291   : > { %v6222_v1 = vadd.f32 %v1115_v60, %v1103_v8  ;;  %v913_v29 = vmul.f32 %v897_v61, %v6089_v25  ;;  %v1088_v39 = vmul.f32 0.5, %v1072_v27  ;;  %v1552_v23 = vadd.f32 %v1551_v56, %v1550_v57  ;;  %v6231_v37 = vpop.f32.mrb[42].mxu0  ;;  %v6233_v50 = vpop.f32.mrb[34].mxu1 }
 0x292   : > { %v1558_v16 = vadd.f32 %v1557_v54, %v1556_v2  ;;  %v898_v10 = vmul.f32 0.5, %v882_v62  ;;  %5423 = vtanh.f32 %v6151_v0  ;;  %v1045_v55 = vmul.f32 0.5, %v6129_v12  ;;  %v6240_v4 = vpop.f32.mrb[43].mxu0  ;;  %v6242_v35 = vpop.f32.mrb[35].mxu1 }
 0x293   : > { %v6235_v28 = vadd.f32 %v927_v22, %v913_v29  ;;  %v1104_v25 = vmul.f32 %v1088_v39, %v6091_v47  ;;  %5425 = vtanh.f32 %v6154_v5  ;;  %v1236_v57 = vmul.f32 0.5, %v6131_v26 }
 0x294   : > { %v914_v2 = vmul.f32 %v898_v10, %v6093_v51  ;;  %5427 = vtanh.f32 %v6185_v33  ;;  %v1046_v47 = vmul.f32 0.5, %v6134_v38  ;;  %v1237_v5 = vmul.f32 0.5, %v6136_v36 }
 0x295   : > { %v6247_v0 = vadd.f32 %v1122_v9, %v1104_v25  ;;  %5429 = vtanh.f32 %v6188_v20  ;;  %v6254_v58 = vmul.f32 0.015625, %v1552_v23  ;;  %v6256_v63 = vmul.f32 0.015625, %v1558_v16  ;;  %v5420_v54 = vpop.eup %5419 }
 0x296   : > { %v6251_v56 = vadd.f32 %v921_v15, %v914_v2  ;;  %5431 = vtanh.f32 %v1235_v7  ;;  %v1047_v51 = vmul.f32 0.5, %v6156_v6  ;;  %v1238_v59 = vmul.f32 0.5, %v6158_v13 }
 0x297   : > { %5433 = vtanh.f32 %v1045_v55  ;;  %v1048_v20 = vmul.f32 0.5, %v6162_v18  ;;  %v6262_v61 = vpop.f32.mrb[36].mxu1  ;;  %v1239_v34 = vmul.f32 0.5, %v6164_v19  ;;  %v1049_v40 = vmul.f32 0.5, %v6167_v21 }
 0x298   : > { %v1559_v33 = vrot.slane %v6251_v56, 4  ;;  %5435 = vtanh.f32 %v1236_v57  ;;  %v6267_v49 = vmul.f32 0.5, %v6169_v3  ;;  %v6269_v43 = vpop.f32.mrb[37].mxu1  ;;  %v6273_v22 = vmul.f32 0.5, %v6173_v46 }
 0x299   : > { %5437 = vtanh.f32 %v1046_v47  ;;  %v6276_v48 = vmul.f32 0.5, %v6175_v41  ;;  %v6278_v9 = vpop.f32.mrb[38].mxu1  ;;  %v1073_v27 = vadd.f32 1.0, %v5420_v54  ;;  %v6281_v15 = vmul.f32 0.5, %v6193_v32 }
 0x29a   : > { %v1560_v60 = vadd.f32 %v1559_v33, %v6251_v56  ;;  %5439 = vtanh.f32 %v1237_v5  ;;  %v5422_v8 = vpop.eup %5421  ;;  %v6284_v62 = vmul.f32 0.5, %v6195_v42  ;;  %v6286_v7 = vpop.f32.mrb[39].mxu1  ;;  %v6289_v16 = vmul.f32 0.5, %v6198_v53 }
 0x29b   : > { %5441 = vtanh.f32 %v1047_v51  ;;  %6595 = vst [vmem:[#allocation33_spill] sm:$0xff] %v6286_v7  ;;  %v883_v23 = vadd.f32 1.0, %v5422_v8  ;;  %v1089_v25 = vmul.f32 0.5, %v1073_v27  ;;  %v6292_v2 = vmul.f32 0.5, %v6200_v44 }
 0x29c   : > { %v5424_v29 = vpop.eup %5423  ;;  %v1561_v39 = vrot.slane %v1560_v60, 2  ;;  %5443 = vtanh.f32 %v1238_v59 }
 0x29d   : > { %v5426_v10 = vpop.eup %5425  ;;  %v1074_v55 = vadd.f32 1.0, %v5424_v29  ;;  %5445 = vtanh.f32 %v1048_v20  ;;  %v899_v5 = vmul.f32 0.5, %v883_v23  ;;  %v1105_v54 = vmul.f32 %v1089_v25, %v6095_v52 }
 0x29e   : > { %v5428_v57 = vpop.eup %5427  ;;  %v1562_v47 = vadd.f32 %v1561_v39, %v1560_v60  ;;  %v1075_v51 = vadd.f32 1.0, %v5426_v10  ;;  %5447 = vtanh.f32 %v1239_v34  ;;  %v6597_v39 = vld [vmem:[#allocation19_spill] sm:$0xff] }
 0x29f   : > { %v5430_v33 = vpop.eup %5429  ;;  %v1090_v8 = vmul.f32 0.5, %v1074_v55  ;;  %v1266_v59 = vadd.f32 1.0, %v5428_v57  ;;  %5449 = vtanh.f32 %v1049_v40  ;;  %v915_v27 = vmul.f32 %v899_v5, %v6098_v45  ;;  %v6296_v42 = vpop.f32.mrb[40].mxu1  ;;  %v6599_v55 = vld [vmem:[#allocation20_spill] sm:$0xff] }
 0x2a0   : > { %v5432_v7 = vpop.eup %5431  ;;  %v1563_v53 = vrot.slane %v1562_v47, 1  ;;  %v1091_v29 = vmul.f32 0.5, %v1075_v51  ;;  %v1076_v20 = vadd.f32 1.0, %v5430_v33  ;;  %6596 = vst [vmem:[#allocation34_spill] sm:$0xff] %v6296_v42  ;;  %v1117_v60 = vadd.f32 %v6222_v1, %v1105_v54  ;;  %v6300_v32 = vpop.f32.mrb[41].mxu1  ;;  %v6601_v42 = vld [vmem:[#allocation21_spill] sm:$0xff] }
 0x2a1   : > { %v5434_v44 = vpop.eup %5433  ;;  %v1106_v23 = vmul.f32 %v1090_v8, %v6597_v39  ;;  %v1282_v34 = vmul.f32 0.5, %v1266_v59  ;;  %v1267_v10 = vadd.f32 1.0, %v5432_v7  ;;  %6598 = vst [vmem:[#allocation19_spill] sm:$0xff] %v6300_v32  ;;  %v929_v40 = vadd.f32 %v6235_v28, %v915_v27  ;;  %v6304_v5 = vpop.f32.mrb[42].mxu1 }
 0x2a2   : > { %v5436_v52 = vpop.eup %5435  ;;  %v1564_v25 = vadd.f32 %v1563_v53, %v1562_v47  ;;  %v1107_v57 = vmul.f32 %v1091_v29, %v6599_v55  ;;  %v1092_v45 = vmul.f32 0.5, %v1076_v20  ;;  %6600 = vst [vmem:[#allocation20_spill] sm:$0xff] %v6304_v5  ;;  %v1077_v8 = vadd.f32 1.0, %v5434_v44  ;;  %v6308_v59 = vpop.f32.mrb[43].mxu1  ;;  %v6603_v47 = vld [vmem:[#allocation22_spill] sm:$0xff] }
 0x2a3   : > { %v5438_v51 = vpop.eup %5437  ;;  %v1124_v33 = vadd.f32 %v6247_v0, %v1106_v23  ;;  %v1298_v1 = vmul.f32 %v1282_v34, %v6601_v42  ;;  %v1283_v54 = vmul.f32 0.5, %v1267_v10  ;;  %6602 = vst [vmem:[#allocation21_spill] sm:$0xff] %v6308_v59  ;;  %v1565_v32 = vrot.slane %v929_v40, 4 }
 0x2a4   : > { %v5440_v7 = vpop.eup %5439  ;;  %v1609_v39 = vmul.f32 0.015625, %v1564_v25  ;;  %v1118_v53 = vadd.f32 %v1117_v60, %v1107_v57  ;;  %v1108_v28 = vmul.f32 %v1092_v45, %v6603_v47  ;;  %v1093_v20 = vmul.f32 0.5, %v1077_v8 }
 0x2a5   : > { %v5442_v27 = vpop.eup %5441  ;;  %v1299_v29 = vmul.f32 %v1283_v54, %v6124_v31  ;;  %v1268_v55 = vadd.f32 1.0, %v5436_v52  ;;  %v1078_v5 = vadd.f32 1.0, %v5438_v51  ;;  %v1566_v44 = vadd.f32 %v1565_v32, %v929_v40 }
 0x2a6   : > { %v5444_v41 = vpop.eup %5443  ;;  %v6314_v42 = vsel %vm1627_vm1, %v1609_v39, %v6254_v58  ;;  %v1125_v0 = vadd.f32 %v1124_v33, %v1108_v28  ;;  %v1269_v23 = vadd.f32 1.0, %v5440_v7  ;;  %v1109_v10 = vmul.f32 %v1093_v20, %v6129_v12 }
 0x2a7   : > { %v5446_v34 = vpop.eup %5445  ;;  %v1284_v60 = vmul.f32 0.5, %v1268_v55  ;;  %v1094_v25 = vmul.f32 0.5, %v1078_v5  ;;  %v1079_v57 = vadd.f32 1.0, %v5442_v27  ;;  %v1567_v47 = vrot.slane %v1566_v44, 2 }
 0x2a8   : > { %v5448_v45 = vpop.eup %5447  ;;  %v1285_v31 = vmul.f32 0.5, %v1269_v23  ;;  %v1270_v54 = vadd.f32 1.0, %v5444_v41  ;;  %v1080_v52 = vadd.f32 1.0, %v5446_v34  ;;  %v1119_v8 = vadd.f32 %v1118_v53, %v1109_v10 }
 0x2a9   : > { %v5450_v51 = vpop.eup %5449  ;;  %v1300_v59 = vmul.f32 %v1284_v60, %v6131_v26  ;;  %v1110_v58 = vmul.f32 %v1094_v25, %v6134_v38  ;;  %v1095_v32 = vmul.f32 0.5, %v1079_v57  ;;  %v1568_v33 = vadd.f32 %v1567_v47, %v1566_v44  ;;  %v6607_v47 = vld [vmem:[#allocation32_spill] sm:$0xff] }
 0x2aa   : > { %v1301_v7 = vmul.f32 %v1285_v31, %v6136_v36  ;;  %v1286_v39 = vmul.f32 0.5, %v1270_v54  ;;  %v1096_v12 = vmul.f32 0.5, %v1080_v52  ;;  %v1271_v20 = vadd.f32 1.0, %v5448_v45  ;;  %v6606_v45 = vld [vmem:[#allocation25_spill] sm:$0xff]  ;;  %v4959_v52 = vld [vmem:[#allocation8 + $0x44] ss:$16 sps:$4 sm:$0xff]  }
 0x2ab   : > { %v1314_v28 = vadd.f32 %v1300_v59, %v1298_v1  ;;  %v1126_v5 = vadd.f32 %v1125_v0, %v1110_v58  ;;  %v1111_v27 = vmul.f32 %v1095_v32, %v6156_v6  ;;  %v1569_v55 = vrot.slane %v1568_v33, 1  ;;  %v4945_v59 = vld [vmem:[#allocation8] ss:$16 sps:$4 sm:$0xff]  }
 0x2ac   : > { %v1321_v41 = vadd.f32 %v1301_v7, %v1299_v29  ;;  %v1302_v23 = vmul.f32 %v1286_v39, %v6158_v13  ;;  %v1112_v53 = vmul.f32 %v1096_v12, %v6162_v18  ;;  %v1287_v34 = vmul.f32 0.5, %v1271_v20  ;;  %v4948_v18 = vld [vmem:[#allocation8 + $0x8] ss:$16 sps:$4 sm:$0xff]   ;;  %v4951_v54 = vld [vmem:[#allocation8 + $0x20] ss:$16 sps:$4 sm:$0xff]  }
 0x2ad   : > { %v1120_v26 = vadd.f32 %v1119_v8, %v1111_v27  ;;  %v1081_v38 = vadd.f32 1.0, %v5450_v51  ;;  %5451 = vtanh.f32 %v6267_v49  ;;  %v1570_v44 = vadd.f32 %v1569_v55, %v1568_v33  ;;  %v6604_v49 = vld [vmem:[#allocation30_spill] sm:$0xff]  ;;  %v4962_v51 = vld [vmem:[#allocation8 + $0x4c] ss:$16 sps:$4 sm:$0xff]   ;;  %v4957_v7 = vld [vmem:[#allocation8 + $0x40] ss:$16 sps:$4 sm:$0xff]  }
 0x2ae   : > { %v6324_v36 = vadd.f32 %v1314_v28, %v1302_v23  ;;  %v6326_v10 = vadd.f32 %v1126_v5, %v1112_v53  ;;  %5453 = vtanh.f32 %v6273_v22  ;;  %v1303_v6 = vmul.f32 %v1287_v34, %v6164_v19  ;;  %v6605_v19 = vld [vmem:[#allocation31_spill] sm:$0xff]  ;;  %v4960_v27 = vld [vmem:[#allocation8 + $0x48] ss:$16 sps:$4 sm:$0xff]   ;;  %v4965_v20 = vld [vmem:[#allocation8 + $0x64] ss:$16 sps:$4 sm:$0xff]  }
 0x2af   : > { %v1097_v1 = vmul.f32 0.5, %v1081_v38  ;;  %5455 = vtanh.f32 %v6276_v48  ;;  %v1714_v13 = vpack.c.bf16 %v929_v40, %v929_v40  ;;  %v1713_v29 = vpack.c.bf16 %v6251_v56, %v6251_v56  ;;  %v4953_v48 = vld [vmem:[#allocation8 + $0x24] ss:$16 sps:$4 sm:$0xff]   ;;  %v4956_v40 = vld [vmem:[#allocation8 + $0x2c] ss:$16 sps:$4 sm:$0xff]  }
 0x2b0   : > { %v1610_v0 = vmul.f32 0.015625, %v1570_v44  ;;  %5457 = vtanh.f32 %v6281_v15  ;;  %v1244_v60 = vmul.f32 0.5, %v6604_v49  ;;  %v6335_v25 = vadd.f32 %v1321_v41, %v1303_v6  ;;  %v4968_v53 = vld [vmem:[#allocation8 + $0x6c] ss:$16 sps:$4 sm:$0xff]  }
 0x2b1   : > { %v1113_v22 = vmul.f32 %v1097_v1, %v6167_v21  ;;  %5459 = vtanh.f32 %v6284_v62  ;;  %v1435_v57 = vmul.f32 0.5, %v6605_v19  ;;  %2132 = vmatprep.mubr.bf16.mxu0 %v1714_v13  ;;  %2173 = vmatprep.mubr.bf16.mxu1 %v1714_v13  ;;  %v1245_v15 = vmul.f32 0.5, %v6207_v17 }
 0x2b2   : > { %v6342_v56 = vsel %vm1627_vm1, %v1610_v0, %v6256_v63  ;;  %5461 = vtanh.f32 %v6289_v16  ;;  %2133 = vmatmul.mubr.bf16.vlgmr.msra.gmra.mrb[44].mxu0 %v1713_v29  ;;  %2174 = vmatmul.mubr.bf16.vlgmr.msra.gmra.mrb[44].mxu1 %v1713_v29  ;;  %v1646_v21 = vpack.c.bf16 %v6606_v45, %v6606_v45  ;;  %v1436_v31 = vmul.f32 0.5, %v6607_v47  ;;  %v4954_v63 = vld [vmem:[#allocation8 + $0x28] ss:$16 sps:$4 sm:$0xff]  }
 0x2b3   : > { %v6348_v62 = vadd.f32 %v1120_v26, %v1113_v22  ;;  %5463 = vtanh.f32 %v6292_v2  ;;  %2503 = vmatpush1.bf16.msra.mxu0 %v4945_v59  ;;  %2544 = vmatpush1.bf16.msra.mxu1 %v4948_v18  ;;  %v1246_v16 = vmul.f32 0.5, %v6218_v14  ;;  %v1437_v2 = vmul.f32 0.5, %v6220_v11 }
 0x2b4   : > { %5465 = vtanh.f32 %v1244_v60  ;;  %2534 = vmatprep.mubr.bf16.mxu0 %v1646_v21  ;;  %2575 = vmatprep.mubr.bf16.mxu1 %v1646_v21  ;;  %v1247_v58 = vmul.f32 0.5, %v6226_v24  ;;  %v1438_v32 = vmul.f32 0.5, %v6228_v30  ;;  %v1248_v33 = vmul.f32 0.5, %v6231_v37 }
 0x2b5   : > { %v1571_v8 = vrot.slane %v6348_v62, 4  ;;  %5467 = vtanh.f32 %v1435_v57  ;;  %2504 = vmatprep.subr.bf16.mxu0 %v4953_v48  ;;  %2545 = vmatprep.subr.bf16.mxu1 %v4956_v40  ;;  %v6360_v28 = vmul.f32 0.5, %v6233_v50  ;;  %v6363_v5 = vmul.f32 0.5, %v6240_v4  ;;  %v4963_v57 = vld [vmem:[#allocation8 + $0x60] ss:$16 sps:$4 sm:$0xff]  }
 0x2b6   : > { %5469 = vtanh.f32 %v1245_v15  ;;  %v6366_v23 = vmul.f32 0.5, %v6242_v35  ;;  %v6369_v26 = vmul.f32 0.5, %v6262_v61  ;;  %v6372_v6 = vmul.f32 0.5, %v6269_v43  ;;  %v4966_v48 = vld [vmem:[#allocation8 + $0x68] ss:$16 sps:$4 sm:$0xff]  }
 0x2b7   : > { %v5452_v39 = vpop.eup %5451  ;;  %v1572_v12 = vadd.f32 %v1571_v8, %v6348_v62  ;;  %5471 = vtanh.f32 %v1436_v31  ;;  %2505 = vmatpush1.bf16.msra.mxu0 %v4951_v54  ;;  %2546 = vmatpush1.bf16.msra.mxu1 %v4954_v63  ;;  %v6375_v18 = vmul.f32 0.5, %v6278_v9  ;;  %v4971_v31 = vld [vmem:[#allocation8 + $0x84] ss:$16 sps:$4 sm:$0xff]   ;;  %v4974_v54 = vld [vmem:[#allocation8 + $0x8c] ss:$16 sps:$4 sm:$0xff]  }
 0x2b8   : > { %v5454_v55 = vpop.eup %5453  ;;  %v1272_v41 = vadd.f32 1.0, %v5452_v39  ;;  %5473 = vtanh.f32 %v1246_v16  ;;  %2506 = vmatprep.subr.bf16.mxu0 %v4959_v52  ;;  %2547 = vmatprep.subr.bf16.mxu1 %v4962_v51 }
 0x2b9   : > { %v5456_v34 = vpop.eup %5455  ;;  %v1573_v38 = vrot.slane %v1572_v12, 2  ;;  %v1082_v44 = vadd.f32 1.0, %v5454_v55  ;;  %5475 = vtanh.f32 %v1437_v2 }
 0x2ba   : > { %v5458_v1 = vpop.eup %5457  ;;  %v1288_v13 = vmul.f32 0.5, %v1272_v41  ;;  %v1273_v59 = vadd.f32 1.0, %v5456_v34  ;;  %5477 = vtanh.f32 %v1247_v58 }
 0x2bb   : > { %v5460_v29 = vpop.eup %5459  ;;  %v1574_v0 = vadd.f32 %v1573_v38, %v1572_v12  ;;  %v1098_v60 = vmul.f32 0.5, %v1082_v44  ;;  %v1274_v22 = vadd.f32 1.0, %v5458_v1  ;;  %5479 = vtanh.f32 %v1438_v32  ;;  %2507 = vmatpush1.bf16.msra.mxu0 %v4957_v7  ;;  %2548 = vmatpush1.bf16.msra.mxu1 %v4960_v27  ;;  %v6608_v32 = vld [vmem:[#allocation24_spill] sm:$0xff] }
 0x2bc   : > { %v5462_v40 = vpop.eup %5461  ;;  %v1304_v15 = vmul.f32 %v1288_v13, %v6169_v3  ;;  %v1289_v45 = vmul.f32 0.5, %v1273_v59  ;;  %v1465_v21 = vadd.f32 1.0, %v5460_v29  ;;  %5481 = vtanh.f32 %v1248_v33  ;;  %2508 = vmatprep.subr.bf16.mxu0 %v4965_v20  ;;  %2549 = vmatprep.subr.bf16.mxu1 %v4968_v53  ;;  %v6609_v20 = vld [vmem:[#allocation26_spill] sm:$0xff]  ;;  %v4980_v29 = vld [vmem:[#allocation8 + $0xac] ss:$16 sps:$4 sm:$0xff]  }
 0x2bd   : > { %v5464_v63 = vpop.eup %5463  ;;  %v1575_v16 = vrot.slane %v1574_v0, 1  ;;  %v1114_v52 = vmul.f32 %v1098_v60, %v6173_v46  ;;  %v1290_v51 = vmul.f32 0.5, %v1274_v22  ;;  %v1275_v8 = vadd.f32 1.0, %v5462_v40  ;;  %v4969_v46 = vld [vmem:[#allocation8 + $0x80] ss:$16 sps:$4 sm:$0xff]  }
 0x2be   : > { %v5466_v2 = vpop.eup %5465  ;;  %v1316_v58 = vadd.f32 %v6324_v36, %v1304_v15  ;;  %v1305_v7 = vmul.f32 %v1289_v45, %v6608_v32  ;;  %v1481_v39 = vmul.f32 0.5, %v1465_v21  ;;  %v1466_v3 = vadd.f32 1.0, %v5464_v63  ;;  %v4972_v53 = vld [vmem:[#allocation8 + $0x88] ss:$16 sps:$4 sm:$0xff]   ;;  %v6610_v36 = vld [vmem:[#allocation27_spill] sm:$0xff]  ;;  %v6612_v15 = vld [vmem:[#allocation29_spill] sm:$0xff] }
 0x2bf   : > { %v5468_v12 = vpop.eup %5467  ;;  %v1576_v27 = vadd.f32 %v1575_v16, %v1574_v0  ;;  %v6382_v33 = vadd.f32 %v6326_v10, %v1114_v52  ;;  %v1306_v55 = vmul.f32 %v1290_v51, %v6609_v20  ;;  %v1291_v41 = vmul.f32 0.5, %v1275_v8  ;;  %2509 = vmatpush1.bf16.msra.mxu0 %v4963_v57  ;;  %2550 = vmatpush1.bf16.msra.mxu1 %v4966_v48  ;;  %v4977_v59 = vld [vmem:[#allocation8 + $0xa4] ss:$16 sps:$4 sm:$0xff]   ;;  %v4975_v16 = vld [vmem:[#allocation8 + $0xa0] ss:$16 sps:$4 sm:$0xff]  }
 0x2c0   : > { %v5470_v34 = vpop.eup %5469  ;;  %v1323_v38 = vadd.f32 %v6335_v25, %v1305_v7  ;;  %v1497_v44 = vmul.f32 %v1481_v39, %v6610_v36  ;;  %v1482_v1 = vmul.f32 0.5, %v1466_v3  ;;  %v1276_v13 = vadd.f32 1.0, %v5466_v2  ;;  %2510 = vmatprep.subr.bf16.mxu0 %v4971_v31  ;;  %2551 = vmatprep.subr.bf16.mxu1 %v4974_v54  ;;  %v6611_v57 = vld [vmem:[#allocation28_spill] sm:$0xff] }
 0x2c1   : > { %v5472_v10 = vpop.eup %5471  ;;  %v1611_v0 = vmul.f32 0.015625, %v1576_v27  ;;  %v1577_v60 = vrot.slane %v6382_v33, 4  ;;  %v1317_v22 = vadd.f32 %v1316_v58, %v1306_v55  ;;  %v1307_v48 = vmul.f32 %v1291_v41, %v6611_v57  ;;  %v4978_v2 = vld [vmem:[#allocation8 + $0xa8] ss:$16 sps:$4 sm:$0xff]   ;;  %v4983_v58 = vld [vmem:[#allocation8 + $0xc4] ss:$16 sps:$4 sm:$0xff]  }
 0x2c2   : > { %v5474_v40 = vpop.eup %5473  ;;  %v1498_v45 = vmul.f32 %v1482_v1, %v6612_v15  ;;  %v1292_v21 = vmul.f32 0.5, %v1276_v13  ;;  %v1467_v25 = vadd.f32 1.0, %v5468_v12  ;;  %v1277_v63 = vadd.f32 1.0, %v5470_v34  ;;  %v4986_v27 = vld [vmem:[#allocation8 + $0xcc] ss:$16 sps:$4 sm:$0xff]  }
 0x2c3   : > { %v5476_v52 = vpop.eup %5475  ;;  %v6392_v31 = vsel %vm1629_vm2, %v1611_v0, %v6314_v42  ;;  %v1578_v54 = vadd.f32 %v1577_v60, %v6382_v33  ;;  %v1324_v51 = vadd.f32 %v1323_v38, %v1307_v48  ;;  %v1468_v8 = vadd.f32 1.0, %v5472_v10  ;;  %2511 = vmatpush1.bf16.msra.mxu0 %v4969_v46  ;;  %2552 = vmatpush1.bf16.msra.mxu1 %v4972_v53 }
 0x2c4   : > { %v5478_v32 = vpop.eup %5477  ;;  %v1308_v7 = vmul.f32 %v1292_v21, %v6604_v49  ;;  %v1483_v39 = vmul.f32 0.5, %v1467_v25  ;;  %v1293_v3 = vmul.f32 0.5, %v1277_v63  ;;  %v1278_v12 = vadd.f32 1.0, %v5474_v40  ;;  %2512 = vmatprep.subr.bf16.mxu0 %v4977_v59  ;;  %2553 = vmatprep.subr.bf16.mxu1 %v4980_v29  ;;  %v4981_v59 = vld [vmem:[#allocation8 + $0xc0] ss:$16 sps:$4 sm:$0xff]  }
 0x2c5   : > { %v5480_v20 = vpop.eup %5479  ;;  %v1579_v42 = vrot.slane %v1578_v54, 2  ;;  %v1484_v55 = vmul.f32 0.5, %v1468_v8  ;;  %v1469_v41 = vadd.f32 1.0, %v5476_v52  ;;  %v1279_v34 = vadd.f32 1.0, %v5478_v32  ;;  %v4984_v29 = vld [vmem:[#allocation8 + $0xc8] ss:$16 sps:$4 sm:$0xff]  }
 0x2c6   : > { %v5482_v38 = vpop.eup %5481  ;;  %v1318_v36 = vadd.f32 %v1317_v22, %v1308_v7  ;;  %v1499_v46 = vmul.f32 %v1483_v39, %v6605_v19  ;;  %v1309_v53 = vmul.f32 %v1293_v3, %v6207_v17  ;;  %v1294_v1 = vmul.f32 0.5, %v1278_v12  ;;  %v4989_v19 = vld [vmem:[#allocation8 + $0xe4] ss:$16 sps:$4 sm:$0xff]   ;;  %v4992_v22 = vld [vmem:[#allocation8 + $0xec] ss:$16 sps:$4 sm:$0xff]  }
 0x2c7   : > { %v1580_v13 = vadd.f32 %v1579_v42, %v1578_v54  ;;  %v1500_v49 = vmul.f32 %v1484_v55, %v6607_v47  ;;  %v1485_v10 = vmul.f32 0.5, %v1469_v41  ;;  %v1295_v0 = vmul.f32 0.5, %v1279_v34  ;;  %2513 = vmatpush1.bf16.msra.mxu0 %v4975_v16  ;;  %2554 = vmatpush1.bf16.msra.mxu1 %v4978_v2  ;;  %v4987_v54 = vld [vmem:[#allocation8 + $0xe0] ss:$16 sps:$4 sm:$0xff]   ;;  %v4998_v2 = vld [vmem:[#allocation8 + $0x10c] ss:$16 sps:$4 sm:$0xff]  }
 0x2c8   : > { %v1513_v60 = vadd.f32 %v1499_v46, %v1497_v44  ;;  %v1325_v57 = vadd.f32 %v1324_v51, %v1309_v53  ;;  %v1310_v48 = vmul.f32 %v1294_v1, %v6218_v14  ;;  %v1470_v40 = vadd.f32 1.0, %v5480_v20  ;;  %2514 = vmatprep.subr.bf16.mxu0 %v4983_v58  ;;  %2555 = vmatprep.subr.bf16.mxu1 %v4986_v27  ;;  %v6614_v32 = vld [vmem:[#allocation34_spill] sm:$0xff]  ;;  %v6616_v12 = vld [vmem:[#allocation20_spill] sm:$0xff]  ;;  %v5004_v41 = vld [vmem:[#allocation8 + $0x12c] ss:$16 sps:$4 sm:$0xff]  }
 0x2c9   : > { %v1581_v17 = vrot.slane %v1580_v13, 1  ;;  %v1520_v15 = vadd.f32 %v1500_v49, %v1498_v45  ;;  %v1501_v21 = vmul.f32 %v1485_v10, %v6220_v11  ;;  %v1311_v47 = vmul.f32 %v1295_v0, %v6226_v24  ;;  %v4990_v45 = vld [vmem:[#allocation8 + $0xe8] ss:$16 sps:$4 sm:$0xff]   ;;  %v6613_v24 = vld [vmem:[#allocation33_spill] sm:$0xff]  ;;  %v5007_v46 = vld [vmem:[#allocation8 + $0x144] ss:$16 sps:$4 sm:$0xff]  }
 0x2ca   : > { %v1319_v25 = vadd.f32 %v1318_v36, %v1310_v48  ;;  %v1486_v63 = vmul.f32 0.5, %v1470_v40  ;;  %v1280_v16 = vadd.f32 1.0, %v5482_v38  ;;  %5483 = vtanh.f32 %v6360_v28  ;;  %v4995_v28 = vld [vmem:[#allocation8 + $0x104] ss:$16 sps:$4 sm:$0xff]   ;;  %v4996_v20 = vld [vmem:[#allocation8 + $0x108] ss:$16 sps:$4 sm:$0xff]  }
 0x2cb   : > { %v1582_v44 = vadd.f32 %v1581_v17, %v1580_v13  ;;  %v6403_v52 = vadd.f32 %v1513_v60, %v1501_v21  ;;  %v6405_v14 = vadd.f32 %v1325_v57, %v1311_v47  ;;  %5485 = vtanh.f32 %v6363_v5  ;;  %2515 = vmatpush1.bf16.msra.mxu0 %v4981_v59  ;;  %2556 = vmatpush1.bf16.msra.mxu1 %v4984_v29  ;;  %v5002_v34 = vld [vmem:[#allocation8 + $0x128] ss:$16 sps:$4 sm:$0xff]   ;;  %v5010_v53 = vld [vmem:[#allocation8 + $0x14c] ss:$16 sps:$4 sm:$0xff]   ;;  %v5005_v57 = vld [vmem:[#allocation8 + $0x140] ss:$16 sps:$4 sm:$0xff]  }
 0x2cc   : > { %v1502_v11 = vmul.f32 %v1486_v63, %v6228_v30  ;;  %v1296_v51 = vmul.f32 0.5, %v1280_v16  ;;  %5487 = vtanh.f32 %v6366_v23  ;;  %v1444_v8 = vmul.f32 0.5, %v6613_v24  ;;  %2516 = vmatprep.subr.bf16.mxu0 %v4989_v19  ;;  %2557 = vmatprep.subr.bf16.mxu1 %v4992_v22  ;;  %v6615_v30 = vld [vmem:[#allocation19_spill] sm:$0xff]  ;;  %v5008_v48 = vld [vmem:[#allocation8 + $0x148] ss:$16 sps:$4 sm:$0xff]  }
 0x2cd   : > { %v1612_v58 = vmul.f32 0.015625, %v1582_v44  ;;  %5489 = vtanh.f32 %v6369_v26  ;;  %v1445_v5 = vmul.f32 0.5, %v6614_v32  ;;  %v1446_v3 = vmul.f32 0.5, %v6615_v30  ;;  %v4993_v26 = vld [vmem:[#allocation8 + $0x100] ss:$16 sps:$4 sm:$0xff]  }
 0x2ce   : > { %v6413_v7 = vadd.f32 %v1520_v15, %v1502_v11  ;;  %v1312_v39 = vmul.f32 %v1296_v51, %v6231_v37  ;;  %5491 = vtanh.f32 %v6372_v6  ;;  %v1447_v27 = vmul.f32 0.5, %v6616_v12  ;;  %v6617_v37 = vld [vmem:[#allocation21_spill] sm:$0xff]  ;;  %v5001_v6 = vld [vmem:[#allocation8 + $0x124] ss:$16 sps:$4 sm:$0xff]  }
 0x2cf   : > { %v6420_v23 = vsel %vm1629_vm2, %v1612_v58, %v6342_v56  ;;  %5493 = vtanh.f32 %v6375_v18  ;;  %2517 = vmatpush1.bf16.msra.mxu0 %v4987_v54  ;;  %2558 = vmatpush1.bf16.msra.mxu1 %v4990_v45  ;;  %v1448_v55 = vmul.f32 0.5, %v6617_v37  ;;  %v4999_v18 = vld [vmem:[#allocation8 + $0x120] ss:$16 sps:$4 sm:$0xff]   ;;  %v5013_v15 = vld [vmem:[#allocation8 + $0x164] ss:$16 sps:$4 sm:$0xff]  }
 0x2d0   : > { %v6424_v42 = vadd.f32 %v1319_v25, %v1312_v39  ;;  %5495 = vtanh.f32 %v1444_v8  ;;  %2518 = vmatprep.subr.bf16.mxu0 %v4995_v28  ;;  %2559 = vmatprep.subr.bf16.mxu1 %v4998_v2  ;;  %v5016_v21 = vld [vmem:[#allocation8 + $0x16c] ss:$16 sps:$4 sm:$0xff]   ;;  %v5011_v39 = vld [vmem:[#allocation8 + $0x160] ss:$16 sps:$4 sm:$0xff]  }
 0x2d1   : > { %5497 = vtanh.f32 %v1445_v5 }
 0x2d2   : > { %v1583_v56 = vrot.slane %v6424_v42, 4  ;;  %5499 = vtanh.f32 %v1446_v3  ;;  %v5014_v3 = vld [vmem:[#allocation8 + $0x168] ss:$16 sps:$4 sm:$0xff]  }
 0x2d3   : > { %5501 = vtanh.f32 %v1447_v27  ;;  %2519 = vmatpush1.bf16.msra.mxu0 %v4993_v26  ;;  %2560 = vmatpush1.bf16.msra.mxu1 %v4996_v20 }
 0x2d4   : > { %v5484_v38 = vpop.eup %5483  ;;  %v1584_v36 = vadd.f32 %v1583_v56, %v6424_v42  ;;  %5503 = vtanh.f32 %v1448_v55  ;;  %2520 = vmatprep.subr.bf16.mxu0 %v5001_v6  ;;  %2561 = vmatprep.subr.bf16.mxu1 %v5004_v41  ;;  %v5019_v55 = vld [vmem:[#allocation8 + $0x184] ss:$16 sps:$4 sm:$0xff]  }
 0x2d5   : > { %v5486_v1 = vpop.eup %5485  ;;  %v1471_v13 = vadd.f32 1.0, %v5484_v38 }
 0x2d6   : > { %v5488_v49 = vpop.eup %5487  ;;  %v1585_v10 = vrot.slane %v1584_v36, 2  ;;  %v1281_v0 = vadd.f32 1.0, %v5486_v1 }
 0x2d7   : > { %v5490_v59 = vpop.eup %5489  ;;  %v1487_v29 = vmul.f32 0.5, %v1471_v13  ;;  %v1472_v60 = vadd.f32 1.0, %v5488_v49  ;;  %2521 = vmatpush1.bf16.msra.mxu0 %v4999_v18  ;;  %2562 = vmatpush1.bf16.msra.mxu1 %v5002_v34  ;;  %v5017_v49 = vld [vmem:[#allocation8 + $0x180] ss:$16 sps:$4 sm:$0xff]  }
 0x2d8   : > { %v5492_v40 = vpop.eup %5491  ;;  %v1586_v19 = vadd.f32 %v1585_v10, %v1584_v36  ;;  %v1297_v22 = vmul.f32 0.5, %v1281_v0  ;;  %v1473_v17 = vadd.f32 1.0, %v5490_v59  ;;  %2522 = vmatprep.subr.bf16.mxu0 %v5007_v46  ;;  %2563 = vmatprep.subr.bf16.mxu1 %v5010_v53 }
 0x2d9   : > { %v5494_v47 = vpop.eup %5493  ;;  %v1503_v25 = vmul.f32 %v1487_v29, %v6233_v50  ;;  %v1488_v63 = vmul.f32 0.5, %v1472_v60  ;;  %v1474_v16 = vadd.f32 1.0, %v5492_v40  ;;  %v5028_v29 = vld [vmem:[#allocation8 + $0x1ac] ss:$16 sps:$4 sm:$0xff]  }
 0x2da   : > { %v5496_v44 = vpop.eup %5495  ;;  %v1587_v54 = vrot.slane %v1586_v19, 1  ;;  %v1313_v45 = vmul.f32 %v1297_v22, %v6240_v4  ;;  %v1489_v11 = vmul.f32 0.5, %v1473_v17  ;;  %v1475_v51 = vadd.f32 1.0, %v5494_v47 }
 0x2db   : > { %v5498_v8 = vpop.eup %5497  ;;  %v1515_v28 = vadd.f32 %v6403_v52, %v1503_v25  ;;  %v1504_v2 = vmul.f32 %v1488_v63, %v6242_v35  ;;  %v1490_v58 = vmul.f32 0.5, %v1474_v16  ;;  %v1476_v5 = vadd.f32 1.0, %v5496_v44  ;;  %2523 = vmatpush1.bf16.msra.mxu0 %v5005_v57  ;;  %2564 = vmatpush1.bf16.msra.mxu1 %v5008_v48  ;;  %v5022_v52 = vld [vmem:[#allocation8 + $0x18c] ss:$16 sps:$4 sm:$0xff]   ;;  %v5031_v63 = vld [vmem:[#allocation8 + $0x1c4] ss:$16 sps:$4 sm:$0xff]  }
 0x2dc   : > { %v5500_v50 = vpop.eup %5499  ;;  %v1588_v27 = vadd.f32 %v1587_v54, %v1586_v19  ;;  %v6434_v26 = vadd.f32 %v6405_v14, %v1313_v45  ;;  %v1505_v4 = vmul.f32 %v1489_v11, %v6262_v61  ;;  %v1491_v20 = vmul.f32 0.5, %v1475_v51  ;;  %2524 = vmatprep.subr.bf16.mxu0 %v5013_v15  ;;  %2565 = vmatprep.subr.bf16.mxu1 %v5016_v21  ;;  %v5023_v15 = vld [vmem:[#allocation8 + $0x1a0] ss:$16 sps:$4 sm:$0xff]   ;;  %v5026_v21 = vld [vmem:[#allocation8 + $0x1a8] ss:$16 sps:$4 sm:$0xff]  }
 0x2dd   : > { %v5502_v6 = vpop.eup %5501  ;;  %v1522_v35 = vadd.f32 %v6413_v7, %v1504_v2  ;;  %v1506_v41 = vmul.f32 %v1490_v58, %v6269_v43  ;;  %v1492_v56 = vmul.f32 0.5, %v1476_v5  ;;  %v1477_v18 = vadd.f32 1.0, %v5498_v8  ;;  %v5020_v7 = vld [vmem:[#allocation8 + $0x188] ss:$16 sps:$4 sm:$0xff]   ;;  %v5034_v16 = vld [vmem:[#allocation8 + $0x1cc] ss:$16 sps:$4 sm:$0xff]  }
 0x2de   : > { %v5504_v34 = vpop.eup %5503  ;;  %v1613_v38 = vmul.f32 0.015625, %v1588_v27  ;;  %v1589_v36 = vrot.slane %v6434_v26, 4  ;;  %v1516_v14 = vadd.f32 %v1515_v28, %v1505_v4  ;;  %v1507_v46 = vmul.f32 %v1491_v20, %v6278_v9  ;;  %v5025_v9 = vld [vmem:[#allocation8 + $0x1a4] ss:$16 sps:$4 sm:$0xff]   ;;  %v5032_v51 = vld [vmem:[#allocation8 + $0x1c8] ss:$16 sps:$4 sm:$0xff]  }
 0x2df   : > { %v1523_v61 = vadd.f32 %v1522_v35, %v1506_v41  ;;  %v1508_v53 = vmul.f32 %v1492_v56, %v6613_v24  ;;  %v1493_v1 = vmul.f32 0.5, %v1477_v18  ;;  %v1478_v13 = vadd.f32 1.0, %v5500_v50  ;;  %2525 = vmatpush1.bf16.msra.mxu0 %v5011_v39  ;;  %2566 = vmatpush1.bf16.msra.mxu1 %v5014_v3  ;;  %v5040_v2 = vld [vmem:[#allocation8 + $0x1ec] ss:$16 sps:$4 sm:$0xff]   ;;  %v5035_v3 = vld [vmem:[#allocation8 + $0x1e0] ss:$16 sps:$4 sm:$0xff]  }
 0x2e0   : > { %v6444_v43 = vsel %vm1631_vm3, %v1613_v38, %v6392_v31  ;;  %v1590_v10 = vadd.f32 %v1589_v36, %v6434_v26  ;;  %v1517_v0 = vadd.f32 %v1516_v14, %v1507_v46  ;;  %v1479_v59 = vadd.f32 1.0, %v5502_v6  ;;  %2526 = vmatprep.subr.bf16.mxu0 %v5019_v55  ;;  %2567 = vmatprep.subr.bf16.mxu1 %v5022_v52  ;;  %v5038_v50 = vld [vmem:[#allocation8 + $0x1e8] ss:$16 sps:$4 sm:$0xff]   ;;  %v5043_v20 = vld [vmem:[#allocation8 + $0x404] ss:$16 sps:$4 sm:$0xff]   ;;  %v6618_v18 = vld [vmem:[#allocation23_spill] sm:$0xff] }
 0x2e1   : > { %v1524_v60 = vadd.f32 %v1523_v61, %v1508_v53  ;;  %v1509_v24 = vmul.f32 %v1493_v1, %v6614_v32  ;;  %v1494_v57 = vmul.f32 0.5, %v1478_v13  ;;  %v1480_v48 = vadd.f32 1.0, %v5504_v34  ;;  %v5046_v55 = vld [vmem:[#allocation8 + $0x40c] ss:$16 sps:$4 sm:$0xff]   ;;  %v5041_v41 = vld [vmem:[#allocation8 + $0x400] ss:$16 sps:$4 sm:$0xff]  }
 0x2e2   : > { %v1591_v40 = vrot.slane %v1590_v10, 2  ;;  %v1495_v19 = vmul.f32 0.5, %v1479_v59  ;;  %v1645_v34 = vpack.c.bf16 %v6618_v18, %v6618_v18  ;;  %v5044_v38 = vld [vmem:[#allocation8 + $0x408] ss:$16 sps:$4 sm:$0xff]   ;;  %v2587_v36 = vpack.c.bf16 %v6382_v33, %v6382_v33  ;;  %v5049_v14 = vld [vmem:[#allocation8 + $0x424] ss:$16 sps:$4 sm:$0xff]  }
 0x2e3   : > { %v1518_v22 = vadd.f32 %v1517_v0, %v1509_v24  ;;  %v1510_v17 = vmul.f32 %v1494_v57, %v6615_v30  ;;  %v1496_v31 = vmul.f32 0.5, %v1480_v48  ;;  %2527 = vmatpush1.bf16.msra.mxu0 %v5017_v49  ;;  %2568 = vmatpush1.bf16.msra.mxu1 %v5020_v7  ;;  %v5029_v30 = vld [vmem:[#allocation8 + $0x1c0] ss:$16 sps:$4 sm:$0xff]   ;;  %v5052_v46 = vld [vmem:[#allocation8 + $0x42c] ss:$16 sps:$4 sm:$0xff]  }
 0x2e4   : > { %v1592_v47 = vadd.f32 %v1591_v40, %v1590_v10  ;;  %v1511_v25 = vmul.f32 %v1495_v19, %v6616_v12  ;;  %2528 = vmatprep.subr.bf16.mxu0 %v5025_v9  ;;  %2569 = vmatprep.subr.bf16.mxu1 %v5028_v29  ;;  %v5037_v12 = vld [vmem:[#allocation8 + $0x1e4] ss:$16 sps:$4 sm:$0xff]   ;;  %v5047_v1 = vld [vmem:[#allocation8 + $0x420] ss:$16 sps:$4 sm:$0xff]   ;;  %v5050_v49 = vld [vmem:[#allocation8 + $0x428] ss:$16 sps:$4 sm:$0xff]  }
 0x2e5   : > { %v1525_v32 = vadd.f32 %v1524_v60, %v1510_v17  ;;  %v1512_v44 = vmul.f32 %v1496_v31, %v6617_v37  ;;  %v5055_v7 = vld [vmem:[#allocation8 + $0x444] ss:$16 sps:$4 sm:$0xff]   ;;  %v5058_v10 = vld [vmem:[#allocation8 + $0x44c] ss:$16 sps:$4 sm:$0xff]   ;;  %v5053_v9 = vld [vmem:[#allocation8 + $0x440] ss:$16 sps:$4 sm:$0xff]  }
 0x2e6   : > { %v1593_v54 = vrot.slane %v1592_v47, 1  ;;  %v6451_v45 = vadd.f32 %v1518_v22, %v1511_v25  ;;  %v5056_v29 = vld [vmem:[#allocation8 + $0x448] ss:$16 sps:$4 sm:$0xff]   ;;  %v5061_v60 = vld [vmem:[#allocation8 + $0x464] ss:$16 sps:$4 sm:$0xff]  }
 0x2e7   : > { %v6453_v11 = vadd.f32 %v1525_v32, %v1512_v44  ;;  %2529 = vmatpush1.bf16.msra.mxu0 %v5023_v15  ;;  %2570 = vmatpush1.bf16.msra.mxu1 %v5026_v21  ;;  %v5064_v24 = vld [vmem:[#allocation8 + $0x46c] ss:$16 sps:$4 sm:$0xff]   ;;  %v5059_v57 = vld [vmem:[#allocation8 + $0x460] ss:$16 sps:$4 sm:$0xff]   ;;  %v5062_v48 = vld [vmem:[#allocation8 + $0x468] ss:$16 sps:$4 sm:$0xff]  }
 0x2e8   : > { %v1594_v8 = vadd.f32 %v1593_v54, %v1592_v47  ;;  %v1595_v28 = vrot.slane %v6451_v45, 4  ;;  %2530 = vmatprep.subr.bf16.mxu0 %v5031_v63  ;;  %2571 = vmatprep.subr.bf16.mxu1 %v5034_v16  ;;  %v5067_v40 = vld [vmem:[#allocation8 + $0x484] ss:$16 sps:$4 sm:$0xff]   ;;  %v5065_v19 = vld [vmem:[#allocation8 + $0x480] ss:$16 sps:$4 sm:$0xff]  }
 0x2e9   : > { %v1601_v58 = vrot.slane %v6453_v11, 4  ;;  %v5068_v22 = vld [vmem:[#allocation8 + $0x488] ss:$16 sps:$4 sm:$0xff]   ;;  %v5073_v17 = vld [vmem:[#allocation8 + $0x4a4] ss:$16 sps:$4 sm:$0xff]  }
 0x2ea   : > { %v1614_v5 = vmul.f32 0.015625, %v1594_v8  ;;  %v1596_v37 = vadd.f32 %v1595_v28, %v6451_v45  ;;  %v5076_v31 = vld [vmem:[#allocation8 + $0x4ac] ss:$16 sps:$4 sm:$0xff]   ;;  %v5071_v15 = vld [vmem:[#allocation8 + $0x4a0] ss:$16 sps:$4 sm:$0xff]  }
 0x2eb   : > { %v1602_v39 = vadd.f32 %v1601_v58, %v6453_v11  ;;  %2531 = vmatpush1.bf16.msra.mxu0 %v5029_v30  ;;  %2572 = vmatpush1.bf16.msra.mxu1 %v5032_v51  ;;  %v5074_v21 = vld [vmem:[#allocation8 + $0x4a8] ss:$16 sps:$4 sm:$0xff]   ;;  %v5079_v47 = vld [vmem:[#allocation8 + $0x4c4] ss:$16 sps:$4 sm:$0xff]   ;;  %v5082_v25 = vld [vmem:[#allocation8 + $0x4cc] ss:$16 sps:$4 sm:$0xff]  }
 0x2ec   : > { %v1637_v27 = vsel %vm1631_vm3, %v1614_v5, %v6420_v23  ;;  %v1597_v4 = vrot.slane %v1596_v37, 2  ;;  %2532 = vmatprep.subr.bf16.mxu0 %v5037_v12  ;;  %2573 = vmatprep.subr.bf16.mxu1 %v5040_v2  ;;  %v5077_v63 = vld [vmem:[#allocation8 + $0x4c0] ss:$16 sps:$4 sm:$0xff]   ;;  %v5080_v16 = vld [vmem:[#allocation8 + $0x4c8] ss:$16 sps:$4 sm:$0xff]  }
 0x2ed   : > { %v1603_v52 = vrot.slane %v1602_v39, 2  ;;  %v5085_v32 = vld [vmem:[#allocation8 + $0x4e4] ss:$16 sps:$4 sm:$0xff]   ;;  %v5088_v44 = vld [vmem:[#allocation8 + $0x4ec] ss:$16 sps:$4 sm:$0xff]  }
 0x2ee   : > { %v1598_v6 = vadd.f32 %v1597_v4, %v1596_v37  ;;  %v5083_v54 = vld [vmem:[#allocation8 + $0x4e0] ss:$16 sps:$4 sm:$0xff]   ;;  %v5086_v30 = vld [vmem:[#allocation8 + $0x4e8] ss:$16 sps:$4 sm:$0xff]   ;;  %v5091_v51 = vld [vmem:[#allocation8 + $0x504] ss:$16 sps:$4 sm:$0xff]  }
 0x2ef   : > { %v1604_v35 = vadd.f32 %v1603_v52, %v1602_v39  ;;  %2533 = vmatpush1.bf16.msra.mxu0 %v5035_v3  ;;  %2574 = vmatpush1.bf16.msra.mxu1 %v5038_v50  ;;  %v5094_v8 = vld [vmem:[#allocation8 + $0x50c] ss:$16 sps:$4 sm:$0xff]   ;;  %v5089_v28 = vld [vmem:[#allocation8 + $0x500] ss:$16 sps:$4 sm:$0xff]   ;;  %v5092_v12 = vld [vmem:[#allocation8 + $0x508] ss:$16 sps:$4 sm:$0xff]  }
 0x2f0   : > { %v1599_v56 = vrot.slane %v1598_v6, 1  ;;  %2973 = vmatprep.subr.bf16.mxu0 %v5043_v20  ;;  %3014 = vmatprep.subr.bf16.mxu1 %v5046_v55  ;;  %v5097_v2 = vld [vmem:[#allocation8 + $0x524] ss:$16 sps:$4 sm:$0xff]   ;;  %v5100_v58 = vld [vmem:[#allocation8 + $0x52c] ss:$16 sps:$4 sm:$0xff]  }
 0x2f1   : > { %v1605_v23 = vrot.slane %v1604_v35, 1  ;;  %v5095_v5 = vld [vmem:[#allocation8 + $0x520] ss:$16 sps:$4 sm:$0xff]   ;;  %v5098_v37 = vld [vmem:[#allocation8 + $0x528] ss:$16 sps:$4 sm:$0xff]  }
 0x2f2   : > { %v1600_v61 = vadd.f32 %v1599_v56, %v1598_v6  ;;  %2535 = vmatmul.mubr.bf16.vlgmr.msra.gmra.mrb[44].mxu0 %v1645_v34  ;;  %2576 = vmatmul.mubr.bf16.vlgmr.msra.gmra.mrb[44].mxu1 %v1645_v34  ;;  %v5103_v39 = vld [vmem:[#allocation8 + $0x544] ss:$16 sps:$4 sm:$0xff]   ;;  %v5106_v3 = vld [vmem:[#allocation8 + $0x54c] ss:$16 sps:$4 sm:$0xff]   ;;  %v5101_v50 = vld [vmem:[#allocation8 + $0x540] ss:$16 sps:$4 sm:$0xff]  }
 0x2f3   : > { %v1606_v53 = vadd.f32 %v1605_v23, %v1604_v35  ;;  %2974 = vmatpush1.bf16.msra.mxu0 %v5041_v41  ;;  %3005 = vmatprep.mubr.bf16.mxu0 %v2587_v36  ;;  %v5109_v4 = vld [vmem:[#allocation8 + $0x564] ss:$16 sps:$4 sm:$0xff]   ;;  %v5112_v20 = vld [vmem:[#allocation8 + $0x56c] ss:$16 sps:$4 sm:$0xff]   ;;  %v5107_v55 = vld [vmem:[#allocation8 + $0x560] ss:$16 sps:$4 sm:$0xff]  }
 0x2f4   : > { %v1615_v13 = vmul.f32 0.015625, %v1600_v61  ;;  %3015 = vmatpush1.bf16.msra.mxu1 %v5044_v38  ;;  %3046 = vmatprep.mubr.bf16.mxu1 %v2587_v36  ;;  %v5110_v52 = vld [vmem:[#allocation8 + $0x568] ss:$16 sps:$4 sm:$0xff]   ;;  %v5115_v6 = vld [vmem:[#allocation8 + $0x584] ss:$16 sps:$4 sm:$0xff]  }
 0x2f5   : > { %v1616_v33 = vmul.f32 0.015625, %v1606_v53  ;;  %2975 = vmatprep.subr.bf16.mxu0 %v5049_v14  ;;  %3016 = vmatprep.subr.bf16.mxu1 %v5052_v46  ;;  %v5118_v35 = vld [vmem:[#allocation8 + $0x58c] ss:$16 sps:$4 sm:$0xff]   ;;  %v5113_v41 = vld [vmem:[#allocation8 + $0x580] ss:$16 sps:$4 sm:$0xff]  }
 0x2f6   : > { %v1634_v0 = vsel %vm1633_vm4, %v1615_v13, %v6444_v43  ;;  %v5070_v43 = vld [vmem:[#allocation8 + $0x48c] ss:$16 sps:$4 sm:$0xff]   ;;  %v5116_v56 = vld [vmem:[#allocation8 + $0x588] ss:$16 sps:$4 sm:$0xff]   ;;  %v5121_v18 = vld [vmem:[#allocation8 + $0x5a4] ss:$16 sps:$4 sm:$0xff]  }
 0x2f7   : > { %1641 = vst [vmem:[%s347_s20] sm:$0x1f] %v1634_v0  ;;  %v1638_v59 = vsel %vm1633_vm4, %v1616_v33, %v1637_v27  ;;  %2976 = vmatpush1.bf16.msra.mxu0 %v5047_v1  ;;  %v5104_v27 = vld [vmem:[#allocation8 + $0x548] ss:$16 sps:$4 sm:$0xff]   ;;  %v5124_v34 = vld [vmem:[#allocation8 + $0x5ac] ss:$16 sps:$4 sm:$0xff]   ;;  %v2586_v0 = vpack.c.bf16 %v6348_v62, %v6348_v62 }
 0x2f8   : > { %1642 = vst [vmem:[%s347_s20 + $0x8] sm:$0x1f] %v1638_v59  ;;  %3017 = vmatpush1.bf16.msra.mxu1 %v5050_v49  ;;  %2977 = vmatprep.subr.bf16.mxu0 %v5055_v7  ;;  %v5119_v38 = vld [vmem:[#allocation8 + $0x5a0] ss:$16 sps:$4 sm:$0xff]   ;;  %v5122_v23 = vld [vmem:[#allocation8 + $0x5a8] ss:$16 sps:$4 sm:$0xff]  }
 0x2f9   : > { %3018 = vmatprep.subr.bf16.mxu1 %v5058_v10  ;;  %v5127_v36 = vld [vmem:[#allocation8 + $0x5c4] ss:$16 sps:$4 sm:$0xff]   ;;  %v5130_v14 = vld [vmem:[#allocation8 + $0x5cc] ss:$16 sps:$4 sm:$0xff]   ;;  %v5125_v46 = vld [vmem:[#allocation8 + $0x5c0] ss:$16 sps:$4 sm:$0xff]  }
 0x2fa   : > { %v5128_v61 = vld [vmem:[#allocation8 + $0x5c8] ss:$16 sps:$4 sm:$0xff]   ;;  %v5133_v53 = vld [vmem:[#allocation8 + $0x5e4] ss:$16 sps:$4 sm:$0xff]   ;;  %v5136_v1 = vld [vmem:[#allocation8 + $0x5ec] ss:$16 sps:$4 sm:$0xff]  }
 0x2fb   : > { %2978 = vmatpush1.bf16.msra.mxu0 %v5053_v9  ;;  %v5131_v13 = vld [vmem:[#allocation8 + $0x5e0] ss:$16 sps:$4 sm:$0xff]   ;;  %v5134_v49 = vld [vmem:[#allocation8 + $0x5e8] ss:$16 sps:$4 sm:$0xff]   ;;  %v5139_v7 = vld [vmem:[#allocation8 + $0x604] ss:$16 sps:$4 sm:$0xff]  }
 0x2fc   : > { %3019 = vmatpush1.bf16.msra.mxu1 %v5056_v29  ;;  %2979 = vmatprep.subr.bf16.mxu0 %v5061_v60  ;;  %v5142_v33 = vld [vmem:[#allocation8 + $0x60c] ss:$16 sps:$4 sm:$0xff]   ;;  %v5137_v10 = vld [vmem:[#allocation8 + $0x600] ss:$16 sps:$4 sm:$0xff]   ;;  %v5140_v59 = vld [vmem:[#allocation8 + $0x608] ss:$16 sps:$4 sm:$0xff]   ;;  %v3062_v29 = vpack.c.bf16 %v6434_v26, %v6434_v26 }
 0x2fd   : > { %3020 = vmatprep.subr.bf16.mxu1 %v5064_v24  ;;  %v5145_v9 = vld [vmem:[#allocation8 + $0x624] ss:$16 sps:$4 sm:$0xff]   ;;  %v5148_v60 = vld [vmem:[#allocation8 + $0x62c] ss:$16 sps:$4 sm:$0xff]   ;;  %v5143_v24 = vld [vmem:[#allocation8 + $0x620] ss:$16 sps:$4 sm:$0xff]  }
 0x2fe   : > { %v5149_v62 = vld [vmem:[#allocation8 + $0x640] ss:$16 sps:$4 sm:$0xff]   ;;  %v5160_v26 = vld [vmem:[#allocation8 + $0x66c] ss:$16 sps:$4 sm:$0xff]  }
 0x2ff   : > { %2980 = vmatpush1.bf16.msra.mxu0 %v5059_v57  ;;  %v5146_v57 = vld [vmem:[#allocation8 + $0x628] ss:$16 sps:$4 sm:$0xff]  }
 0x300   : > { %3021 = vmatpush1.bf16.msra.mxu1 %v5062_v48  ;;  %2981 = vmatprep.subr.bf16.mxu0 %v5067_v40  ;;  %v5151_v48 = vld [vmem:[#allocation8 + $0x644] ss:$16 sps:$4 sm:$0xff]   ;;  %v5154_v40 = vld [vmem:[#allocation8 + $0x64c] ss:$16 sps:$4 sm:$0xff]  }
 0x301   : > { %3022 = vmatprep.subr.bf16.mxu1 %v5070_v43  ;;  %v5152_v43 = vld [vmem:[#allocation8 + $0x648] ss:$16 sps:$4 sm:$0xff]  }
 0x303   : > { %2982 = vmatpush1.bf16.msra.mxu0 %v5065_v19  ;;  %v5157_v19 = vld [vmem:[#allocation8 + $0x664] ss:$16 sps:$4 sm:$0xff]  }
 0x304   : > { %3023 = vmatpush1.bf16.msra.mxu1 %v5068_v22  ;;  %2983 = vmatprep.subr.bf16.mxu0 %v5073_v17  ;;  %v5155_v22 = vld [vmem:[#allocation8 + $0x660] ss:$16 sps:$4 sm:$0xff]   ;;  %v5158_v17 = vld [vmem:[#allocation8 + $0x668] ss:$16 sps:$4 sm:$0xff]  }
 0x305   : > { %3024 = vmatprep.subr.bf16.mxu1 %v5076_v31  ;;  %v5163_v31 = vld [vmem:[#allocation8 + $0x684] ss:$16 sps:$4 sm:$0xff]  }
 0x307   : > { %2984 = vmatpush1.bf16.msra.mxu0 %v5071_v15  ;;  %v5166_v15 = vld [vmem:[#allocation8 + $0x68c] ss:$16 sps:$4 sm:$0xff]  }
 0x308   : > { %3025 = vmatpush1.bf16.msra.mxu1 %v5074_v21  ;;  %2985 = vmatprep.subr.bf16.mxu0 %v5079_v47  ;;  %v5161_v21 = vld [vmem:[#allocation8 + $0x680] ss:$16 sps:$4 sm:$0xff]   ;;  %v5164_v47 = vld [vmem:[#allocation8 + $0x688] ss:$16 sps:$4 sm:$0xff]  }
 0x309   : > { %3026 = vmatprep.subr.bf16.mxu1 %v5082_v25  ;;  %v5169_v25 = vld [vmem:[#allocation8 + $0x6a4] ss:$16 sps:$4 sm:$0xff]  }
 0x30b   : > { %2986 = vmatpush1.bf16.msra.mxu0 %v5077_v63  ;;  %v5172_v63 = vld [vmem:[#allocation8 + $0x6ac] ss:$16 sps:$4 sm:$0xff]  }
 0x30c   : > { %3027 = vmatpush1.bf16.msra.mxu1 %v5080_v16  ;;  %2987 = vmatprep.subr.bf16.mxu0 %v5085_v32  ;;  %v5167_v16 = vld [vmem:[#allocation8 + $0x6a0] ss:$16 sps:$4 sm:$0xff]   ;;  %v5170_v32 = vld [vmem:[#allocation8 + $0x6a8] ss:$16 sps:$4 sm:$0xff]  }
 0x30d   : > { %3028 = vmatprep.subr.bf16.mxu1 %v5088_v44  ;;  %v5175_v44 = vld [vmem:[#allocation8 + $0x6c4] ss:$16 sps:$4 sm:$0xff]  }
 0x30f   : > { %2988 = vmatpush1.bf16.msra.mxu0 %v5083_v54  ;;  %v5178_v54 = vld [vmem:[#allocation8 + $0x6cc] ss:$16 sps:$4 sm:$0xff]  }
 0x310   : > { %3029 = vmatpush1.bf16.msra.mxu1 %v5086_v30  ;;  %2989 = vmatprep.subr.bf16.mxu0 %v5091_v51  ;;  %v5173_v30 = vld [vmem:[#allocation8 + $0x6c0] ss:$16 sps:$4 sm:$0xff]   ;;  %v5176_v51 = vld [vmem:[#allocation8 + $0x6c8] ss:$16 sps:$4 sm:$0xff]  }
 0x311   : > { %3030 = vmatprep.subr.bf16.mxu1 %v5094_v8  ;;  %v5181_v8 = vld [vmem:[#allocation8 + $0x6e4] ss:$16 sps:$4 sm:$0xff]  }
 0x313   : > { %2990 = vmatpush1.bf16.msra.mxu0 %v5089_v28  ;;  %v5184_v28 = vld [vmem:[#allocation8 + $0x6ec] ss:$16 sps:$4 sm:$0xff]  }
 0x314   : > { %3031 = vmatpush1.bf16.msra.mxu1 %v5092_v12  ;;  %2991 = vmatprep.subr.bf16.mxu0 %v5097_v2  ;;  %v5179_v12 = vld [vmem:[#allocation8 + $0x6e0] ss:$16 sps:$4 sm:$0xff]   ;;  %v5182_v2 = vld [vmem:[#allocation8 + $0x6e8] ss:$16 sps:$4 sm:$0xff]  }
 0x315   : > { %3032 = vmatprep.subr.bf16.mxu1 %v5100_v58  ;;  %v5187_v58 = vld [vmem:[#allocation8 + $0x704] ss:$16 sps:$4 sm:$0xff]  }
 0x317   : > { %2992 = vmatpush1.bf16.msra.mxu0 %v5095_v5  ;;  %v5190_v5 = vld [vmem:[#allocation8 + $0x70c] ss:$16 sps:$4 sm:$0xff]  }
 0x318   : > { %3033 = vmatpush1.bf16.msra.mxu1 %v5098_v37  ;;  %2993 = vmatprep.subr.bf16.mxu0 %v5103_v39  ;;  %v5185_v37 = vld [vmem:[#allocation8 + $0x700] ss:$16 sps:$4 sm:$0xff]   ;;  %v5188_v39 = vld [vmem:[#allocation8 + $0x708] ss:$16 sps:$4 sm:$0xff]  }
 0x319   : > { %3034 = vmatprep.subr.bf16.mxu1 %v5106_v3  ;;  %v5193_v3 = vld [vmem:[#allocation8 + $0x724] ss:$16 sps:$4 sm:$0xff]  }
 0x31b   : > { %2994 = vmatpush1.bf16.msra.mxu0 %v5101_v50  ;;  %v5196_v50 = vld [vmem:[#allocation8 + $0x72c] ss:$16 sps:$4 sm:$0xff]  }
 0x31c   : > { %3035 = vmatpush1.bf16.msra.mxu1 %v5104_v27  ;;  %2995 = vmatprep.subr.bf16.mxu0 %v5109_v4  ;;  %v5191_v27 = vld [vmem:[#allocation8 + $0x720] ss:$16 sps:$4 sm:$0xff]   ;;  %v5194_v4 = vld [vmem:[#allocation8 + $0x728] ss:$16 sps:$4 sm:$0xff]  }
 0x31d   : > { %3036 = vmatprep.subr.bf16.mxu1 %v5112_v20  ;;  %v5199_v20 = vld [vmem:[#allocation8 + $0x744] ss:$16 sps:$4 sm:$0xff]  }
 0x31f   : > { %2996 = vmatpush1.bf16.msra.mxu0 %v5107_v55  ;;  %v5202_v55 = vld [vmem:[#allocation8 + $0x74c] ss:$16 sps:$4 sm:$0xff]  }
 0x320   : > { %3037 = vmatpush1.bf16.msra.mxu1 %v5110_v52  ;;  %2997 = vmatprep.subr.bf16.mxu0 %v5115_v6  ;;  %v5197_v52 = vld [vmem:[#allocation8 + $0x740] ss:$16 sps:$4 sm:$0xff]   ;;  %v5200_v6 = vld [vmem:[#allocation8 + $0x748] ss:$16 sps:$4 sm:$0xff]  }
 0x321   : > { %3038 = vmatprep.subr.bf16.mxu1 %v5118_v35  ;;  %v5205_v35 = vld [vmem:[#allocation8 + $0x764] ss:$16 sps:$4 sm:$0xff]  }
 0x323   : > { %2998 = vmatpush1.bf16.msra.mxu0 %v5113_v41  ;;  %v5208_v41 = vld [vmem:[#allocation8 + $0x76c] ss:$16 sps:$4 sm:$0xff]  }
 0x324   : > { %3039 = vmatpush1.bf16.msra.mxu1 %v5116_v56  ;;  %2999 = vmatprep.subr.bf16.mxu0 %v5121_v18  ;;  %v5203_v56 = vld [vmem:[#allocation8 + $0x760] ss:$16 sps:$4 sm:$0xff]   ;;  %v5206_v18 = vld [vmem:[#allocation8 + $0x768] ss:$16 sps:$4 sm:$0xff]  }
 0x325   : > { %3040 = vmatprep.subr.bf16.mxu1 %v5124_v34  ;;  %v5211_v34 = vld [vmem:[#allocation8 + $0x784] ss:$16 sps:$4 sm:$0xff]  }
 0x327   : > { %3000 = vmatpush1.bf16.msra.mxu0 %v5119_v38  ;;  %v5214_v38 = vld [vmem:[#allocation8 + $0x78c] ss:$16 sps:$4 sm:$0xff]  }
 0x328   : > { %3041 = vmatpush1.bf16.msra.mxu1 %v5122_v23  ;;  %3001 = vmatprep.subr.bf16.mxu0 %v5127_v36  ;;  %v5209_v23 = vld [vmem:[#allocation8 + $0x780] ss:$16 sps:$4 sm:$0xff]   ;;  %v5212_v36 = vld [vmem:[#allocation8 + $0x788] ss:$16 sps:$4 sm:$0xff]  }
 0x329   : > { %3042 = vmatprep.subr.bf16.mxu1 %v5130_v14  ;;  %v5217_v14 = vld [vmem:[#allocation8 + $0x7a4] ss:$16 sps:$4 sm:$0xff]  }
 0x32b   : > { %3002 = vmatpush1.bf16.msra.mxu0 %v5125_v46  ;;  %v5220_v46 = vld [vmem:[#allocation8 + $0x7ac] ss:$16 sps:$4 sm:$0xff]  }
 0x32c   : > { %3043 = vmatpush1.bf16.msra.mxu1 %v5128_v61  ;;  %3003 = vmatprep.subr.bf16.mxu0 %v5133_v53  ;;  %v5215_v61 = vld [vmem:[#allocation8 + $0x7a0] ss:$16 sps:$4 sm:$0xff]   ;;  %v5218_v53 = vld [vmem:[#allocation8 + $0x7a8] ss:$16 sps:$4 sm:$0xff]  }
 0x32d   : > { %3044 = vmatprep.subr.bf16.mxu1 %v5136_v1  ;;  %v5223_v1 = vld [vmem:[#allocation8 + $0x7c4] ss:$16 sps:$4 sm:$0xff]  }
 0x32f   : > { %3004 = vmatpush1.bf16.msra.mxu0 %v5131_v13  ;;  %v5226_v13 = vld [vmem:[#allocation8 + $0x7cc] ss:$16 sps:$4 sm:$0xff]  }
 0x330   : > { %3045 = vmatpush1.bf16.msra.mxu1 %v5134_v49  ;;  %3448 = vmatprep.subr.bf16.mxu0 %v5139_v7  ;;  %v5221_v49 = vld [vmem:[#allocation8 + $0x7c0] ss:$16 sps:$4 sm:$0xff]   ;;  %v5224_v7 = vld [vmem:[#allocation8 + $0x7c8] ss:$16 sps:$4 sm:$0xff]  }
 0x331   : > { %3489 = vmatprep.subr.bf16.mxu1 %v5142_v33  ;;  %v5229_v33 = vld [vmem:[#allocation8 + $0x7e4] ss:$16 sps:$4 sm:$0xff]  }
 0x332   : > { %3006 = vmatmul.mubr.bf16.vlgmr.msra.gmra.mrb[44].mxu0 %v2586_v0 }
 0x333   : > { %3047 = vmatmul.mubr.bf16.vlgmr.msra.gmra.mrb[44].mxu1 %v2586_v0  ;;  %3449 = vmatpush1.bf16.msra.mxu0 %v5137_v10  ;;  %v5232_v10 = vld [vmem:[#allocation8 + $0x7ec] ss:$16 sps:$4 sm:$0xff]   ;;  %v5227_v0 = vld [vmem:[#allocation8 + $0x7e0] ss:$16 sps:$4 sm:$0xff]  }
 0x334   : > { %3480 = vmatprep.mubr.bf16.mxu0 %v3062_v29  ;;  %3490 = vmatpush1.bf16.msra.mxu1 %v5140_v59  ;;  %v5230_v59 = vld [vmem:[#allocation8 + $0x7e8] ss:$16 sps:$4 sm:$0xff]  }
 0x335   : > { %3521 = vmatprep.mubr.bf16.mxu1 %v3062_v29  ;;  %3450 = vmatprep.subr.bf16.mxu0 %v5145_v9  ;;  %v5235_v9 = vld [vmem:[#allocation8 + $0x804] ss:$16 sps:$4 sm:$0xff]   ;;  %v5238_v29 = vld [vmem:[#allocation8 + $0x80c] ss:$16 sps:$4 sm:$0xff]  }
 0x336   : > { %3491 = vmatprep.subr.bf16.mxu1 %v5148_v60  ;;  %v5233_v60 = vld [vmem:[#allocation8 + $0x800] ss:$16 sps:$4 sm:$0xff]  }
 0x337   : > { %3451 = vmatpush1.bf16.msra.mxu0 %v5143_v24  ;;  %v3061_v24 = vpack.c.bf16 %v6424_v42, %v6424_v42  ;;  %v5245_v42 = vld [vmem:[#allocation8 + $0x840] ss:$16 sps:$4 sm:$0xff]  }
 0x338   : > { %3492 = vmatpush1.bf16.msra.mxu1 %v5146_v57  ;;  %3452 = vmatprep.subr.bf16.mxu0 %v5151_v48  ;;  %v5236_v57 = vld [vmem:[#allocation8 + $0x808] ss:$16 sps:$4 sm:$0xff]   ;;  %v5241_v48 = vld [vmem:[#allocation8 + $0x824] ss:$16 sps:$4 sm:$0xff]  }
 0x339   : > { %3493 = vmatprep.subr.bf16.mxu1 %v5154_v40  ;;  %v3537_v40 = vpack.c.bf16 %v6453_v11, %v6453_v11  ;;  %v5256_v11 = vld [vmem:[#allocation8 + $0x86c] ss:$16 sps:$4 sm:$0xff]  }
 0x33b   : > { %3453 = vmatpush1.bf16.msra.mxu0 %v5149_v62  ;;  %v5244_v62 = vld [vmem:[#allocation8 + $0x82c] ss:$16 sps:$4 sm:$0xff]  }
 0x33c   : > { %3494 = vmatpush1.bf16.msra.mxu1 %v5152_v43  ;;  %3454 = vmatprep.subr.bf16.mxu0 %v5157_v19  ;;  %v5239_v43 = vld [vmem:[#allocation8 + $0x820] ss:$16 sps:$4 sm:$0xff]   ;;  %v5242_v19 = vld [vmem:[#allocation8 + $0x828] ss:$16 sps:$4 sm:$0xff]  }
 0x33d   : > { %3495 = vmatprep.subr.bf16.mxu1 %v5160_v26  ;;  %v5247_v26 = vld [vmem:[#allocation8 + $0x844] ss:$16 sps:$4 sm:$0xff]  }
 0x33f   : > { %3455 = vmatpush1.bf16.msra.mxu0 %v5155_v22  ;;  %v5250_v22 = vld [vmem:[#allocation8 + $0x84c] ss:$16 sps:$4 sm:$0xff]  }
 0x340   : > { %3496 = vmatpush1.bf16.msra.mxu1 %v5158_v17  ;;  %3456 = vmatprep.subr.bf16.mxu0 %v5163_v31  ;;  %v5248_v17 = vld [vmem:[#allocation8 + $0x848] ss:$16 sps:$4 sm:$0xff]   ;;  %v5253_v31 = vld [vmem:[#allocation8 + $0x864] ss:$16 sps:$4 sm:$0xff]  }
 0x341   : > { %3497 = vmatprep.subr.bf16.mxu1 %v5166_v15  ;;  %v5251_v15 = vld [vmem:[#allocation8 + $0x860] ss:$16 sps:$4 sm:$0xff]  }
 0x343   : > { %3457 = vmatpush1.bf16.msra.mxu0 %v5161_v21  ;;  %v5254_v21 = vld [vmem:[#allocation8 + $0x868] ss:$16 sps:$4 sm:$0xff]  }
 0x344   : > { %3498 = vmatpush1.bf16.msra.mxu1 %v5164_v47  ;;  %3458 = vmatprep.subr.bf16.mxu0 %v5169_v25  ;;  %v5259_v47 = vld [vmem:[#allocation8 + $0x884] ss:$16 sps:$4 sm:$0xff]   ;;  %v5262_v25 = vld [vmem:[#allocation8 + $0x88c] ss:$16 sps:$4 sm:$0xff]  }
 0x345   : > { %3499 = vmatprep.subr.bf16.mxu1 %v5172_v63  ;;  %v5257_v63 = vld [vmem:[#allocation8 + $0x880] ss:$16 sps:$4 sm:$0xff]  }
 0x347   : > { %3459 = vmatpush1.bf16.msra.mxu0 %v5167_v16  ;;  %v5260_v16 = vld [vmem:[#allocation8 + $0x888] ss:$16 sps:$4 sm:$0xff]  }
 0x348   : > { %3500 = vmatpush1.bf16.msra.mxu1 %v5170_v32  ;;  %3460 = vmatprep.subr.bf16.mxu0 %v5175_v44  ;;  %v5265_v32 = vld [vmem:[#allocation8 + $0x8a4] ss:$16 sps:$4 sm:$0xff]   ;;  %v5268_v44 = vld [vmem:[#allocation8 + $0x8ac] ss:$16 sps:$4 sm:$0xff]  }
 0x349   : > { %3501 = vmatprep.subr.bf16.mxu1 %v5178_v54  ;;  %v5263_v54 = vld [vmem:[#allocation8 + $0x8a0] ss:$16 sps:$4 sm:$0xff]  }
 0x34b   : > { %3461 = vmatpush1.bf16.msra.mxu0 %v5173_v30  ;;  %v5266_v30 = vld [vmem:[#allocation8 + $0x8a8] ss:$16 sps:$4 sm:$0xff]  }
 0x34c   : > { %3502 = vmatpush1.bf16.msra.mxu1 %v5176_v51  ;;  %3462 = vmatprep.subr.bf16.mxu0 %v5181_v8  ;;  %v5271_v51 = vld [vmem:[#allocation8 + $0x8c4] ss:$16 sps:$4 sm:$0xff]   ;;  %v5274_v8 = vld [vmem:[#allocation8 + $0x8cc] ss:$16 sps:$4 sm:$0xff]  }
 0x34d   : > { %3503 = vmatprep.subr.bf16.mxu1 %v5184_v28  ;;  %v5269_v28 = vld [vmem:[#allocation8 + $0x8c0] ss:$16 sps:$4 sm:$0xff]  }
 0x34f   : > { %3463 = vmatpush1.bf16.msra.mxu0 %v5179_v12  ;;  %v5272_v12 = vld [vmem:[#allocation8 + $0x8c8] ss:$16 sps:$4 sm:$0xff]  }
 0x350   : > { %3504 = vmatpush1.bf16.msra.mxu1 %v5182_v2  ;;  %3464 = vmatprep.subr.bf16.mxu0 %v5187_v58  ;;  %v5277_v2 = vld [vmem:[#allocation8 + $0x8e4] ss:$16 sps:$4 sm:$0xff]   ;;  %v5280_v58 = vld [vmem:[#allocation8 + $0x8ec] ss:$16 sps:$4 sm:$0xff]  }
 0x351   : > { %3505 = vmatprep.subr.bf16.mxu1 %v5190_v5  ;;  %v5275_v5 = vld [vmem:[#allocation8 + $0x8e0] ss:$16 sps:$4 sm:$0xff]  }
 0x353   : > { %3465 = vmatpush1.bf16.msra.mxu0 %v5185_v37  ;;  %v5278_v37 = vld [vmem:[#allocation8 + $0x8e8] ss:$16 sps:$4 sm:$0xff]  }
 0x354   : > { %3506 = vmatpush1.bf16.msra.mxu1 %v5188_v39  ;;  %3466 = vmatprep.subr.bf16.mxu0 %v5193_v3  ;;  %v5283_v39 = vld [vmem:[#allocation8 + $0x904] ss:$16 sps:$4 sm:$0xff]   ;;  %v5286_v3 = vld [vmem:[#allocation8 + $0x90c] ss:$16 sps:$4 sm:$0xff]  }
 0x355   : > { %3507 = vmatprep.subr.bf16.mxu1 %v5196_v50  ;;  %v5281_v50 = vld [vmem:[#allocation8 + $0x900] ss:$16 sps:$4 sm:$0xff]  }
 0x357   : > { %3467 = vmatpush1.bf16.msra.mxu0 %v5191_v27  ;;  %v5284_v27 = vld [vmem:[#allocation8 + $0x908] ss:$16 sps:$4 sm:$0xff]  }
 0x358   : > { %3508 = vmatpush1.bf16.msra.mxu1 %v5194_v4  ;;  %3468 = vmatprep.subr.bf16.mxu0 %v5199_v20  ;;  %v5289_v4 = vld [vmem:[#allocation8 + $0x924] ss:$16 sps:$4 sm:$0xff]   ;;  %v5292_v20 = vld [vmem:[#allocation8 + $0x92c] ss:$16 sps:$4 sm:$0xff]  }
 0x359   : > { %3509 = vmatprep.subr.bf16.mxu1 %v5202_v55  ;;  %v5287_v55 = vld [vmem:[#allocation8 + $0x920] ss:$16 sps:$4 sm:$0xff]  }
 0x35b   : > { %3469 = vmatpush1.bf16.msra.mxu0 %v5197_v52  ;;  %v5290_v52 = vld [vmem:[#allocation8 + $0x928] ss:$16 sps:$4 sm:$0xff]  }
 0x35c   : > { %3510 = vmatpush1.bf16.msra.mxu1 %v5200_v6  ;;  %3470 = vmatprep.subr.bf16.mxu0 %v5205_v35  ;;  %v5295_v6 = vld [vmem:[#allocation8 + $0x944] ss:$16 sps:$4 sm:$0xff]   ;;  %v5298_v35 = vld [vmem:[#allocation8 + $0x94c] ss:$16 sps:$4 sm:$0xff]  }
 0x35d   : > { %3511 = vmatprep.subr.bf16.mxu1 %v5208_v41  ;;  %v5293_v41 = vld [vmem:[#allocation8 + $0x940] ss:$16 sps:$4 sm:$0xff]  }
 0x35f   : > { %3471 = vmatpush1.bf16.msra.mxu0 %v5203_v56  ;;  %v5296_v56 = vld [vmem:[#allocation8 + $0x948] ss:$16 sps:$4 sm:$0xff]  }
 0x360   : > { %3512 = vmatpush1.bf16.msra.mxu1 %v5206_v18  ;;  %3472 = vmatprep.subr.bf16.mxu0 %v5211_v34  ;;  %v5301_v18 = vld [vmem:[#allocation8 + $0x964] ss:$16 sps:$4 sm:$0xff]   ;;  %v5304_v34 = vld [vmem:[#allocation8 + $0x96c] ss:$16 sps:$4 sm:$0xff]  }
 0x361   : > { %3513 = vmatprep.subr.bf16.mxu1 %v5214_v38  ;;  %v5299_v38 = vld [vmem:[#allocation8 + $0x960] ss:$16 sps:$4 sm:$0xff]  }
 0x363   : > { %3473 = vmatpush1.bf16.msra.mxu0 %v5209_v23  ;;  %v5302_v23 = vld [vmem:[#allocation8 + $0x968] ss:$16 sps:$4 sm:$0xff]  }
 0x364   : > { %3514 = vmatpush1.bf16.msra.mxu1 %v5212_v36  ;;  %3474 = vmatprep.subr.bf16.mxu0 %v5217_v14  ;;  %v5307_v36 = vld [vmem:[#allocation8 + $0x984] ss:$16 sps:$4 sm:$0xff]   ;;  %v5310_v14 = vld [vmem:[#allocation8 + $0x98c] ss:$16 sps:$4 sm:$0xff]  }
 0x365   : > { %3515 = vmatprep.subr.bf16.mxu1 %v5220_v46  ;;  %v5305_v46 = vld [vmem:[#allocation8 + $0x980] ss:$16 sps:$4 sm:$0xff]  }
 0x367   : > { %3475 = vmatpush1.bf16.msra.mxu0 %v5215_v61  ;;  %v5308_v61 = vld [vmem:[#allocation8 + $0x988] ss:$16 sps:$4 sm:$0xff]  }
 0x368   : > { %3516 = vmatpush1.bf16.msra.mxu1 %v5218_v53  ;;  %3476 = vmatprep.subr.bf16.mxu0 %v5223_v1  ;;  %v5313_v53 = vld [vmem:[#allocation8 + $0x9a4] ss:$16 sps:$4 sm:$0xff]   ;;  %v5316_v1 = vld [vmem:[#allocation8 + $0x9ac] ss:$16 sps:$4 sm:$0xff]  }
 0x369   : > { %3517 = vmatprep.subr.bf16.mxu1 %v5226_v13  ;;  %v5311_v13 = vld [vmem:[#allocation8 + $0x9a0] ss:$16 sps:$4 sm:$0xff]  }
 0x36b   : > { %3477 = vmatpush1.bf16.msra.mxu0 %v5221_v49  ;;  %v5314_v49 = vld [vmem:[#allocation8 + $0x9a8] ss:$16 sps:$4 sm:$0xff]  }
 0x36c   : > { %3518 = vmatpush1.bf16.msra.mxu1 %v5224_v7  ;;  %3478 = vmatprep.subr.bf16.mxu0 %v5229_v33  ;;  %v5319_v7 = vld [vmem:[#allocation8 + $0x9c4] ss:$16 sps:$4 sm:$0xff]   ;;  %v5322_v33 = vld [vmem:[#allocation8 + $0x9cc] ss:$16 sps:$4 sm:$0xff]  }
 0x36d   : > { %3519 = vmatprep.subr.bf16.mxu1 %v5232_v10  ;;  %v5317_v10 = vld [vmem:[#allocation8 + $0x9c0] ss:$16 sps:$4 sm:$0xff]  }
 0x36f   : > { %3479 = vmatpush1.bf16.msra.mxu0 %v5227_v0  ;;  %v5320_v0 = vld [vmem:[#allocation8 + $0x9c8] ss:$16 sps:$4 sm:$0xff]  }
 0x370   : > { %3520 = vmatpush1.bf16.msra.mxu1 %v5230_v59  ;;  %3923 = vmatprep.subr.bf16.mxu0 %v5235_v9  ;;  %v5325_v59 = vld [vmem:[#allocation8 + $0x9e4] ss:$16 sps:$4 sm:$0xff]   ;;  %v5328_v9 = vld [vmem:[#allocation8 + $0x9ec] ss:$16 sps:$4 sm:$0xff]  }
 0x371   : > { %3964 = vmatprep.subr.bf16.mxu1 %v5238_v29  ;;  %v5323_v29 = vld [vmem:[#allocation8 + $0x9e0] ss:$16 sps:$4 sm:$0xff]  }
 0x372   : > { %3481 = vmatmul.mubr.bf16.vlgmr.msra.gmra.mrb[44].mxu0 %v3061_v24 }
 0x373   : > { %3522 = vmatmul.mubr.bf16.vlgmr.msra.gmra.mrb[44].mxu1 %v3061_v24  ;;  %3924 = vmatpush1.bf16.msra.mxu0 %v5233_v60  ;;  %v5326_v60 = vld [vmem:[#allocation8 + $0x9e8] ss:$16 sps:$4 sm:$0xff]   ;;  %v3536_v24 = vpack.c.bf16 %v6451_v45, %v6451_v45 }
 0x374   : > { %3955 = vmatprep.mubr.bf16.mxu0 %v3537_v40  ;;  %3965 = vmatpush1.bf16.msra.mxu1 %v5236_v57  ;;  %v4039_v57 = vlaneseq }
 0x375   : > { %3996 = vmatprep.mubr.bf16.mxu1 %v3537_v40  ;;  %3925 = vmatprep.subr.bf16.mxu0 %v5241_v48 }
 0x376   : > { %3966 = vmatprep.subr.bf16.mxu1 %v5244_v62  ;;  %vm4094_vm5 = vcmp.lt.s32.totalorder %v4039_v57, 512 }
 0x377   : > { %3926 = vmatpush1.bf16.msra.mxu0 %v5239_v43 }
 0x378   : > { %3967 = vmatpush1.bf16.msra.mxu1 %v5242_v19  ;;  %3927 = vmatprep.subr.bf16.mxu0 %v5247_v26 }
 0x379   : > { %3968 = vmatprep.subr.bf16.mxu1 %v5250_v22 }
 0x37b   : > { %3928 = vmatpush1.bf16.msra.mxu0 %v5245_v42 }
 0x37c   : > { %3969 = vmatpush1.bf16.msra.mxu1 %v5248_v17  ;;  %3929 = vmatprep.subr.bf16.mxu0 %v5253_v31  ;;  %v4040_v31 = vshrl.u32 %v4039_v57, 7 }
 0x37d   : > { %3970 = vmatprep.subr.bf16.mxu1 %v5256_v11 }
 0x37f   : > { %3930 = vmatpush1.bf16.msra.mxu0 %v5251_v15 }
 0x380   : > { %3971 = vmatpush1.bf16.msra.mxu1 %v5254_v21  ;;  %3931 = vmatprep.subr.bf16.mxu0 %v5259_v47 }
 0x381   : > { %3972 = vmatprep.subr.bf16.mxu1 %v5262_v25 }
 0x383   : > { %3932 = vmatpush1.bf16.msra.mxu0 %v5257_v63 }
 0x384   : > { %3973 = vmatpush1.bf16.msra.mxu1 %v5260_v16  ;;  %3933 = vmatprep.subr.bf16.mxu0 %v5265_v32 }
 0x385   : > { %3974 = vmatprep.subr.bf16.mxu1 %v5268_v44 }
 0x387   : > { %3934 = vmatpush1.bf16.msra.mxu0 %v5263_v54 }
 0x388   : > { %3975 = vmatpush1.bf16.msra.mxu1 %v5266_v30  ;;  %3935 = vmatprep.subr.bf16.mxu0 %v5271_v51  ;;  %v4041_v30 = vsub.s32 0, %v4040_v31  ;;  %v4049_v51 = vsub.s32 2, %v4040_v31 }
 0x389   : > { %3976 = vmatprep.subr.bf16.mxu1 %v5274_v8 }
 0x38b   : > { %3936 = vmatpush1.bf16.msra.mxu0 %v5269_v28  ;;  %v4037_v28 = vld [vmem:[#allocation9] sm:$0xf] }
 0x38c   : > { %3977 = vmatpush1.bf16.msra.mxu1 %v5272_v12  ;;  %3937 = vmatprep.subr.bf16.mxu0 %v5277_v2 }
 0x38d   : > { %3978 = vmatprep.subr.bf16.mxu1 %v5280_v58  ;;  %v4045_v58 = vsub.s32 1, %v4040_v31 }
 0x38f   : > { %3938 = vmatpush1.bf16.msra.mxu0 %v5275_v5  ;;  %v5720_v5 = vmov 1966171168  }
 0x390   : > { %3979 = vmatpush1.bf16.msra.mxu1 %v5278_v37  ;;  %3939 = vmatprep.subr.bf16.mxu0 %v5283_v39  ;;  %v4070_v37 = vunpack.c.l.s4 %v5720_v5 }
 0x391   : > { %3980 = vmatprep.subr.bf16.mxu1 %v5286_v3 }
 0x393   : > { %3940 = vmatpush1.bf16.msra.mxu0 %v5281_v50  ;;  %v4053_v50 = vsub.s32 3, %v4040_v31 }
 0x394   : > { %3981 = vmatpush1.bf16.msra.mxu1 %v5284_v27  ;;  %3941 = vmatprep.subr.bf16.mxu0 %v5289_v4 }
 0x395   : > { %3982 = vmatprep.subr.bf16.mxu1 %v5292_v20 }
 0x397   : > { %3942 = vmatpush1.bf16.msra.mxu0 %v5287_v55  ;;  %v4042_v55 = vrot.slane %v4037_v28, %v4041_v30 }
 0x398   : > { %3983 = vmatpush1.bf16.msra.mxu1 %v5290_v52  ;;  %3943 = vmatprep.subr.bf16.mxu0 %v5295_v6  ;;  %v4050_v52 = vrot.slane %v4037_v28, %v4049_v51 }
 0x399   : > { %3984 = vmatprep.subr.bf16.mxu1 %v5298_v35 }
 0x39b   : > { %3944 = vmatpush1.bf16.msra.mxu0 %v5293_v41 }
 0x39c   : > { %3985 = vmatpush1.bf16.msra.mxu1 %v5296_v56  ;;  %3945 = vmatprep.subr.bf16.mxu0 %v5301_v18  ;;  %v4046_v56 = vrot.slane %v4037_v28, %v4045_v58  ;;  %v4071_v18 = vunpack.c.0.s8 %v4070_v37 }
 0x39d   : > { %3986 = vmatprep.subr.bf16.mxu1 %v5304_v34 }
 0x39f   : > { %3946 = vmatpush1.bf16.msra.mxu0 %v5299_v38 }
 0x3a0   : > { %3987 = vmatpush1.bf16.msra.mxu1 %v5302_v23  ;;  %3947 = vmatprep.subr.bf16.mxu0 %v5307_v36  ;;  %v4054_v23 = vrot.slane %v4037_v28, %v4053_v50 }
 0x3a1   : > { %3988 = vmatprep.subr.bf16.mxu1 %v5310_v14 }
 0x3a3   : > { %3948 = vmatpush1.bf16.msra.mxu0 %v5305_v46 }
 0x3a4   : > { %3989 = vmatpush1.bf16.msra.mxu1 %v5308_v61  ;;  %3949 = vmatprep.subr.bf16.mxu0 %v5313_v53 }
 0x3a5   : > { %3990 = vmatprep.subr.bf16.mxu1 %v5316_v1 }
 0x3a7   : > { %3950 = vmatpush1.bf16.msra.mxu0 %v5311_v13  ;;  %v4074_v13 = vsub.s32 %v4071_v18, %v4040_v31 }
 0x3a8   : > { %3991 = vmatpush1.bf16.msra.mxu1 %v5314_v49  ;;  %3951 = vmatprep.subr.bf16.mxu0 %v5319_v7 }
 0x3a9   : > { %3992 = vmatprep.subr.bf16.mxu1 %v5322_v33 }
 0x3ab   : > { %3952 = vmatpush1.bf16.msra.mxu0 %v5317_v10 }
 0x3ac   : > { %3993 = vmatpush1.bf16.msra.mxu1 %v5320_v0  ;;  %3953 = vmatprep.subr.bf16.mxu0 %v5325_v59 }
 0x3ad   : > { %3994 = vmatprep.subr.bf16.mxu1 %v5328_v9 }
 0x3af   : > { %3954 = vmatpush1.bf16.msra.mxu0 %v5323_v29 }
 0x3b0   : > { %3995 = vmatpush1.bf16.msra.mxu1 %v5326_v60 }
 0x3b2   : > { %3956 = vmatmul.mubr.bf16.vlgmr.msra.gmra.mrb[44].mxu0 %v3536_v24 }
 0x3b3   : > { %3997 = vmatmul.mubr.bf16.vlgmr.msra.gmra.mrb[44].mxu1 %v3536_v24 }
 0x485   : > { %v3957_v48 = vpop.f32.mrb[44].mxu0 }
 0x486   : > { %v4009_v40 = vrot.slane %v3957_v48, 4  ;;  %v3998_v62 = vpop.f32.mrb[44].mxu1  ;;  %v3959_v43 = vpop.f32.mrb[45].mxu0 }
 0x487   : > { %v4021_v19 = vrot.slane %v3998_v62, 4  ;;  %v4015_v26 = vrot.slane %v3959_v43, 4  ;;  %v4000_v22 = vpop.f32.mrb[45].mxu1  ;;  %v3961_v42 = vpop.f32.mrb[46].mxu0 }
 0x488   : > { %v4010_v17 = vadd.f32 %v4009_v40, %v3957_v48  ;;  %v4027_v11 = vrot.slane %v4000_v22, 4  ;;  %v4002_v15 = vpop.f32.mrb[46].mxu1  ;;  %v3962_v21 = vpop.f32.mrb[47].mxu0 }
 0x489   : > { %v4022_v47 = vadd.f32 %v4021_v19, %v3998_v62  ;;  %v4016_v25 = vadd.f32 %v4015_v26, %v3959_v43  ;;  %v4003_v45 = vpop.f32.mrb[47].mxu1 }
 0x48a   : > { %v4011_v63 = vrot.slane %v4010_v17, 2  ;;  %v4028_v16 = vadd.f32 %v4027_v11, %v4000_v22 }
 0x48b   : > { %v4023_v32 = vrot.slane %v4022_v47, 2  ;;  %v4017_v44 = vrot.slane %v4016_v25, 2 }
 0x48c   : > { %v4012_v54 = vadd.f32 %v4011_v63, %v4010_v17  ;;  %v4029_v8 = vrot.slane %v4028_v16, 2 }
 0x48d   : > { %v4024_v12 = vadd.f32 %v4023_v32, %v4022_v47  ;;  %v4018_v2 = vadd.f32 %v4017_v44, %v4016_v25 }
 0x48e   : > { %v4013_v39 = vrot.slane %v4012_v54, 1  ;;  %v4030_v3 = vadd.f32 %v4029_v8, %v4028_v16 }
 0x48f   : > { %v4025_v27 = vrot.slane %v4024_v12, 1  ;;  %v4019_v4 = vrot.slane %v4018_v2, 1 }
 0x490   : > { %v4014_v20 = vadd.f32 %v4013_v39, %v4012_v54  ;;  %v4031_v6 = vrot.slane %v4030_v3, 1 }
 0x491   : > { %v4026_v35 = vadd.f32 %v4025_v27, %v4024_v12  ;;  %v4020_v41 = vadd.f32 %v4019_v4, %v4018_v2 }
 0x492   : > { %v4033_v34 = vmul.f32 0.015625, %v4014_v20  ;;  %v4032_v38 = vadd.f32 %v4031_v6, %v4030_v3 }
 0x493   : > { %v4035_v36 = vmul.f32 0.015625, %v4026_v35  ;;  %v4034_v14 = vmul.f32 0.015625, %v4020_v41 }
 0x494   : > { %v4059_v46 = vadd.f32 %v4042_v55, %v4033_v34  ;;  %v4036_v61 = vmul.f32 0.015625, %v4032_v38 }
 0x495   : > { %v4061_v53 = vadd.f32 %v4050_v52, %v4035_v36  ;;  %v4060_v1 = vadd.f32 %v4046_v56, %v4034_v14 }
 0x496   : > { %v4062_v49 = vadd.f32 %v4054_v23, %v4036_v61 }
 0x497   : > { %v4067_v7 = vcombine.low %v4059_v46, %v4060_v1 }
 0x498   : > { %v4068_v33 = vcombine.low %v4061_v53, %v4062_v49 }
 0x499   : > { %v4075_v10 = vrot.slane %v4067_v7, %v4074_v13 }
 0x49a   : > { %v4082_v0 = vrot.slane %v4068_v33, %v4074_v13 }
 0x49c   : > { %v4083_v59 = vcombine.low %v4075_v10, %v4082_v0 }
 0x49e   : > { %v4090_v9 = vrot.slane %v4083_v59, %v4074_v13 }
 0x4a0   : > { %4096 = vst.msk [vmem:[%s332_s16] sm:$0xf] %vm4094_vm5, %v4090_v9 }
 0x4a1   : > { %5630 = shalt.err (!%p5627_p6)
}
 0x4a2   : > { %s5631_s2 = scalar_lea.hbm %s6489_s25, 64  ;;  %s5635_s14 = scalar_lea.hbm %s6542_s6, 128 }
 0x4a3   : > { %p5632_p7 = scmp.ne.s32.totalorder %s6489_s25, %s5631_s2  ;;  %p5636_p4 = scmp.lt.u32.totalorder %s6489_s25, %s6542_s6 }
 0x4a4   : > { %p5637_p8 = scmp.lt.u32.totalorder %s5635_s14, %s5631_s2  ;;  %p5639_p1 = scmp.lt.u32.totalorder %s5631_s2, %s6489_s25 }
 0x4a5   : > { %p5633_p9 = pnand %p5632_p7, %p6619_p10 }
 0x4a6   : > { %p5638_p13 = por %p5637_p8, %p5636_p4 }
 0x4a7   : > { %p5634_p12 = pneg %p5633_p9 }
 0x4a8   : > { %p5640_p11 = por %p5639_p1, %p5638_p13 }
 0x4aa   : > { %p5641_p0 = pnand %p5640_p11, %p5634_p12 }
 0x4ac   : > { %5644 = shalt.err (!%p5641_p0)
}
 0x4ad   : > { %4725 = dma.vmem_to_hbm [thread:$0]  (%p6619_p10), %s6491_s27, 64, %s6489_s25, %s4103_s29  }
 0x4ae PF: > { %p4752_p2 = scmp.ge.s32.totalorder %s5707_s26, 2  ;;  %s4140_s28 = sand.u32 1, %s5687_s21  }
 0x4af   : > { %p6620_p3 = scmp.ne.s32.totalorder %s6572_s9, 0  ;;  %s4141_s8 = scalar_lea.sflag [#allocation5], %s4140_s28 }
 0x4b1   : > { %p4741_p5 = pnand %p4752_p2, %p6620_p3 }
 0x4b3   : > { %5682 = dma.done.wait (!%p4741_p5), %s4141_s8, 64  }
 0x4b4   : > { %5684 = vsyncadd (!%p4741_p5), %s4141_s8, 4294967232  ;;  %s23_s26 = sadd.s32 1, %s5707_s26   ;;  %s6621_s7 = sld [smem:[#allocation18_spill]] }
 0x4b5   : > { %p20_p6 = scmp.ge.s32.totalorder %s23_s26, 4   ;;  %s6622_s24 = sld [smem:[#allocation16_spill]] }
 0x4b6   : > { %s6623_s25 = sld [smem:[#allocation17_spill]]  ;;  %s6624_s21 = smov %s5691_s22 }
 0x4b7   : > { %s6625_s22 = smov %s5695_s23  ;;  %22 = sbr.rel (!%p20_p6) target bundleno = 9 (0x9), region = 124 }
 0x4ba   : > { %s6626_s23 = smov %s6621_s7 }
 0x4be   :  { %4146 = vsyncpa [#allocation4], 1 }
 0x4bf   :  { %4148 = vsyncpa [#allocation4 + $0x1], 1 }
 0x4c0   :  { %4149 = vsyncpa [#allocation7], 1 }
 0x4c1   :  { %4150 = vsyncpa [#allocation10], 1 }
 0x4c2   :  { %4151 = vsyncpa [#allocation5], 1 }
 0x4c3   :  { %4153 = vsyncpa [#allocation5 + $0x1], 1 }

</bundles_post_ra>
